<compile_context>
chip_gen: v5e
topology: v5e:2x2
jax: 0.10.0
libtpu: 0.0.40
codegen_flags: <defaults>
</compile_context>

<pallas_src>
import jax
import jax.numpy as jnp
from jax.experimental import pallas as pl
from jax.experimental.pallas import tpu as pltpu

LN_EPS = 1e-5
BN_EPS = 1e-5

# Row indices inside the packed (L, 19, D) per-channel-vector table.
(F1_G, F1_B, F1_B2,
 M_G, M_B, M_BO,
 C_G, C_B, C_BA, C_BG, C_DWB, C_BNS, C_BNO, C_PW2B,
 F2_G, F2_B, F2_B2,
 BLK_G, BLK_B) = range(19)


# --------------------------- Pallas kernel ---------------------------
def make_encoder_kernel(B, T, D, FF, H, K, L):
    BT = B * T
    dk = D // H
    P = (K - 1) // 2
    scale = 1.0 / float(dk) ** 0.5

    def kernel(x_ref, vecD_ref, vecF_ref, wdf_ref, wfd_ref,
               wqkv_ref, bqkv_ref, woh_ref, wconv_ref, dw_ref,
               o_ref, pad_ref):
        x = x_ref[...].astype(jnp.float32)               # (B*T, D)

        def ln(h, g, b):
            mu = jnp.mean(h, axis=-1, keepdims=True)
            var = jnp.mean((h - mu) ** 2, axis=-1, keepdims=True)
            return (h - mu) * jax.lax.rsqrt(var + LN_EPS) * g + b

        def swish(h):
            return h * jax.nn.sigmoid(h)

        # zero the padded depthwise-conv scratch once (halo stays zero forever)
        pad_ref[...] = jnp.zeros((B, T + 2 * P, D), jnp.float32)

        for l in range(L):                               # static unroll over layers
            V = vecD_ref[l]                              # (19, D) per-channel vectors
            BF = vecF_ref[l]                             # (2, FF) FFN hidden biases
            DW = dw_ref[l]                               # (K, D)  depthwise taps

            def vD(i):
                return V[i:i + 1, :]                     # (1, D)

            def ffn(h, gi, bi, j, b2i):
                y = ln(h, vD(gi), vD(bi))
                y = jnp.dot(y, wdf_ref[2 * l + j],
                            preferred_element_type=jnp.float32) + BF[j:j + 1, :]
                y = swish(y)
                y = jnp.dot(y, wfd_ref[2 * l + j],
                            preferred_element_type=jnp.float32) + vD(b2i)
                return h + 0.5 * y                       # half-step residual

            # ---------------- FFN1 ----------------
            x = ffn(x, F1_G, F1_B, 0, F1_B2)

            # ---------------- Multi-head self-attention ----------------
            h_ln = ln(x, vD(M_G), vD(M_B))
            att = jnp.zeros((BT, D), jnp.float32)
            for hh in range(H):                          # heads: pre-split weights, no lane slices
                def proj(i):
                    w = wqkv_ref[(l * 3 + i) * H + hh]            # (D, dk)
                    b = bqkv_ref[l * 3 + i][hh:hh + 1, :]         # (1, dk)
                    return jnp.dot(h_ln, w, preferred_element_type=jnp.float32) + b
                q3 = proj(0).reshape(B, T, dk)
                k3 = proj(1).reshape(B, T, dk)
                v3 = proj(2).reshape(B, T, dk)
                s = jnp.einsum('btd,bsd->bts', q3, k3,
                               preferred_element_type=jnp.float32) * scale
                s = s - jnp.max(s, axis=-1, keepdims=True)
                e = jnp.exp(s)
                p = e * pl.reciprocal(jnp.sum(e, axis=-1, keepdims=True), approx=True)
                ctx = jnp.einsum('bts,bsd->btd', p, v3,
                                 preferred_element_type=jnp.float32)
                # accumulate per-head output projection (replaces concat + full matmul)
                att = att + jnp.dot(ctx.reshape(BT, dk), woh_ref[l * H + hh],
                                    preferred_element_type=jnp.float32)
            x = x + att + vD(M_BO)

            # ---------------- Convolution module ----------------
            h_ln = ln(x, vD(C_G), vD(C_B))
            glu_a = jnp.dot(h_ln, wconv_ref[l * 3 + 0],
                            preferred_element_type=jnp.float32) + vD(C_BA)
            glu_g = jnp.dot(h_ln, wconv_ref[l * 3 + 1],
                            preferred_element_type=jnp.float32) + vD(C_BG)
            hc = glu_a * jax.nn.sigmoid(glu_g)           # GLU from two lane-aligned matmuls
            # depthwise conv: static slices of the zero-padded VMEM scratch (no MXU work)
            pad_ref[:, P:P + T, :] = hc.reshape(B, T, D)
            acc = jnp.zeros((BT, D), jnp.float32)
            for kk in range(K):
                acc = acc + pad_ref[:, kk:kk + T, :].reshape(BT, D) * DW[kk:kk + 1, :]
            hc = acc + vD(C_DWB)
            hc = hc * vD(C_BNS) + vD(C_BNO)              # BatchNorm1d (eval), folded scale/shift
            hc = swish(hc)
            hc = jnp.dot(hc, wconv_ref[l * 3 + 2],
                         preferred_element_type=jnp.float32) + vD(C_PW2B)
            x = x + hc                                   # TODO(synk): dropout omitted (inference)

            # ---------------- FFN2 ----------------
            x = ffn(x, F2_G, F2_B, 1, F2_B2)

            # ---------------- block LayerNorm ----------------
            x = ln(x, vD(BLK_G), vD(BLK_B))

        # encoder output activation (ReLU)
        o_ref[...] = jnp.maximum(x, 0.0).astype(o_ref.dtype)

    return kernel


def conformer_encoder(x, packed):
    B, T, D = x.shape
    vecD, vecF, wdf, wfd, wqkv, bqkv, woh, wconv, dw = packed
    L = vecD.shape[0]
    FF = vecF.shape[-1]
    H = bqkv.shape[1]
    K = dw.shape[1]
    P = (K - 1) // 2
    kernel = make_encoder_kernel(B, T, D, FF, H, K, L)
    out = pl.pallas_call(
        kernel,
        out_shape=jax.ShapeDtypeStruct((B * T, D), x.dtype),
        scratch_shapes=[pltpu.VMEM((B, T + 2 * P, D), jnp.float32)],
    )(x.reshape(B * T, D), *packed)
    return out.reshape(B, T, D)


# ------------------- host-side parameter construction -------------------
def init_layer_params(key, D, FF, H, K):
    ks = iter(jax.random.split(key, 40))

    def nrm(shape, s=1.0):
        return jax.random.normal(next(ks), shape, dtype=jnp.float32) * s

    def w(fan_in, fan_out):
        return nrm((fan_in, fan_out), 1.0 / (fan_in ** 0.5))

    def affine(n):
        return 1.0 + 0.1 * nrm((n,)), 0.1 * nrm((n,))

    p = {}
    p['f1_g'], p['f1_b'] = affine(D)
    p['f1_w1'], p['f1_b1'] = w(D, FF), 0.02 * nrm((FF,))
    p['f1_w2'], p['f1_b2'] = w(FF, D), 0.02 * nrm((D,))
    p['m_g'], p['m_b'] = affine(D)
    p['wq'], p['bq'] = w(D, D), 0.02 * nrm((D,))
    p['wk'], p['bk'] = w(D, D), 0.02 * nrm((D,))
    p['wv'], p['bv'] = w(D, D), 0.02 * nrm((D,))
    p['wo'], p['bo'] = w(D, D), 0.02 * nrm((D,))
    p['c_g'], p['c_b'] = affine(D)
    p['pw1_w'], p['pw1_b'] = w(D, 2 * D), 0.02 * nrm((2 * D,))
    p['dw_w'], p['dw_b'] = nrm((K, D), 1.0 / (K ** 0.5)), 0.02 * nrm((D,))
    p['bn_g'], p['bn_b'] = affine(D)
    p['bn_m'] = 0.1 * nrm((D,))
    p['bn_v'] = 0.5 + jnp.abs(nrm((D,), 0.3))
    p['pw2_w'], p['pw2_b'] = w(D, D), 0.02 * nrm((D,))
    p['f2_g'], p['f2_b'] = affine(D)
    p['f2_w1'], p['f2_b1'] = w(D, FF), 0.02 * nrm((FF,))
    p['f2_w2'], p['f2_b2'] = w(FF, D), 0.02 * nrm((D,))
    p['ln_g'], p['ln_b'] = affine(D)
    return p


def pack_params(layers, D, FF, H, K):
    """Consolidate per-layer params into 9 stacked tensors (leading layer dims flattened)."""
    L = len(layers)
    dk = D // H
    vecD, vecF, wdf, wfd, wqkv, bqkv, woh, wconv, dw = ([] for _ in range(9))
    for p in layers:
        bn_scale = p['bn_g'] / jnp.sqrt(p['bn_v'] + BN_EPS)
        bn_shift = p['bn_b'] - p['bn_m'] * bn_scale
        vecD.append(jnp.stack([
            p['f1_g'], p['f1_b'], p['f1_b2'],
            p['m_g'], p['m_b'], p['bo'],
            p['c_g'], p['c_b'], p['pw1_b'][:D], p['pw1_b'][D:],
            p['dw_b'], bn_scale, bn_shift, p['pw2_b'],
            p['f2_g'], p['f2_b'], p['f2_b2'],
            p['ln_g'], p['ln_b']]))                            # (19, D)
        vecF.append(jnp.stack([p['f1_b1'], p['f2_b1']]))        # (2, FF)
        wdf.append(jnp.stack([p['f1_w1'], p['f2_w1']]))         # (2, D, FF)
        wfd.append(jnp.stack([p['f1_w2'], p['f2_w2']]))         # (2, FF, D)
        wqkv.append(jnp.stack([
            p['wq'].reshape(D, H, dk).transpose(1, 0, 2),
            p['wk'].reshape(D, H, dk).transpose(1, 0, 2),
            p['wv'].reshape(D, H, dk).transpose(1, 0, 2)]))     # (3, H, D, dk)
        bqkv.append(jnp.stack([p['bq'].reshape(H, dk),
                               p['bk'].reshape(H, dk),
                               p['bv'].reshape(H, dk)]))        # (3, H, dk)
        woh.append(p['wo'].reshape(H, dk, D))                   # (H, dk, D)
        wconv.append(jnp.stack([p['pw1_w'][:, :D], p['pw1_w'][:, D:], p['pw2_w']]))  # (3, D, D)
        dw.append(p['dw_w'])                                    # (K, D)
    return (jnp.stack(vecD),                                    # (L, 19, D)
            jnp.stack(vecF),                                    # (L, 2, FF)
            jnp.stack(wdf).reshape(2 * L, D, FF),
            jnp.stack(wfd).reshape(2 * L, FF, D),
            jnp.stack(wqkv).reshape(3 * H * L, D, dk),
            jnp.stack(bqkv).reshape(3 * L, H, dk),
            jnp.stack(woh).reshape(H * L, dk, D),
            jnp.stack(wconv).reshape(3 * L, D, D),
            jnp.stack(dw))                                      # (L, K, D)


# --------------------- pure-JAX reference (same math) ---------------------
def reference_encoder(x, layers, H, K):
    B, T, D = x.shape
    dk = D // H
    P = (K - 1) // 2

    def ln(h, g, b):
        mu = jnp.mean(h, axis=-1, keepdims=True)
        var = jnp.mean((h - mu) ** 2, axis=-1, keepdims=True)
        return (h - mu) / jnp.sqrt(var + LN_EPS) * g + b

    def swish(h):
        return h * jax.nn.sigmoid(h)

    for p in layers:
        # FFN1
        y = ln(x, p['f1_g'], p['f1_b'])
        y = swish(y @ p['f1_w1'] + p['f1_b1']) @ p['f1_w2'] + p['f1_b2']
        x = x + 0.5 * y
        # MHA
        h = ln(x, p['m_g'], p['m_b'])
        q = (h @ p['wq'] + p['bq']).reshape(B, T, H, dk).transpose(0, 2, 1, 3)
        k = (h @ p['wk'] + p['bk']).reshape(B, T, H, dk).transpose(0, 2, 1, 3)
        v = (h @ p['wv'] + p['bv']).reshape(B, T, H, dk).transpose(0, 2, 1, 3)
        s = jnp.einsum('bhtd,bhsd->bhts', q, k) / (float(dk) ** 0.5)
        a = jax.nn.softmax(s, axis=-1)
        ctx = jnp.einsum('bhts,bhsd->bhtd', a, v).transpose(0, 2, 1, 3).reshape(B, T, D)
        x = x + ctx @ p['wo'] + p['bo']
        # Convolution module
        h = ln(x, p['c_g'], p['c_b'])
        y = h @ p['pw1_w'] + p['pw1_b']
        h = y[..., :D] * jax.nn.sigmoid(y[..., D:])
        hp = jnp.pad(h, ((0, 0), (P, P), (0, 0)))
        acc = jnp.zeros_like(h)
        for kk in range(K):
            acc = acc + hp[:, kk:kk + T, :] * p['dw_w'][kk]
        h = acc + p['dw_b']
        h = (h - p['bn_m']) / jnp.sqrt(p['bn_v'] + BN_EPS) * p['bn_g'] + p['bn_b']
        h = swish(h)
        h = h @ p['pw2_w'] + p['pw2_b']
        x = x + h
        # FFN2
        y = ln(x, p['f2_g'], p['f2_b'])
        y = swish(y @ p['f2_w1'] + p['f2_b1']) @ p['f2_w2'] + p['f2_b2']
        x = x + 0.5 * y
        # block LayerNorm
        x = ln(x, p['ln_g'], p['ln_b'])
    return jnp.maximum(x, 0.0)                                   # output ReLU


if __name__ == "__main__":
    B, T = 2, 16
    D, FF, H, K, L = 32, 64, 2, 7, 2        # in_size, ffn_hidden, num_head, kernel_size, num_layer

    key = jax.random.PRNGKey(0)
    keys = jax.random.split(key, L + 1)
    x = jax.random.normal(keys[0], (B, T, D), dtype=jnp.float32)
    layers = [init_layer_params(keys[i + 1], D, FF, H, K) for i in range(L)]
    packed = pack_params(layers, D, FF, H, K)

    out = jax.block_until_ready(conformer_encoder(x, packed))
    ref = jax.block_until_ready(reference_encoder(x, layers, H, K))

    max_diff = float(jnp.max(jnp.abs(out - ref)))
    assert out.shape == (B, T, D)
    assert max_diff < 5e-2, f"mismatch vs reference: {max_diff}"
    print("KERNEL_OK")
</pallas_src>

<mosaic_0001>
module attributes {stable_mosaic.version = 11 : i64} {
  func.func @kernel(%arg0: memref<32x32xf32, #tpu.memory_space<vmem>>, %arg1: memref<2x19x32xf32, #tpu.memory_space<vmem>>, %arg2: memref<2x2x64xf32, #tpu.memory_space<vmem>>, %arg3: memref<4x32x64xf32, #tpu.memory_space<vmem>>, %arg4: memref<4x64x32xf32, #tpu.memory_space<vmem>>, %arg5: memref<12x32x16xf32, #tpu.memory_space<vmem>>, %arg6: memref<6x2x16xf32, #tpu.memory_space<vmem>>, %arg7: memref<4x16x32xf32, #tpu.memory_space<vmem>>, %arg8: memref<6x32x32xf32, #tpu.memory_space<vmem>>, %arg9: memref<2x7x32xf32, #tpu.memory_space<vmem>>, %arg10: memref<32x32xf32, #tpu.memory_space<vmem>>, %arg11: memref<2x22x32xf32, #tpu.memory_space<vmem>>) attributes {dimension_semantics = [], scalar_prefetch = 0 : i64, scratch_operands = 1 : i64, tpu.core_type = #tpu.core_type<tc>} {
    %c0 = arith.constant 0 : index
    %c0_0 = arith.constant 0 : index
    %0 = vector.load %arg0[%c0, %c0_0] : memref<32x32xf32, #tpu.memory_space<vmem>>, vector<32x32xf32>
    %cst = arith.constant 0.000000e+00 : f32
    %1 = vector.broadcast %cst : f32 to vector<2x22x32xf32>
    %c0_1 = arith.constant 0 : index
    %c0_2 = arith.constant 0 : index
    %c0_3 = arith.constant 0 : index
    %2 = vector.load %arg11[%c0_1, %c0_2, %c0_3] : memref<2x22x32xf32, #tpu.memory_space<vmem>>, vector<2x22x32xf32>
    tpu.vector_store %arg11[%c0_1, %c0_2, %c0_3], %1 {strides = array<i32>} : memref<2x22x32xf32, #tpu.memory_space<vmem>>, vector<2x22x32xf32>,
    %c0_4 = arith.constant 0 : index
    %c0_5 = arith.constant 0 : index
    %c0_6 = arith.constant 0 : index
    %3 = vector.load %arg1[%c0_4, %c0_5, %c0_6] : memref<2x19x32xf32, #tpu.memory_space<vmem>>, vector<1x19x32xf32>
    %4 = vector.shape_cast %3 : vector<1x19x32xf32> to vector<19x32xf32>
    %c0_7 = arith.constant 0 : index
    %c0_8 = arith.constant 0 : index
    %c0_9 = arith.constant 0 : index
    %5 = vector.load %arg2[%c0_7, %c0_8, %c0_9] : memref<2x2x64xf32, #tpu.memory_space<vmem>>, vector<1x2x64xf32>
    %6 = vector.shape_cast %5 : vector<1x2x64xf32> to vector<2x64xf32>
    %c0_10 = arith.constant 0 : index
    %c0_11 = arith.constant 0 : index
    %c0_12 = arith.constant 0 : index
    %7 = vector.load %arg9[%c0_10, %c0_11, %c0_12] : memref<2x7x32xf32, #tpu.memory_space<vmem>>, vector<1x7x32xf32>
    %8 = vector.shape_cast %7 : vector<1x7x32xf32> to vector<7x32xf32>
    %9 = vector.extract_strided_slice %4 {offsets = [0, 0], sizes = [1, 32], strides = [1, 1]} : vector<19x32xf32> to vector<1x32xf32>
    %10 = vector.extract_strided_slice %4 {offsets = [1, 0], sizes = [1, 32], strides = [1, 1]} : vector<19x32xf32> to vector<1x32xf32>
    %cst_13 = arith.constant dense<0.000000e+00> : vector<32xf32>
    %11 = vector.multi_reduction <add>, %0, %cst_13 [1] : vector<32x32xf32> to vector<32xf32>
    %12 = vector.shape_cast %11 : vector<32xf32> to vector<32x1xf32>
    %cst_14 = arith.constant 3.200000e+01 : f32
    %13 = vector.broadcast %cst_14 : f32 to vector<32x1xf32>
    %14 = arith.divf %12, %13 : vector<32x1xf32>
    %15 = vector.broadcast %14 : vector<32x1xf32> to vector<32x32xf32>
    %16 = arith.subf %0, %15 : vector<32x32xf32>
    %17 = arith.mulf %16, %16 : vector<32x32xf32>
    %cst_15 = arith.constant dense<0.000000e+00> : vector<32xf32>
    %18 = vector.multi_reduction <add>, %17, %cst_15 [1] : vector<32x32xf32> to vector<32xf32>
    %19 = vector.shape_cast %18 : vector<32xf32> to vector<32x1xf32>
    %cst_16 = arith.constant 3.200000e+01 : f32
    %20 = vector.broadcast %cst_16 : f32 to vector<32x1xf32>
    %21 = arith.divf %19, %20 : vector<32x1xf32>
    %22 = vector.broadcast %14 : vector<32x1xf32> to vector<32x32xf32>
    %23 = arith.subf %0, %22 : vector<32x32xf32>
    %cst_17 = arith.constant 9.99999974E-6 : f32
    %24 = vector.broadcast %cst_17 : f32 to vector<32x1xf32>
    %25 = arith.addf %21, %24 : vector<32x1xf32>
    %26 = math.rsqrt %25 : vector<32x1xf32>
    %27 = vector.broadcast %26 : vector<32x1xf32> to vector<32x32xf32>
    %28 = arith.mulf %23, %27 : vector<32x32xf32>
    %29 = vector.broadcast %9 : vector<1x32xf32> to vector<32x32xf32>
    %30 = arith.mulf %28, %29 : vector<32x32xf32>
    %31 = vector.broadcast %10 : vector<1x32xf32> to vector<32x32xf32>
    %32 = arith.addf %30, %31 : vector<32x32xf32>
    %c0_18 = arith.constant 0 : index
    %c0_19 = arith.constant 0 : index
    %c0_20 = arith.constant 0 : index
    %33 = vector.load %arg3[%c0_18, %c0_19, %c0_20] : memref<4x32x64xf32, #tpu.memory_space<vmem>>, vector<1x32x64xf32>
    %34 = vector.shape_cast %33 : vector<1x32x64xf32> to vector<32x64xf32>
    %cst_21 = arith.constant dense<0.000000e+00> : vector<32x64xf32>
    %35 = tpu.matmul %32, %34, %cst_21 {dimension_numbers = #tpu.dot_dimension_numbers<[1], [0], [0], [1], [0, 0, 1, 1], [], []>} : vector<32x32xf32>, vector<32x64xf32>, vector<32x64xf32> -> vector<32x64xf32>
    %36 = vector.extract_strided_slice %6 {offsets = [0, 0], sizes = [1, 64], strides = [1, 1]} : vector<2x64xf32> to vector<1x64xf32>
    %37 = vector.broadcast %36 : vector<1x64xf32> to vector<32x64xf32>
    %38 = arith.addf %35, %37 : vector<32x64xf32>
    %39 = arith.negf %38 : vector<32x64xf32>
    %40 = math.exp %39 : vector<32x64xf32>
    %cst_22 = arith.constant 1.000000e+00 : f32
    %41 = vector.broadcast %cst_22 : f32 to vector<32x64xf32>
    %42 = arith.addf %41, %40 : vector<32x64xf32>
    %43 = arith.divf %41, %42 : vector<32x64xf32>
    %44 = arith.mulf %38, %43 : vector<32x64xf32>
    %c0_23 = arith.constant 0 : index
    %c0_24 = arith.constant 0 : index
    %c0_25 = arith.constant 0 : index
    %45 = vector.load %arg4[%c0_23, %c0_24, %c0_25] : memref<4x64x32xf32, #tpu.memory_space<vmem>>, vector<1x64x32xf32>
    %46 = vector.shape_cast %45 : vector<1x64x32xf32> to vector<64x32xf32>
    %cst_26 = arith.constant dense<0.000000e+00> : vector<32x32xf32>
    %47 = tpu.matmul %44, %46, %cst_26 {dimension_numbers = #tpu.dot_dimension_numbers<[1], [0], [0], [1], [0, 0, 1, 1], [], []>} : vector<32x64xf32>, vector<64x32xf32>, vector<32x32xf32> -> vector<32x32xf32>
    %48 = vector.extract_strided_slice %4 {offsets = [2, 0], sizes = [1, 32], strides = [1, 1]} : vector<19x32xf32> to vector<1x32xf32>
    %49 = vector.broadcast %48 : vector<1x32xf32> to vector<32x32xf32>
    %50 = arith.addf %47, %49 : vector<32x32xf32>
    %cst_27 = arith.constant 5.000000e-01 : f32
    %51 = vector.broadcast %cst_27 : f32 to vector<32x32xf32>
    %52 = arith.mulf %51, %50 : vector<32x32xf32>
    %53 = arith.addf %0, %52 : vector<32x32xf32>
    %54 = vector.extract_strided_slice %4 {offsets = [3, 0], sizes = [1, 32], strides = [1, 1]} : vector<19x32xf32> to vector<1x32xf32>
    %55 = vector.extract_strided_slice %4 {offsets = [4, 0], sizes = [1, 32], strides = [1, 1]} : vector<19x32xf32> to vector<1x32xf32>
    %cst_28 = arith.constant dense<0.000000e+00> : vector<32xf32>
    %56 = vector.multi_reduction <add>, %53, %cst_28 [1] : vector<32x32xf32> to vector<32xf32>
    %57 = vector.shape_cast %56 : vector<32xf32> to vector<32x1xf32>
    %cst_29 = arith.constant 3.200000e+01 : f32
    %58 = vector.broadcast %cst_29 : f32 to vector<32x1xf32>
    %59 = arith.divf %57, %58 : vector<32x1xf32>
    %60 = vector.broadcast %59 : vector<32x1xf32> to vector<32x32xf32>
    %61 = arith.subf %53, %60 : vector<32x32xf32>
    %62 = arith.mulf %61, %61 : vector<32x32xf32>
    %cst_30 = arith.constant dense<0.000000e+00> : vector<32xf32>
    %63 = vector.multi_reduction <add>, %62, %cst_30 [1] : vector<32x32xf32> to vector<32xf32>
    %64 = vector.shape_cast %63 : vector<32xf32> to vector<32x1xf32>
    %cst_31 = arith.constant 3.200000e+01 : f32
    %65 = vector.broadcast %cst_31 : f32 to vector<32x1xf32>
    %66 = arith.divf %64, %65 : vector<32x1xf32>
    %67 = vector.broadcast %59 : vector<32x1xf32> to vector<32x32xf32>
    %68 = arith.subf %53, %67 : vector<32x32xf32>
    %cst_32 = arith.constant 9.99999974E-6 : f32
    %69 = vector.broadcast %cst_32 : f32 to vector<32x1xf32>
    %70 = arith.addf %66, %69 : vector<32x1xf32>
    %71 = math.rsqrt %70 : vector<32x1xf32>
    %72 = vector.broadcast %71 : vector<32x1xf32> to vector<32x32xf32>
    %73 = arith.mulf %68, %72 : vector<32x32xf32>
    %74 = vector.broadcast %54 : vector<1x32xf32> to vector<32x32xf32>
    %75 = arith.mulf %73, %74 : vector<32x32xf32>
    %76 = vector.broadcast %55 : vector<1x32xf32> to vector<32x32xf32>
    %77 = arith.addf %75, %76 : vector<32x32xf32>
    %cst_33 = arith.constant 0.000000e+00 : f32
    %78 = vector.broadcast %cst_33 : f32 to vector<32x32xf32>
    %c0_34 = arith.constant 0 : index
    %c0_35 = arith.constant 0 : index
    %c0_36 = arith.constant 0 : index
    %79 = vector.load %arg5[%c0_34, %c0_35, %c0_36] : memref<12x32x16xf32, #tpu.memory_space<vmem>>, vector<1x32x16xf32>
    %80 = vector.shape_cast %79 : vector<1x32x16xf32> to vector<32x16xf32>
    %c0_37 = arith.constant 0 : index
    %c0_38 = arith.constant 0 : index
    %c0_39 = arith.constant 0 : index
    %81 = vector.load %arg6[%c0_37, %c0_38, %c0_39] : memref<6x2x16xf32, #tpu.memory_space<vmem>>, vector<1x2x16xf32>
    %82 = vector.shape_cast %81 : vector<1x2x16xf32> to vector<2x16xf32>
    %83 = vector.extract_strided_slice %82 {offsets = [0, 0], sizes = [1, 16], strides = [1, 1]} : vector<2x16xf32> to vector<1x16xf32>
    %cst_40 = arith.constant dense<0.000000e+00> : vector<32x16xf32>
    %84 = tpu.matmul %77, %80, %cst_40 {dimension_numbers = #tpu.dot_dimension_numbers<[1], [0], [0], [1], [0, 0, 1, 1], [], []>} : vector<32x32xf32>, vector<32x16xf32>, vector<32x16xf32> -> vector<32x16xf32>
    %85 = vector.broadcast %83 : vector<1x16xf32> to vector<32x16xf32>
    %86 = arith.addf %84, %85 : vector<32x16xf32>
    %87 = vector.shape_cast %86 : vector<32x16xf32> to vector<2x16x16xf32>
    %c2 = arith.constant 2 : index
    %c0_41 = arith.constant 0 : index
    %c0_42 = arith.constant 0 : index
    %88 = vector.load %arg5[%c2, %c0_41, %c0_42] : memref<12x32x16xf32, #tpu.memory_space<vmem>>, vector<1x32x16xf32>
    %89 = vector.shape_cast %88 : vector<1x32x16xf32> to vector<32x16xf32>
    %c1 = arith.constant 1 : index
    %c0_43 = arith.constant 0 : index
    %c0_44 = arith.constant 0 : index
    %90 = vector.load %arg6[%c1, %c0_43, %c0_44] : memref<6x2x16xf32, #tpu.memory_space<vmem>>, vector<1x2x16xf32>
    %91 = vector.shape_cast %90 : vector<1x2x16xf32> to vector<2x16xf32>
    %92 = vector.extract_strided_slice %91 {offsets = [0, 0], sizes = [1, 16], strides = [1, 1]} : vector<2x16xf32> to vector<1x16xf32>
    %cst_45 = arith.constant dense<0.000000e+00> : vector<32x16xf32>
    %93 = tpu.matmul %77, %89, %cst_45 {dimension_numbers = #tpu.dot_dimension_numbers<[1], [0], [0], [1], [0, 0, 1, 1], [], []>} : vector<32x32xf32>, vector<32x16xf32>, vector<32x16xf32> -> vector<32x16xf32>
    %94 = vector.broadcast %92 : vector<1x16xf32> to vector<32x16xf32>
    %95 = arith.addf %93, %94 : vector<32x16xf32>
    %96 = vector.shape_cast %95 : vector<32x16xf32> to vector<2x16x16xf32>
    %c4 = arith.constant 4 : index
    %c0_46 = arith.constant 0 : index
    %c0_47 = arith.constant 0 : index
    %97 = vector.load %arg5[%c4, %c0_46, %c0_47] : memref<12x32x16xf32, #tpu.memory_space<vmem>>, vector<1x32x16xf32>
    %98 = vector.shape_cast %97 : vector<1x32x16xf32> to vector<32x16xf32>
    %c2_48 = arith.constant 2 : index
    %c0_49 = arith.constant 0 : index
    %c0_50 = arith.constant 0 : index
    %99 = vector.load %arg6[%c2_48, %c0_49, %c0_50] : memref<6x2x16xf32, #tpu.memory_space<vmem>>, vector<1x2x16xf32>
    %100 = vector.shape_cast %99 : vector<1x2x16xf32> to vector<2x16xf32>
    %101 = vector.extract_strided_slice %100 {offsets = [0, 0], sizes = [1, 16], strides = [1, 1]} : vector<2x16xf32> to vector<1x16xf32>
    %cst_51 = arith.constant dense<0.000000e+00> : vector<32x16xf32>
    %102 = tpu.matmul %77, %98, %cst_51 {dimension_numbers = #tpu.dot_dimension_numbers<[1], [0], [0], [1], [0, 0, 1, 1], [], []>} : vector<32x32xf32>, vector<32x16xf32>, vector<32x16xf32> -> vector<32x16xf32>
    %103 = vector.broadcast %101 : vector<1x16xf32> to vector<32x16xf32>
    %104 = arith.addf %102, %103 : vector<32x16xf32>
    %105 = vector.shape_cast %104 : vector<32x16xf32> to vector<2x16x16xf32>
    "tpu.trace_start"() <{level = 10 : i32, message = "btd,bsd->bts"}> : () -> ()
    %cst_52 = arith.constant dense<0.000000e+00> : vector<2x16x16xf32>
    %106 = tpu.matmul %87, %96, %cst_52 {dimension_numbers = #tpu.dot_dimension_numbers<[2], [2], [1], [1], [0, 0, 0, 1, 1, 1], [0], [0]>} : vector<2x16x16xf32>, vector<2x16x16xf32>, vector<2x16x16xf32> -> vector<2x16x16xf32>
    "tpu.trace_stop"() : () -> ()
    %cst_53 = arith.constant 2.500000e-01 : f32
    %107 = vector.broadcast %cst_53 : f32 to vector<2x16x16xf32>
    %108 = arith.mulf %106, %107 : vector<2x16x16xf32>
    %cst_54 = arith.constant dense<0xFF800000> : vector<2x16xf32>
    %109 = vector.multi_reduction <maximumf>, %108, %cst_54 [2] : vector<2x16x16xf32> to vector<2x16xf32>
    %110 = vector.shape_cast %109 : vector<2x16xf32> to vector<2x16x1xf32>
    %111 = vector.broadcast %110 : vector<2x16x1xf32> to vector<2x16x16xf32>
    %112 = arith.subf %108, %111 : vector<2x16x16xf32>
    %113 = math.exp %112 : vector<2x16x16xf32>
    %cst_55 = arith.constant dense<0.000000e+00> : vector<2x16xf32>
    %114 = vector.multi_reduction <add>, %113, %cst_55 [2] : vector<2x16x16xf32> to vector<2x16xf32>
    %115 = vector.shape_cast %114 : vector<2x16xf32> to vector<2x16x1xf32>
    %116 = tpu.reciprocal %115 {approx = true} : vector<2x16x1xf32> -> vector<2x16x1xf32>
    %117 = vector.broadcast %116 : vector<2x16x1xf32> to vector<2x16x16xf32>
    %118 = arith.mulf %113, %117 : vector<2x16x16xf32>
    "tpu.trace_start"() <{level = 10 : i32, message = "bts,bsd->btd"}> : () -> ()
    %cst_56 = arith.constant dense<0.000000e+00> : vector<2x16x16xf32>
    %119 = tpu.matmul %118, %105, %cst_56 {dimension_numbers = #tpu.dot_dimension_numbers<[2], [1], [1], [2], [0, 0, 0, 1, 1, 2], [0], [0]>} : vector<2x16x16xf32>, vector<2x16x16xf32>, vector<2x16x16xf32> -> vector<2x16x16xf32>
    "tpu.trace_stop"() : () -> ()
    %120 = vector.shape_cast %119 : vector<2x16x16xf32> to vector<32x16xf32>
    %c0_57 = arith.constant 0 : index
    %c0_58 = arith.constant 0 : index
    %c0_59 = arith.constant 0 : index
    %121 = vector.load %arg7[%c0_57, %c0_58, %c0_59] : memref<4x16x32xf32, #tpu.memory_space<vmem>>, vector<1x16x32xf32>
    %122 = vector.shape_cast %121 : vector<1x16x32xf32> to vector<16x32xf32>
    %cst_60 = arith.constant dense<0.000000e+00> : vector<32x32xf32>
    %123 = tpu.matmul %120, %122, %cst_60 {dimension_numbers = #tpu.dot_dimension_numbers<[1], [0], [0], [1], [0, 0, 1, 1], [], []>} : vector<32x16xf32>, vector<16x32xf32>, vector<32x32xf32> -> vector<32x32xf32>
    %124 = arith.addf %78, %123 : vector<32x32xf32>
    %c1_61 = arith.constant 1 : index
    %c0_62 = arith.constant 0 : index
    %c0_63 = arith.constant 0 : index
    %125 = vector.load %arg5[%c1_61, %c0_62, %c0_63] : memref<12x32x16xf32, #tpu.memory_space<vmem>>, vector<1x32x16xf32>
    %126 = vector.shape_cast %125 : vector<1x32x16xf32> to vector<32x16xf32>
    %c0_64 = arith.constant 0 : index
    %c0_65 = arith.constant 0 : index
    %c0_66 = arith.constant 0 : index
    %127 = vector.load %arg6[%c0_64, %c0_65, %c0_66] : memref<6x2x16xf32, #tpu.memory_space<vmem>>, vector<1x2x16xf32>
    %128 = vector.shape_cast %127 : vector<1x2x16xf32> to vector<2x16xf32>
    %129 = vector.extract_strided_slice %128 {offsets = [1, 0], sizes = [1, 16], strides = [1, 1]} : vector<2x16xf32> to vector<1x16xf32>
    %cst_67 = arith.constant dense<0.000000e+00> : vector<32x16xf32>
    %130 = tpu.matmul %77, %126, %cst_67 {dimension_numbers = #tpu.dot_dimension_numbers<[1], [0], [0], [1], [0, 0, 1, 1], [], []>} : vector<32x32xf32>, vector<32x16xf32>, vector<32x16xf32> -> vector<32x16xf32>
    %131 = vector.broadcast %129 : vector<1x16xf32> to vector<32x16xf32>
    %132 = arith.addf %130, %131 : vector<32x16xf32>
    %133 = vector.shape_cast %132 : vector<32x16xf32> to vector<2x16x16xf32>
    %c3 = arith.constant 3 : index
    %c0_68 = arith.constant 0 : index
    %c0_69 = arith.constant 0 : index
    %134 = vector.load %arg5[%c3, %c0_68, %c0_69] : memref<12x32x16xf32, #tpu.memory_space<vmem>>, vector<1x32x16xf32>
    %135 = vector.shape_cast %134 : vector<1x32x16xf32> to vector<32x16xf32>
    %c1_70 = arith.constant 1 : index
    %c0_71 = arith.constant 0 : index
    %c0_72 = arith.constant 0 : index
    %136 = vector.load %arg6[%c1_70, %c0_71, %c0_72] : memref<6x2x16xf32, #tpu.memory_space<vmem>>, vector<1x2x16xf32>
    %137 = vector.shape_cast %136 : vector<1x2x16xf32> to vector<2x16xf32>
    %138 = vector.extract_strided_slice %137 {offsets = [1, 0], sizes = [1, 16], strides = [1, 1]} : vector<2x16xf32> to vector<1x16xf32>
    %cst_73 = arith.constant dense<0.000000e+00> : vector<32x16xf32>
    %139 = tpu.matmul %77, %135, %cst_73 {dimension_numbers = #tpu.dot_dimension_numbers<[1], [0], [0], [1], [0, 0, 1, 1], [], []>} : vector<32x32xf32>, vector<32x16xf32>, vector<32x16xf32> -> vector<32x16xf32>
    %140 = vector.broadcast %138 : vector<1x16xf32> to vector<32x16xf32>
    %141 = arith.addf %139, %140 : vector<32x16xf32>
    %142 = vector.shape_cast %141 : vector<32x16xf32> to vector<2x16x16xf32>
    %c5 = arith.constant 5 : index
    %c0_74 = arith.constant 0 : index
    %c0_75 = arith.constant 0 : index
    %143 = vector.load %arg5[%c5, %c0_74, %c0_75] : memref<12x32x16xf32, #tpu.memory_space<vmem>>, vector<1x32x16xf32>
    %144 = vector.shape_cast %143 : vector<1x32x16xf32> to vector<32x16xf32>
    %c2_76 = arith.constant 2 : index
    %c0_77 = arith.constant 0 : index
    %c0_78 = arith.constant 0 : index
    %145 = vector.load %arg6[%c2_76, %c0_77, %c0_78] : memref<6x2x16xf32, #tpu.memory_space<vmem>>, vector<1x2x16xf32>
    %146 = vector.shape_cast %145 : vector<1x2x16xf32> to vector<2x16xf32>
    %147 = vector.extract_strided_slice %146 {offsets = [1, 0], sizes = [1, 16], strides = [1, 1]} : vector<2x16xf32> to vector<1x16xf32>
    %cst_79 = arith.constant dense<0.000000e+00> : vector<32x16xf32>
    %148 = tpu.matmul %77, %144, %cst_79 {dimension_numbers = #tpu.dot_dimension_numbers<[1], [0], [0], [1], [0, 0, 1, 1], [], []>} : vector<32x32xf32>, vector<32x16xf32>, vector<32x16xf32> -> vector<32x16xf32>
    %149 = vector.broadcast %147 : vector<1x16xf32> to vector<32x16xf32>
    %150 = arith.addf %148, %149 : vector<32x16xf32>
    %151 = vector.shape_cast %150 : vector<32x16xf32> to vector<2x16x16xf32>
    "tpu.trace_start"() <{level = 10 : i32, message = "btd,bsd->bts"}> : () -> ()
    %cst_80 = arith.constant dense<0.000000e+00> : vector<2x16x16xf32>
    %152 = tpu.matmul %133, %142, %cst_80 {dimension_numbers = #tpu.dot_dimension_numbers<[2], [2], [1], [1], [0, 0, 0, 1, 1, 1], [0], [0]>} : vector<2x16x16xf32>, vector<2x16x16xf32>, vector<2x16x16xf32> -> vector<2x16x16xf32>
    "tpu.trace_stop"() : () -> ()
    %cst_81 = arith.constant 2.500000e-01 : f32
    %153 = vector.broadcast %cst_81 : f32 to vector<2x16x16xf32>
    %154 = arith.mulf %152, %153 : vector<2x16x16xf32>
    %cst_82 = arith.constant dense<0xFF800000> : vector<2x16xf32>
    %155 = vector.multi_reduction <maximumf>, %154, %cst_82 [2] : vector<2x16x16xf32> to vector<2x16xf32>
    %156 = vector.shape_cast %155 : vector<2x16xf32> to vector<2x16x1xf32>
    %157 = vector.broadcast %156 : vector<2x16x1xf32> to vector<2x16x16xf32>
    %158 = arith.subf %154, %157 : vector<2x16x16xf32>
    %159 = math.exp %158 : vector<2x16x16xf32>
    %cst_83 = arith.constant dense<0.000000e+00> : vector<2x16xf32>
    %160 = vector.multi_reduction <add>, %159, %cst_83 [2] : vector<2x16x16xf32> to vector<2x16xf32>
    %161 = vector.shape_cast %160 : vector<2x16xf32> to vector<2x16x1xf32>
    %162 = tpu.reciprocal %161 {approx = true} : vector<2x16x1xf32> -> vector<2x16x1xf32>
    %163 = vector.broadcast %162 : vector<2x16x1xf32> to vector<2x16x16xf32>
    %164 = arith.mulf %159, %163 : vector<2x16x16xf32>
    "tpu.trace_start"() <{level = 10 : i32, message = "bts,bsd->btd"}> : () -> ()
    %cst_84 = arith.constant dense<0.000000e+00> : vector<2x16x16xf32>
    %165 = tpu.matmul %164, %151, %cst_84 {dimension_numbers = #tpu.dot_dimension_numbers<[2], [1], [1], [2], [0, 0, 0, 1, 1, 2], [0], [0]>} : vector<2x16x16xf32>, vector<2x16x16xf32>, vector<2x16x16xf32> -> vector<2x16x16xf32>
    "tpu.trace_stop"() : () -> ()
    %166 = vector.shape_cast %165 : vector<2x16x16xf32> to vector<32x16xf32>
    %c1_85 = arith.constant 1 : index
    %c0_86 = arith.constant 0 : index
    %c0_87 = arith.constant 0 : index
    %167 = vector.load %arg7[%c1_85, %c0_86, %c0_87] : memref<4x16x32xf32, #tpu.memory_space<vmem>>, vector<1x16x32xf32>
    %168 = vector.shape_cast %167 : vector<1x16x32xf32> to vector<16x32xf32>
    %cst_88 = arith.constant dense<0.000000e+00> : vector<32x32xf32>
    %169 = tpu.matmul %166, %168, %cst_88 {dimension_numbers = #tpu.dot_dimension_numbers<[1], [0], [0], [1], [0, 0, 1, 1], [], []>} : vector<32x16xf32>, vector<16x32xf32>, vector<32x32xf32> -> vector<32x32xf32>
    %170 = arith.addf %124, %169 : vector<32x32xf32>
    %171 = arith.addf %53, %170 : vector<32x32xf32>
    %172 = vector.extract_strided_slice %4 {offsets = [5, 0], sizes = [1, 32], strides = [1, 1]} : vector<19x32xf32> to vector<1x32xf32>
    %173 = vector.broadcast %172 : vector<1x32xf32> to vector<32x32xf32>
    %174 = arith.addf %171, %173 : vector<32x32xf32>
    %175 = vector.extract_strided_slice %4 {offsets = [6, 0], sizes = [1, 32], strides = [1, 1]} : vector<19x32xf32> to vector<1x32xf32>
    %176 = vector.extract_strided_slice %4 {offsets = [7, 0], sizes = [1, 32], strides = [1, 1]} : vector<19x32xf32> to vector<1x32xf32>
    %cst_89 = arith.constant dense<0.000000e+00> : vector<32xf32>
    %177 = vector.multi_reduction <add>, %174, %cst_89 [1] : vector<32x32xf32> to vector<32xf32>
    %178 = vector.shape_cast %177 : vector<32xf32> to vector<32x1xf32>
    %cst_90 = arith.constant 3.200000e+01 : f32
    %179 = vector.broadcast %cst_90 : f32 to vector<32x1xf32>
    %180 = arith.divf %178, %179 : vector<32x1xf32>
    %181 = vector.broadcast %180 : vector<32x1xf32> to vector<32x32xf32>
    %182 = arith.subf %174, %181 : vector<32x32xf32>
    %183 = arith.mulf %182, %182 : vector<32x32xf32>
    %cst_91 = arith.constant dense<0.000000e+00> : vector<32xf32>
    %184 = vector.multi_reduction <add>, %183, %cst_91 [1] : vector<32x32xf32> to vector<32xf32>
    %185 = vector.shape_cast %184 : vector<32xf32> to vector<32x1xf32>
    %cst_92 = arith.constant 3.200000e+01 : f32
    %186 = vector.broadcast %cst_92 : f32 to vector<32x1xf32>
    %187 = arith.divf %185, %186 : vector<32x1xf32>
    %188 = vector.broadcast %180 : vector<32x1xf32> to vector<32x32xf32>
    %189 = arith.subf %174, %188 : vector<32x32xf32>
    %cst_93 = arith.constant 9.99999974E-6 : f32
    %190 = vector.broadcast %cst_93 : f32 to vector<32x1xf32>
    %191 = arith.addf %187, %190 : vector<32x1xf32>
    %192 = math.rsqrt %191 : vector<32x1xf32>
    %193 = vector.broadcast %192 : vector<32x1xf32> to vector<32x32xf32>
    %194 = arith.mulf %189, %193 : vector<32x32xf32>
    %195 = vector.broadcast %175 : vector<1x32xf32> to vector<32x32xf32>
    %196 = arith.mulf %194, %195 : vector<32x32xf32>
    %197 = vector.broadcast %176 : vector<1x32xf32> to vector<32x32xf32>
    %198 = arith.addf %196, %197 : vector<32x32xf32>
    %c0_94 = arith.constant 0 : index
    %c0_95 = arith.constant 0 : index
    %c0_96 = arith.constant 0 : index
    %199 = vector.load %arg8[%c0_94, %c0_95, %c0_96] : memref<6x32x32xf32, #tpu.memory_space<vmem>>, vector<1x32x32xf32>
    %200 = vector.shape_cast %199 : vector<1x32x32xf32> to vector<32x32xf32>
    %cst_97 = arith.constant dense<0.000000e+00> : vector<32x32xf32>
    %201 = tpu.matmul %198, %200, %cst_97 {dimension_numbers = #tpu.dot_dimension_numbers<[1], [0], [0], [1], [0, 0, 1, 1], [], []>} : vector<32x32xf32>, vector<32x32xf32>, vector<32x32xf32> -> vector<32x32xf32>
    %202 = vector.extract_strided_slice %4 {offsets = [8, 0], sizes = [1, 32], strides = [1, 1]} : vector<19x32xf32> to vector<1x32xf32>
    %203 = vector.broadcast %202 : vector<1x32xf32> to vector<32x32xf32>
    %204 = arith.addf %201, %203 : vector<32x32xf32>
    %c1_98 = arith.constant 1 : index
    %c0_99 = arith.constant 0 : index
    %c0_100 = arith.constant 0 : index
    %205 = vector.load %arg8[%c1_98, %c0_99, %c0_100] : memref<6x32x32xf32, #tpu.memory_space<vmem>>, vector<1x32x32xf32>
    %206 = vector.shape_cast %205 : vector<1x32x32xf32> to vector<32x32xf32>
    %cst_101 = arith.constant dense<0.000000e+00> : vector<32x32xf32>
    %207 = tpu.matmul %198, %206, %cst_101 {dimension_numbers = #tpu.dot_dimension_numbers<[1], [0], [0], [1], [0, 0, 1, 1], [], []>} : vector<32x32xf32>, vector<32x32xf32>, vector<32x32xf32> -> vector<32x32xf32>
    %208 = vector.extract_strided_slice %4 {offsets = [9, 0], sizes = [1, 32], strides = [1, 1]} : vector<19x32xf32> to vector<1x32xf32>
    %209 = vector.broadcast %208 : vector<1x32xf32> to vector<32x32xf32>
    %210 = arith.addf %207, %209 : vector<32x32xf32>
    %211 = arith.negf %210 : vector<32x32xf32>
    %212 = math.exp %211 : vector<32x32xf32>
    %cst_102 = arith.constant 1.000000e+00 : f32
    %213 = vector.broadcast %cst_102 : f32 to vector<32x32xf32>
    %214 = arith.addf %213, %212 : vector<32x32xf32>
    %215 = arith.divf %213, %214 : vector<32x32xf32>
    %216 = arith.mulf %204, %215 : vector<32x32xf32>
    %217 = vector.shape_cast %216 : vector<32x32xf32> to vector<2x16x32xf32>
    %c0_103 = arith.constant 0 : index
    %c3_104 = arith.constant 3 : index
    %c0_105 = arith.constant 0 : index
    %218 = vector.load %arg11[%c0_103, %c3_104, %c0_105] : memref<2x22x32xf32, #tpu.memory_space<vmem>>, vector<2x16x32xf32>
    tpu.vector_store %arg11[%c0_103, %c3_104, %c0_105], %217 {strides = array<i32>} : memref<2x22x32xf32, #tpu.memory_space<vmem>>, vector<2x16x32xf32>,
    %cst_106 = arith.constant 0.000000e+00 : f32
    %219 = vector.broadcast %cst_106 : f32 to vector<32x32xf32>
    %c0_107 = arith.constant 0 : index
    %c0_108 = arith.constant 0 : index
    %c0_109 = arith.constant 0 : index
    %220 = vector.load %arg11[%c0_107, %c0_108, %c0_109] : memref<2x22x32xf32, #tpu.memory_space<vmem>>, vector<2x16x32xf32>
    %221 = vector.shape_cast %220 : vector<2x16x32xf32> to vector<32x32xf32>
    %222 = vector.extract_strided_slice %8 {offsets = [0, 0], sizes = [1, 32], strides = [1, 1]} : vector<7x32xf32> to vector<1x32xf32>
    %223 = vector.broadcast %222 : vector<1x32xf32> to vector<32x32xf32>
    %224 = arith.mulf %221, %223 : vector<32x32xf32>
    %225 = arith.addf %219, %224 : vector<32x32xf32>
    %c0_110 = arith.constant 0 : index
    %c1_111 = arith.constant 1 : index
    %c0_112 = arith.constant 0 : index
    %226 = vector.load %arg11[%c0_110, %c1_111, %c0_112] : memref<2x22x32xf32, #tpu.memory_space<vmem>>, vector<2x16x32xf32>
    %227 = vector.shape_cast %226 : vector<2x16x32xf32> to vector<32x32xf32>
    %228 = vector.extract_strided_slice %8 {offsets = [1, 0], sizes = [1, 32], strides = [1, 1]} : vector<7x32xf32> to vector<1x32xf32>
    %229 = vector.broadcast %228 : vector<1x32xf32> to vector<32x32xf32>
    %230 = arith.mulf %227, %229 : vector<32x32xf32>
    %231 = arith.addf %225, %230 : vector<32x32xf32>
    %c0_113 = arith.constant 0 : index
    %c2_114 = arith.constant 2 : index
    %c0_115 = arith.constant 0 : index
    %232 = vector.load %arg11[%c0_113, %c2_114, %c0_115] : memref<2x22x32xf32, #tpu.memory_space<vmem>>, vector<2x16x32xf32>
    %233 = vector.shape_cast %232 : vector<2x16x32xf32> to vector<32x32xf32>
    %234 = vector.extract_strided_slice %8 {offsets = [2, 0], sizes = [1, 32], strides = [1, 1]} : vector<7x32xf32> to vector<1x32xf32>
    %235 = vector.broadcast %234 : vector<1x32xf32> to vector<32x32xf32>
    %236 = arith.mulf %233, %235 : vector<32x32xf32>
    %237 = arith.addf %231, %236 : vector<32x32xf32>
    %c0_116 = arith.constant 0 : index
    %c3_117 = arith.constant 3 : index
    %c0_118 = arith.constant 0 : index
    %238 = vector.load %arg11[%c0_116, %c3_117, %c0_118] : memref<2x22x32xf32, #tpu.memory_space<vmem>>, vector<2x16x32xf32>
    %239 = vector.shape_cast %238 : vector<2x16x32xf32> to vector<32x32xf32>
    %240 = vector.extract_strided_slice %8 {offsets = [3, 0], sizes = [1, 32], strides = [1, 1]} : vector<7x32xf32> to vector<1x32xf32>
    %241 = vector.broadcast %240 : vector<1x32xf32> to vector<32x32xf32>
    %242 = arith.mulf %239, %241 : vector<32x32xf32>
    %243 = arith.addf %237, %242 : vector<32x32xf32>
    %c0_119 = arith.constant 0 : index
    %c4_120 = arith.constant 4 : index
    %c0_121 = arith.constant 0 : index
    %244 = vector.load %arg11[%c0_119, %c4_120, %c0_121] : memref<2x22x32xf32, #tpu.memory_space<vmem>>, vector<2x16x32xf32>
    %245 = vector.shape_cast %244 : vector<2x16x32xf32> to vector<32x32xf32>
    %246 = vector.extract_strided_slice %8 {offsets = [4, 0], sizes = [1, 32], strides = [1, 1]} : vector<7x32xf32> to vector<1x32xf32>
    %247 = vector.broadcast %246 : vector<1x32xf32> to vector<32x32xf32>
    %248 = arith.mulf %245, %247 : vector<32x32xf32>
    %249 = arith.addf %243, %248 : vector<32x32xf32>
    %c0_122 = arith.constant 0 : index
    %c5_123 = arith.constant 5 : index
    %c0_124 = arith.constant 0 : index
    %250 = vector.load %arg11[%c0_122, %c5_123, %c0_124] : memref<2x22x32xf32, #tpu.memory_space<vmem>>, vector<2x16x32xf32>
    %251 = vector.shape_cast %250 : vector<2x16x32xf32> to vector<32x32xf32>
    %252 = vector.extract_strided_slice %8 {offsets = [5, 0], sizes = [1, 32], strides = [1, 1]} : vector<7x32xf32> to vector<1x32xf32>
    %253 = vector.broadcast %252 : vector<1x32xf32> to vector<32x32xf32>
    %254 = arith.mulf %251, %253 : vector<32x32xf32>
    %255 = arith.addf %249, %254 : vector<32x32xf32>
    %c0_125 = arith.constant 0 : index
    %c6 = arith.constant 6 : index
    %c0_126 = arith.constant 0 : index
    %256 = vector.load %arg11[%c0_125, %c6, %c0_126] : memref<2x22x32xf32, #tpu.memory_space<vmem>>, vector<2x16x32xf32>
    %257 = vector.shape_cast %256 : vector<2x16x32xf32> to vector<32x32xf32>
    %258 = vector.extract_strided_slice %8 {offsets = [6, 0], sizes = [1, 32], strides = [1, 1]} : vector<7x32xf32> to vector<1x32xf32>
    %259 = vector.broadcast %258 : vector<1x32xf32> to vector<32x32xf32>
    %260 = arith.mulf %257, %259 : vector<32x32xf32>
    %261 = arith.addf %255, %260 : vector<32x32xf32>
    %262 = vector.extract_strided_slice %4 {offsets = [10, 0], sizes = [1, 32], strides = [1, 1]} : vector<19x32xf32> to vector<1x32xf32>
    %263 = vector.broadcast %262 : vector<1x32xf32> to vector<32x32xf32>
    %264 = arith.addf %261, %263 : vector<32x32xf32>
    %265 = vector.extract_strided_slice %4 {offsets = [11, 0], sizes = [1, 32], strides = [1, 1]} : vector<19x32xf32> to vector<1x32xf32>
    %266 = vector.broadcast %265 : vector<1x32xf32> to vector<32x32xf32>
    %267 = arith.mulf %264, %266 : vector<32x32xf32>
    %268 = vector.extract_strided_slice %4 {offsets = [12, 0], sizes = [1, 32], strides = [1, 1]} : vector<19x32xf32> to vector<1x32xf32>
    %269 = vector.broadcast %268 : vector<1x32xf32> to vector<32x32xf32>
    %270 = arith.addf %267, %269 : vector<32x32xf32>
    %271 = arith.negf %270 : vector<32x32xf32>
    %272 = math.exp %271 : vector<32x32xf32>
    %cst_127 = arith.constant 1.000000e+00 : f32
    %273 = vector.broadcast %cst_127 : f32 to vector<32x32xf32>
    %274 = arith.addf %273, %272 : vector<32x32xf32>
    %275 = arith.divf %273, %274 : vector<32x32xf32>
    %276 = arith.mulf %270, %275 : vector<32x32xf32>
    %c2_128 = arith.constant 2 : index
    %c0_129 = arith.constant 0 : index
    %c0_130 = arith.constant 0 : index
    %277 = vector.load %arg8[%c2_128, %c0_129, %c0_130] : memref<6x32x32xf32, #tpu.memory_space<vmem>>, vector<1x32x32xf32>
    %278 = vector.shape_cast %277 : vector<1x32x32xf32> to vector<32x32xf32>
    %cst_131 = arith.constant dense<0.000000e+00> : vector<32x32xf32>
    %279 = tpu.matmul %276, %278, %cst_131 {dimension_numbers = #tpu.dot_dimension_numbers<[1], [0], [0], [1], [0, 0, 1, 1], [], []>} : vector<32x32xf32>, vector<32x32xf32>, vector<32x32xf32> -> vector<32x32xf32>
    %280 = vector.extract_strided_slice %4 {offsets = [13, 0], sizes = [1, 32], strides = [1, 1]} : vector<19x32xf32> to vector<1x32xf32>
    %281 = vector.broadcast %280 : vector<1x32xf32> to vector<32x32xf32>
    %282 = arith.addf %279, %281 : vector<32x32xf32>
    %283 = arith.addf %174, %282 : vector<32x32xf32>
    %284 = vector.extract_strided_slice %4 {offsets = [14, 0], sizes = [1, 32], strides = [1, 1]} : vector<19x32xf32> to vector<1x32xf32>
    %285 = vector.extract_strided_slice %4 {offsets = [15, 0], sizes = [1, 32], strides = [1, 1]} : vector<19x32xf32> to vector<1x32xf32>
    %cst_132 = arith.constant dense<0.000000e+00> : vector<32xf32>
    %286 = vector.multi_reduction <add>, %283, %cst_132 [1] : vector<32x32xf32> to vector<32xf32>
    %287 = vector.shape_cast %286 : vector<32xf32> to vector<32x1xf32>
    %cst_133 = arith.constant 3.200000e+01 : f32
    %288 = vector.broadcast %cst_133 : f32 to vector<32x1xf32>
    %289 = arith.divf %287, %288 : vector<32x1xf32>
    %290 = vector.broadcast %289 : vector<32x1xf32> to vector<32x32xf32>
    %291 = arith.subf %283, %290 : vector<32x32xf32>
    %292 = arith.mulf %291, %291 : vector<32x32xf32>
    %cst_134 = arith.constant dense<0.000000e+00> : vector<32xf32>
    %293 = vector.multi_reduction <add>, %292, %cst_134 [1] : vector<32x32xf32> to vector<32xf32>
    %294 = vector.shape_cast %293 : vector<32xf32> to vector<32x1xf32>
    %cst_135 = arith.constant 3.200000e+01 : f32
    %295 = vector.broadcast %cst_135 : f32 to vector<32x1xf32>
    %296 = arith.divf %294, %295 : vector<32x1xf32>
    %297 = vector.broadcast %289 : vector<32x1xf32> to vector<32x32xf32>
    %298 = arith.subf %283, %297 : vector<32x32xf32>
    %cst_136 = arith.constant 9.99999974E-6 : f32
    %299 = vector.broadcast %cst_136 : f32 to vector<32x1xf32>
    %300 = arith.addf %296, %299 : vector<32x1xf32>
    %301 = math.rsqrt %300 : vector<32x1xf32>
    %302 = vector.broadcast %301 : vector<32x1xf32> to vector<32x32xf32>
    %303 = arith.mulf %298, %302 : vector<32x32xf32>
    %304 = vector.broadcast %284 : vector<1x32xf32> to vector<32x32xf32>
    %305 = arith.mulf %303, %304 : vector<32x32xf32>
    %306 = vector.broadcast %285 : vector<1x32xf32> to vector<32x32xf32>
    %307 = arith.addf %305, %306 : vector<32x32xf32>
    %c1_137 = arith.constant 1 : index
    %c0_138 = arith.constant 0 : index
    %c0_139 = arith.constant 0 : index
    %308 = vector.load %arg3[%c1_137, %c0_138, %c0_139] : memref<4x32x64xf32, #tpu.memory_space<vmem>>, vector<1x32x64xf32>
    %309 = vector.shape_cast %308 : vector<1x32x64xf32> to vector<32x64xf32>
    %cst_140 = arith.constant dense<0.000000e+00> : vector<32x64xf32>
    %310 = tpu.matmul %307, %309, %cst_140 {dimension_numbers = #tpu.dot_dimension_numbers<[1], [0], [0], [1], [0, 0, 1, 1], [], []>} : vector<32x32xf32>, vector<32x64xf32>, vector<32x64xf32> -> vector<32x64xf32>
    %311 = vector.extract_strided_slice %6 {offsets = [1, 0], sizes = [1, 64], strides = [1, 1]} : vector<2x64xf32> to vector<1x64xf32>
    %312 = vector.broadcast %311 : vector<1x64xf32> to vector<32x64xf32>
    %313 = arith.addf %310, %312 : vector<32x64xf32>
    %314 = arith.negf %313 : vector<32x64xf32>
    %315 = math.exp %314 : vector<32x64xf32>
    %cst_141 = arith.constant 1.000000e+00 : f32
    %316 = vector.broadcast %cst_141 : f32 to vector<32x64xf32>
    %317 = arith.addf %316, %315 : vector<32x64xf32>
    %318 = arith.divf %316, %317 : vector<32x64xf32>
    %319 = arith.mulf %313, %318 : vector<32x64xf32>
    %c1_142 = arith.constant 1 : index
    %c0_143 = arith.constant 0 : index
    %c0_144 = arith.constant 0 : index
    %320 = vector.load %arg4[%c1_142, %c0_143, %c0_144] : memref<4x64x32xf32, #tpu.memory_space<vmem>>, vector<1x64x32xf32>
    %321 = vector.shape_cast %320 : vector<1x64x32xf32> to vector<64x32xf32>
    %cst_145 = arith.constant dense<0.000000e+00> : vector<32x32xf32>
    %322 = tpu.matmul %319, %321, %cst_145 {dimension_numbers = #tpu.dot_dimension_numbers<[1], [0], [0], [1], [0, 0, 1, 1], [], []>} : vector<32x64xf32>, vector<64x32xf32>, vector<32x32xf32> -> vector<32x32xf32>
    %323 = vector.extract_strided_slice %4 {offsets = [16, 0], sizes = [1, 32], strides = [1, 1]} : vector<19x32xf32> to vector<1x32xf32>
    %324 = vector.broadcast %323 : vector<1x32xf32> to vector<32x32xf32>
    %325 = arith.addf %322, %324 : vector<32x32xf32>
    %cst_146 = arith.constant 5.000000e-01 : f32
    %326 = vector.broadcast %cst_146 : f32 to vector<32x32xf32>
    %327 = arith.mulf %326, %325 : vector<32x32xf32>
    %328 = arith.addf %283, %327 : vector<32x32xf32>
    %329 = vector.extract_strided_slice %4 {offsets = [17, 0], sizes = [1, 32], strides = [1, 1]} : vector<19x32xf32> to vector<1x32xf32>
    %330 = vector.extract_strided_slice %4 {offsets = [18, 0], sizes = [1, 32], strides = [1, 1]} : vector<19x32xf32> to vector<1x32xf32>
    %cst_147 = arith.constant dense<0.000000e+00> : vector<32xf32>
    %331 = vector.multi_reduction <add>, %328, %cst_147 [1] : vector<32x32xf32> to vector<32xf32>
    %332 = vector.shape_cast %331 : vector<32xf32> to vector<32x1xf32>
    %cst_148 = arith.constant 3.200000e+01 : f32
    %333 = vector.broadcast %cst_148 : f32 to vector<32x1xf32>
    %334 = arith.divf %332, %333 : vector<32x1xf32>
    %335 = vector.broadcast %334 : vector<32x1xf32> to vector<32x32xf32>
    %336 = arith.subf %328, %335 : vector<32x32xf32>
    %337 = arith.mulf %336, %336 : vector<32x32xf32>
    %cst_149 = arith.constant dense<0.000000e+00> : vector<32xf32>
    %338 = vector.multi_reduction <add>, %337, %cst_149 [1] : vector<32x32xf32> to vector<32xf32>
    %339 = vector.shape_cast %338 : vector<32xf32> to vector<32x1xf32>
    %cst_150 = arith.constant 3.200000e+01 : f32
    %340 = vector.broadcast %cst_150 : f32 to vector<32x1xf32>
    %341 = arith.divf %339, %340 : vector<32x1xf32>
    %342 = vector.broadcast %334 : vector<32x1xf32> to vector<32x32xf32>
    %343 = arith.subf %328, %342 : vector<32x32xf32>
    %cst_151 = arith.constant 9.99999974E-6 : f32
    %344 = vector.broadcast %cst_151 : f32 to vector<32x1xf32>
    %345 = arith.addf %341, %344 : vector<32x1xf32>
    %346 = math.rsqrt %345 : vector<32x1xf32>
    %347 = vector.broadcast %346 : vector<32x1xf32> to vector<32x32xf32>
    %348 = arith.mulf %343, %347 : vector<32x32xf32>
    %349 = vector.broadcast %329 : vector<1x32xf32> to vector<32x32xf32>
    %350 = arith.mulf %348, %349 : vector<32x32xf32>
    %351 = vector.broadcast %330 : vector<1x32xf32> to vector<32x32xf32>
    %352 = arith.addf %350, %351 : vector<32x32xf32>
    %c1_152 = arith.constant 1 : index
    %c0_153 = arith.constant 0 : index
    %c0_154 = arith.constant 0 : index
    %353 = vector.load %arg1[%c1_152, %c0_153, %c0_154] : memref<2x19x32xf32, #tpu.memory_space<vmem>>, vector<1x19x32xf32>
    %354 = vector.shape_cast %353 : vector<1x19x32xf32> to vector<19x32xf32>
    %c1_155 = arith.constant 1 : index
    %c0_156 = arith.constant 0 : index
    %c0_157 = arith.constant 0 : index
    %355 = vector.load %arg2[%c1_155, %c0_156, %c0_157] : memref<2x2x64xf32, #tpu.memory_space<vmem>>, vector<1x2x64xf32>
    %356 = vector.shape_cast %355 : vector<1x2x64xf32> to vector<2x64xf32>
    %c1_158 = arith.constant 1 : index
    %c0_159 = arith.constant 0 : index
    %c0_160 = arith.constant 0 : index
    %357 = vector.load %arg9[%c1_158, %c0_159, %c0_160] : memref<2x7x32xf32, #tpu.memory_space<vmem>>, vector<1x7x32xf32>
    %358 = vector.shape_cast %357 : vector<1x7x32xf32> to vector<7x32xf32>
    %359 = vector.extract_strided_slice %354 {offsets = [0, 0], sizes = [1, 32], strides = [1, 1]} : vector<19x32xf32> to vector<1x32xf32>
    %360 = vector.extract_strided_slice %354 {offsets = [1, 0], sizes = [1, 32], strides = [1, 1]} : vector<19x32xf32> to vector<1x32xf32>
    %cst_161 = arith.constant dense<0.000000e+00> : vector<32xf32>
    %361 = vector.multi_reduction <add>, %352, %cst_161 [1] : vector<32x32xf32> to vector<32xf32>
    %362 = vector.shape_cast %361 : vector<32xf32> to vector<32x1xf32>
    %cst_162 = arith.constant 3.200000e+01 : f32
    %363 = vector.broadcast %cst_162 : f32 to vector<32x1xf32>
    %364 = arith.divf %362, %363 : vector<32x1xf32>
    %365 = vector.broadcast %364 : vector<32x1xf32> to vector<32x32xf32>
    %366 = arith.subf %352, %365 : vector<32x32xf32>
    %367 = arith.mulf %366, %366 : vector<32x32xf32>
    %cst_163 = arith.constant dense<0.000000e+00> : vector<32xf32>
    %368 = vector.multi_reduction <add>, %367, %cst_163 [1] : vector<32x32xf32> to vector<32xf32>
    %369 = vector.shape_cast %368 : vector<32xf32> to vector<32x1xf32>
    %cst_164 = arith.constant 3.200000e+01 : f32
    %370 = vector.broadcast %cst_164 : f32 to vector<32x1xf32>
    %371 = arith.divf %369, %370 : vector<32x1xf32>
    %372 = vector.broadcast %364 : vector<32x1xf32> to vector<32x32xf32>
    %373 = arith.subf %352, %372 : vector<32x32xf32>
    %cst_165 = arith.constant 9.99999974E-6 : f32
    %374 = vector.broadcast %cst_165 : f32 to vector<32x1xf32>
    %375 = arith.addf %371, %374 : vector<32x1xf32>
    %376 = math.rsqrt %375 : vector<32x1xf32>
    %377 = vector.broadcast %376 : vector<32x1xf32> to vector<32x32xf32>
    %378 = arith.mulf %373, %377 : vector<32x32xf32>
    %379 = vector.broadcast %359 : vector<1x32xf32> to vector<32x32xf32>
    %380 = arith.mulf %378, %379 : vector<32x32xf32>
    %381 = vector.broadcast %360 : vector<1x32xf32> to vector<32x32xf32>
    %382 = arith.addf %380, %381 : vector<32x32xf32>
    %c2_166 = arith.constant 2 : index
    %c0_167 = arith.constant 0 : index
    %c0_168 = arith.constant 0 : index
    %383 = vector.load %arg3[%c2_166, %c0_167, %c0_168] : memref<4x32x64xf32, #tpu.memory_space<vmem>>, vector<1x32x64xf32>
    %384 = vector.shape_cast %383 : vector<1x32x64xf32> to vector<32x64xf32>
    %cst_169 = arith.constant dense<0.000000e+00> : vector<32x64xf32>
    %385 = tpu.matmul %382, %384, %cst_169 {dimension_numbers = #tpu.dot_dimension_numbers<[1], [0], [0], [1], [0, 0, 1, 1], [], []>} : vector<32x32xf32>, vector<32x64xf32>, vector<32x64xf32> -> vector<32x64xf32>
    %386 = vector.extract_strided_slice %356 {offsets = [0, 0], sizes = [1, 64], strides = [1, 1]} : vector<2x64xf32> to vector<1x64xf32>
    %387 = vector.broadcast %386 : vector<1x64xf32> to vector<32x64xf32>
    %388 = arith.addf %385, %387 : vector<32x64xf32>
    %389 = arith.negf %388 : vector<32x64xf32>
    %390 = math.exp %389 : vector<32x64xf32>
    %cst_170 = arith.constant 1.000000e+00 : f32
    %391 = vector.broadcast %cst_170 : f32 to vector<32x64xf32>
    %392 = arith.addf %391, %390 : vector<32x64xf32>
    %393 = arith.divf %391, %392 : vector<32x64xf32>
    %394 = arith.mulf %388, %393 : vector<32x64xf32>
    %c2_171 = arith.constant 2 : index
    %c0_172 = arith.constant 0 : index
    %c0_173 = arith.constant 0 : index
    %395 = vector.load %arg4[%c2_171, %c0_172, %c0_173] : memref<4x64x32xf32, #tpu.memory_space<vmem>>, vector<1x64x32xf32>
    %396 = vector.shape_cast %395 : vector<1x64x32xf32> to vector<64x32xf32>
    %cst_174 = arith.constant dense<0.000000e+00> : vector<32x32xf32>
    %397 = tpu.matmul %394, %396, %cst_174 {dimension_numbers = #tpu.dot_dimension_numbers<[1], [0], [0], [1], [0, 0, 1, 1], [], []>} : vector<32x64xf32>, vector<64x32xf32>, vector<32x32xf32> -> vector<32x32xf32>
    %398 = vector.extract_strided_slice %354 {offsets = [2, 0], sizes = [1, 32], strides = [1, 1]} : vector<19x32xf32> to vector<1x32xf32>
    %399 = vector.broadcast %398 : vector<1x32xf32> to vector<32x32xf32>
    %400 = arith.addf %397, %399 : vector<32x32xf32>
    %cst_175 = arith.constant 5.000000e-01 : f32
    %401 = vector.broadcast %cst_175 : f32 to vector<32x32xf32>
    %402 = arith.mulf %401, %400 : vector<32x32xf32>
    %403 = arith.addf %352, %402 : vector<32x32xf32>
    %404 = vector.extract_strided_slice %354 {offsets = [3, 0], sizes = [1, 32], strides = [1, 1]} : vector<19x32xf32> to vector<1x32xf32>
    %405 = vector.extract_strided_slice %354 {offsets = [4, 0], sizes = [1, 32], strides = [1, 1]} : vector<19x32xf32> to vector<1x32xf32>
    %cst_176 = arith.constant dense<0.000000e+00> : vector<32xf32>
    %406 = vector.multi_reduction <add>, %403, %cst_176 [1] : vector<32x32xf32> to vector<32xf32>
    %407 = vector.shape_cast %406 : vector<32xf32> to vector<32x1xf32>
    %cst_177 = arith.constant 3.200000e+01 : f32
    %408 = vector.broadcast %cst_177 : f32 to vector<32x1xf32>
    %409 = arith.divf %407, %408 : vector<32x1xf32>
    %410 = vector.broadcast %409 : vector<32x1xf32> to vector<32x32xf32>
    %411 = arith.subf %403, %410 : vector<32x32xf32>
    %412 = arith.mulf %411, %411 : vector<32x32xf32>
    %cst_178 = arith.constant dense<0.000000e+00> : vector<32xf32>
    %413 = vector.multi_reduction <add>, %412, %cst_178 [1] : vector<32x32xf32> to vector<32xf32>
    %414 = vector.shape_cast %413 : vector<32xf32> to vector<32x1xf32>
    %cst_179 = arith.constant 3.200000e+01 : f32
    %415 = vector.broadcast %cst_179 : f32 to vector<32x1xf32>
    %416 = arith.divf %414, %415 : vector<32x1xf32>
    %417 = vector.broadcast %409 : vector<32x1xf32> to vector<32x32xf32>
    %418 = arith.subf %403, %417 : vector<32x32xf32>
    %cst_180 = arith.constant 9.99999974E-6 : f32
    %419 = vector.broadcast %cst_180 : f32 to vector<32x1xf32>
    %420 = arith.addf %416, %419 : vector<32x1xf32>
    %421 = math.rsqrt %420 : vector<32x1xf32>
    %422 = vector.broadcast %421 : vector<32x1xf32> to vector<32x32xf32>
    %423 = arith.mulf %418, %422 : vector<32x32xf32>
    %424 = vector.broadcast %404 : vector<1x32xf32> to vector<32x32xf32>
    %425 = arith.mulf %423, %424 : vector<32x32xf32>
    %426 = vector.broadcast %405 : vector<1x32xf32> to vector<32x32xf32>
    %427 = arith.addf %425, %426 : vector<32x32xf32>
    %cst_181 = arith.constant 0.000000e+00 : f32
    %428 = vector.broadcast %cst_181 : f32 to vector<32x32xf32>
    %c6_182 = arith.constant 6 : index
    %c0_183 = arith.constant 0 : index
    %c0_184 = arith.constant 0 : index
    %429 = vector.load %arg5[%c6_182, %c0_183, %c0_184] : memref<12x32x16xf32, #tpu.memory_space<vmem>>, vector<1x32x16xf32>
    %430 = vector.shape_cast %429 : vector<1x32x16xf32> to vector<32x16xf32>
    %c3_185 = arith.constant 3 : index
    %c0_186 = arith.constant 0 : index
    %c0_187 = arith.constant 0 : index
    %431 = vector.load %arg6[%c3_185, %c0_186, %c0_187] : memref<6x2x16xf32, #tpu.memory_space<vmem>>, vector<1x2x16xf32>
    %432 = vector.shape_cast %431 : vector<1x2x16xf32> to vector<2x16xf32>
    %433 = vector.extract_strided_slice %432 {offsets = [0, 0], sizes = [1, 16], strides = [1, 1]} : vector<2x16xf32> to vector<1x16xf32>
    %cst_188 = arith.constant dense<0.000000e+00> : vector<32x16xf32>
    %434 = tpu.matmul %427, %430, %cst_188 {dimension_numbers = #tpu.dot_dimension_numbers<[1], [0], [0], [1], [0, 0, 1, 1], [], []>} : vector<32x32xf32>, vector<32x16xf32>, vector<32x16xf32> -> vector<32x16xf32>
    %435 = vector.broadcast %433 : vector<1x16xf32> to vector<32x16xf32>
    %436 = arith.addf %434, %435 : vector<32x16xf32>
    %437 = vector.shape_cast %436 : vector<32x16xf32> to vector<2x16x16xf32>
    %c8 = arith.constant 8 : index
    %c0_189 = arith.constant 0 : index
    %c0_190 = arith.constant 0 : index
    %438 = vector.load %arg5[%c8, %c0_189, %c0_190] : memref<12x32x16xf32, #tpu.memory_space<vmem>>, vector<1x32x16xf32>
    %439 = vector.shape_cast %438 : vector<1x32x16xf32> to vector<32x16xf32>
    %c4_191 = arith.constant 4 : index
    %c0_192 = arith.constant 0 : index
    %c0_193 = arith.constant 0 : index
    %440 = vector.load %arg6[%c4_191, %c0_192, %c0_193] : memref<6x2x16xf32, #tpu.memory_space<vmem>>, vector<1x2x16xf32>
    %441 = vector.shape_cast %440 : vector<1x2x16xf32> to vector<2x16xf32>
    %442 = vector.extract_strided_slice %441 {offsets = [0, 0], sizes = [1, 16], strides = [1, 1]} : vector<2x16xf32> to vector<1x16xf32>
    %cst_194 = arith.constant dense<0.000000e+00> : vector<32x16xf32>
    %443 = tpu.matmul %427, %439, %cst_194 {dimension_numbers = #tpu.dot_dimension_numbers<[1], [0], [0], [1], [0, 0, 1, 1], [], []>} : vector<32x32xf32>, vector<32x16xf32>, vector<32x16xf32> -> vector<32x16xf32>
    %444 = vector.broadcast %442 : vector<1x16xf32> to vector<32x16xf32>
    %445 = arith.addf %443, %444 : vector<32x16xf32>
    %446 = vector.shape_cast %445 : vector<32x16xf32> to vector<2x16x16xf32>
    %c10 = arith.constant 10 : index
    %c0_195 = arith.constant 0 : index
    %c0_196 = arith.constant 0 : index
    %447 = vector.load %arg5[%c10, %c0_195, %c0_196] : memref<12x32x16xf32, #tpu.memory_space<vmem>>, vector<1x32x16xf32>
    %448 = vector.shape_cast %447 : vector<1x32x16xf32> to vector<32x16xf32>
    %c5_197 = arith.constant 5 : index
    %c0_198 = arith.constant 0 : index
    %c0_199 = arith.constant 0 : index
    %449 = vector.load %arg6[%c5_197, %c0_198, %c0_199] : memref<6x2x16xf32, #tpu.memory_space<vmem>>, vector<1x2x16xf32>
    %450 = vector.shape_cast %449 : vector<1x2x16xf32> to vector<2x16xf32>
    %451 = vector.extract_strided_slice %450 {offsets = [0, 0], sizes = [1, 16], strides = [1, 1]} : vector<2x16xf32> to vector<1x16xf32>
    %cst_200 = arith.constant dense<0.000000e+00> : vector<32x16xf32>
    %452 = tpu.matmul %427, %448, %cst_200 {dimension_numbers = #tpu.dot_dimension_numbers<[1], [0], [0], [1], [0, 0, 1, 1], [], []>} : vector<32x32xf32>, vector<32x16xf32>, vector<32x16xf32> -> vector<32x16xf32>
    %453 = vector.broadcast %451 : vector<1x16xf32> to vector<32x16xf32>
    %454 = arith.addf %452, %453 : vector<32x16xf32>
    %455 = vector.shape_cast %454 : vector<32x16xf32> to vector<2x16x16xf32>
    "tpu.trace_start"() <{level = 10 : i32, message = "btd,bsd->bts"}> : () -> ()
    %cst_201 = arith.constant dense<0.000000e+00> : vector<2x16x16xf32>
    %456 = tpu.matmul %437, %446, %cst_201 {dimension_numbers = #tpu.dot_dimension_numbers<[2], [2], [1], [1], [0, 0, 0, 1, 1, 1], [0], [0]>} : vector<2x16x16xf32>, vector<2x16x16xf32>, vector<2x16x16xf32> -> vector<2x16x16xf32>
    "tpu.trace_stop"() : () -> ()
    %cst_202 = arith.constant 2.500000e-01 : f32
    %457 = vector.broadcast %cst_202 : f32 to vector<2x16x16xf32>
    %458 = arith.mulf %456, %457 : vector<2x16x16xf32>
    %cst_203 = arith.constant dense<0xFF800000> : vector<2x16xf32>
    %459 = vector.multi_reduction <maximumf>, %458, %cst_203 [2] : vector<2x16x16xf32> to vector<2x16xf32>
    %460 = vector.shape_cast %459 : vector<2x16xf32> to vector<2x16x1xf32>
    %461 = vector.broadcast %460 : vector<2x16x1xf32> to vector<2x16x16xf32>
    %462 = arith.subf %458, %461 : vector<2x16x16xf32>
    %463 = math.exp %462 : vector<2x16x16xf32>
    %cst_204 = arith.constant dense<0.000000e+00> : vector<2x16xf32>
    %464 = vector.multi_reduction <add>, %463, %cst_204 [2] : vector<2x16x16xf32> to vector<2x16xf32>
    %465 = vector.shape_cast %464 : vector<2x16xf32> to vector<2x16x1xf32>
    %466 = tpu.reciprocal %465 {approx = true} : vector<2x16x1xf32> -> vector<2x16x1xf32>
    %467 = vector.broadcast %466 : vector<2x16x1xf32> to vector<2x16x16xf32>
    %468 = arith.mulf %463, %467 : vector<2x16x16xf32>
    "tpu.trace_start"() <{level = 10 : i32, message = "bts,bsd->btd"}> : () -> ()
    %cst_205 = arith.constant dense<0.000000e+00> : vector<2x16x16xf32>
    %469 = tpu.matmul %468, %455, %cst_205 {dimension_numbers = #tpu.dot_dimension_numbers<[2], [1], [1], [2], [0, 0, 0, 1, 1, 2], [0], [0]>} : vector<2x16x16xf32>, vector<2x16x16xf32>, vector<2x16x16xf32> -> vector<2x16x16xf32>
    "tpu.trace_stop"() : () -> ()
    %470 = vector.shape_cast %469 : vector<2x16x16xf32> to vector<32x16xf32>
    %c2_206 = arith.constant 2 : index
    %c0_207 = arith.constant 0 : index
    %c0_208 = arith.constant 0 : index
    %471 = vector.load %arg7[%c2_206, %c0_207, %c0_208] : memref<4x16x32xf32, #tpu.memory_space<vmem>>, vector<1x16x32xf32>
    %472 = vector.shape_cast %471 : vector<1x16x32xf32> to vector<16x32xf32>
    %cst_209 = arith.constant dense<0.000000e+00> : vector<32x32xf32>
    %473 = tpu.matmul %470, %472, %cst_209 {dimension_numbers = #tpu.dot_dimension_numbers<[1], [0], [0], [1], [0, 0, 1, 1], [], []>} : vector<32x16xf32>, vector<16x32xf32>, vector<32x32xf32> -> vector<32x32xf32>
    %474 = arith.addf %428, %473 : vector<32x32xf32>
    %c7 = arith.constant 7 : index
    %c0_210 = arith.constant 0 : index
    %c0_211 = arith.constant 0 : index
    %475 = vector.load %arg5[%c7, %c0_210, %c0_211] : memref<12x32x16xf32, #tpu.memory_space<vmem>>, vector<1x32x16xf32>
    %476 = vector.shape_cast %475 : vector<1x32x16xf32> to vector<32x16xf32>
    %c3_212 = arith.constant 3 : index
    %c0_213 = arith.constant 0 : index
    %c0_214 = arith.constant 0 : index
    %477 = vector.load %arg6[%c3_212, %c0_213, %c0_214] : memref<6x2x16xf32, #tpu.memory_space<vmem>>, vector<1x2x16xf32>
    %478 = vector.shape_cast %477 : vector<1x2x16xf32> to vector<2x16xf32>
    %479 = vector.extract_strided_slice %478 {offsets = [1, 0], sizes = [1, 16], strides = [1, 1]} : vector<2x16xf32> to vector<1x16xf32>
    %cst_215 = arith.constant dense<0.000000e+00> : vector<32x16xf32>
    %480 = tpu.matmul %427, %476, %cst_215 {dimension_numbers = #tpu.dot_dimension_numbers<[1], [0], [0], [1], [0, 0, 1, 1], [], []>} : vector<32x32xf32>, vector<32x16xf32>, vector<32x16xf32> -> vector<32x16xf32>
    %481 = vector.broadcast %479 : vector<1x16xf32> to vector<32x16xf32>
    %482 = arith.addf %480, %481 : vector<32x16xf32>
    %483 = vector.shape_cast %482 : vector<32x16xf32> to vector<2x16x16xf32>
    %c9 = arith.constant 9 : index
    %c0_216 = arith.constant 0 : index
    %c0_217 = arith.constant 0 : index
    %484 = vector.load %arg5[%c9, %c0_216, %c0_217] : memref<12x32x16xf32, #tpu.memory_space<vmem>>, vector<1x32x16xf32>
    %485 = vector.shape_cast %484 : vector<1x32x16xf32> to vector<32x16xf32>
    %c4_218 = arith.constant 4 : index
    %c0_219 = arith.constant 0 : index
    %c0_220 = arith.constant 0 : index
    %486 = vector.load %arg6[%c4_218, %c0_219, %c0_220] : memref<6x2x16xf32, #tpu.memory_space<vmem>>, vector<1x2x16xf32>
    %487 = vector.shape_cast %486 : vector<1x2x16xf32> to vector<2x16xf32>
    %488 = vector.extract_strided_slice %487 {offsets = [1, 0], sizes = [1, 16], strides = [1, 1]} : vector<2x16xf32> to vector<1x16xf32>
    %cst_221 = arith.constant dense<0.000000e+00> : vector<32x16xf32>
    %489 = tpu.matmul %427, %485, %cst_221 {dimension_numbers = #tpu.dot_dimension_numbers<[1], [0], [0], [1], [0, 0, 1, 1], [], []>} : vector<32x32xf32>, vector<32x16xf32>, vector<32x16xf32> -> vector<32x16xf32>
    %490 = vector.broadcast %488 : vector<1x16xf32> to vector<32x16xf32>
    %491 = arith.addf %489, %490 : vector<32x16xf32>
    %492 = vector.shape_cast %491 : vector<32x16xf32> to vector<2x16x16xf32>
    %c11 = arith.constant 11 : index
    %c0_222 = arith.constant 0 : index
    %c0_223 = arith.constant 0 : index
    %493 = vector.load %arg5[%c11, %c0_222, %c0_223] : memref<12x32x16xf32, #tpu.memory_space<vmem>>, vector<1x32x16xf32>
    %494 = vector.shape_cast %493 : vector<1x32x16xf32> to vector<32x16xf32>
    %c5_224 = arith.constant 5 : index
    %c0_225 = arith.constant 0 : index
    %c0_226 = arith.constant 0 : index
    %495 = vector.load %arg6[%c5_224, %c0_225, %c0_226] : memref<6x2x16xf32, #tpu.memory_space<vmem>>, vector<1x2x16xf32>
    %496 = vector.shape_cast %495 : vector<1x2x16xf32> to vector<2x16xf32>
    %497 = vector.extract_strided_slice %496 {offsets = [1, 0], sizes = [1, 16], strides = [1, 1]} : vector<2x16xf32> to vector<1x16xf32>
    %cst_227 = arith.constant dense<0.000000e+00> : vector<32x16xf32>
    %498 = tpu.matmul %427, %494, %cst_227 {dimension_numbers = #tpu.dot_dimension_numbers<[1], [0], [0], [1], [0, 0, 1, 1], [], []>} : vector<32x32xf32>, vector<32x16xf32>, vector<32x16xf32> -> vector<32x16xf32>
    %499 = vector.broadcast %497 : vector<1x16xf32> to vector<32x16xf32>
    %500 = arith.addf %498, %499 : vector<32x16xf32>
    %501 = vector.shape_cast %500 : vector<32x16xf32> to vector<2x16x16xf32>
    "tpu.trace_start"() <{level = 10 : i32, message = "btd,bsd->bts"}> : () -> ()
    %cst_228 = arith.constant dense<0.000000e+00> : vector<2x16x16xf32>
    %502 = tpu.matmul %483, %492, %cst_228 {dimension_numbers = #tpu.dot_dimension_numbers<[2], [2], [1], [1], [0, 0, 0, 1, 1, 1], [0], [0]>} : vector<2x16x16xf32>, vector<2x16x16xf32>, vector<2x16x16xf32> -> vector<2x16x16xf32>
    "tpu.trace_stop"() : () -> ()
    %cst_229 = arith.constant 2.500000e-01 : f32
    %503 = vector.broadcast %cst_229 : f32 to vector<2x16x16xf32>
    %504 = arith.mulf %502, %503 : vector<2x16x16xf32>
    %cst_230 = arith.constant dense<0xFF800000> : vector<2x16xf32>
    %505 = vector.multi_reduction <maximumf>, %504, %cst_230 [2] : vector<2x16x16xf32> to vector<2x16xf32>
    %506 = vector.shape_cast %505 : vector<2x16xf32> to vector<2x16x1xf32>
    %507 = vector.broadcast %506 : vector<2x16x1xf32> to vector<2x16x16xf32>
    %508 = arith.subf %504, %507 : vector<2x16x16xf32>
    %509 = math.exp %508 : vector<2x16x16xf32>
    %cst_231 = arith.constant dense<0.000000e+00> : vector<2x16xf32>
    %510 = vector.multi_reduction <add>, %509, %cst_231 [2] : vector<2x16x16xf32> to vector<2x16xf32>
    %511 = vector.shape_cast %510 : vector<2x16xf32> to vector<2x16x1xf32>
    %512 = tpu.reciprocal %511 {approx = true} : vector<2x16x1xf32> -> vector<2x16x1xf32>
    %513 = vector.broadcast %512 : vector<2x16x1xf32> to vector<2x16x16xf32>
    %514 = arith.mulf %509, %513 : vector<2x16x16xf32>
    "tpu.trace_start"() <{level = 10 : i32, message = "bts,bsd->btd"}> : () -> ()
    %cst_232 = arith.constant dense<0.000000e+00> : vector<2x16x16xf32>
    %515 = tpu.matmul %514, %501, %cst_232 {dimension_numbers = #tpu.dot_dimension_numbers<[2], [1], [1], [2], [0, 0, 0, 1, 1, 2], [0], [0]>} : vector<2x16x16xf32>, vector<2x16x16xf32>, vector<2x16x16xf32> -> vector<2x16x16xf32>
    "tpu.trace_stop"() : () -> ()
    %516 = vector.shape_cast %515 : vector<2x16x16xf32> to vector<32x16xf32>
    %c3_233 = arith.constant 3 : index
    %c0_234 = arith.constant 0 : index
    %c0_235 = arith.constant 0 : index
    %517 = vector.load %arg7[%c3_233, %c0_234, %c0_235] : memref<4x16x32xf32, #tpu.memory_space<vmem>>, vector<1x16x32xf32>
    %518 = vector.shape_cast %517 : vector<1x16x32xf32> to vector<16x32xf32>
    %cst_236 = arith.constant dense<0.000000e+00> : vector<32x32xf32>
    %519 = tpu.matmul %516, %518, %cst_236 {dimension_numbers = #tpu.dot_dimension_numbers<[1], [0], [0], [1], [0, 0, 1, 1], [], []>} : vector<32x16xf32>, vector<16x32xf32>, vector<32x32xf32> -> vector<32x32xf32>
    %520 = arith.addf %474, %519 : vector<32x32xf32>
    %521 = arith.addf %403, %520 : vector<32x32xf32>
    %522 = vector.extract_strided_slice %354 {offsets = [5, 0], sizes = [1, 32], strides = [1, 1]} : vector<19x32xf32> to vector<1x32xf32>
    %523 = vector.broadcast %522 : vector<1x32xf32> to vector<32x32xf32>
    %524 = arith.addf %521, %523 : vector<32x32xf32>
    %525 = vector.extract_strided_slice %354 {offsets = [6, 0], sizes = [1, 32], strides = [1, 1]} : vector<19x32xf32> to vector<1x32xf32>
    %526 = vector.extract_strided_slice %354 {offsets = [7, 0], sizes = [1, 32], strides = [1, 1]} : vector<19x32xf32> to vector<1x32xf32>
    %cst_237 = arith.constant dense<0.000000e+00> : vector<32xf32>
    %527 = vector.multi_reduction <add>, %524, %cst_237 [1] : vector<32x32xf32> to vector<32xf32>
    %528 = vector.shape_cast %527 : vector<32xf32> to vector<32x1xf32>
    %cst_238 = arith.constant 3.200000e+01 : f32
    %529 = vector.broadcast %cst_238 : f32 to vector<32x1xf32>
    %530 = arith.divf %528, %529 : vector<32x1xf32>
    %531 = vector.broadcast %530 : vector<32x1xf32> to vector<32x32xf32>
    %532 = arith.subf %524, %531 : vector<32x32xf32>
    %533 = arith.mulf %532, %532 : vector<32x32xf32>
    %cst_239 = arith.constant dense<0.000000e+00> : vector<32xf32>
    %534 = vector.multi_reduction <add>, %533, %cst_239 [1] : vector<32x32xf32> to vector<32xf32>
    %535 = vector.shape_cast %534 : vector<32xf32> to vector<32x1xf32>
    %cst_240 = arith.constant 3.200000e+01 : f32
    %536 = vector.broadcast %cst_240 : f32 to vector<32x1xf32>
    %537 = arith.divf %535, %536 : vector<32x1xf32>
    %538 = vector.broadcast %530 : vector<32x1xf32> to vector<32x32xf32>
    %539 = arith.subf %524, %538 : vector<32x32xf32>
    %cst_241 = arith.constant 9.99999974E-6 : f32
    %540 = vector.broadcast %cst_241 : f32 to vector<32x1xf32>
    %541 = arith.addf %537, %540 : vector<32x1xf32>
    %542 = math.rsqrt %541 : vector<32x1xf32>
    %543 = vector.broadcast %542 : vector<32x1xf32> to vector<32x32xf32>
    %544 = arith.mulf %539, %543 : vector<32x32xf32>
    %545 = vector.broadcast %525 : vector<1x32xf32> to vector<32x32xf32>
    %546 = arith.mulf %544, %545 : vector<32x32xf32>
    %547 = vector.broadcast %526 : vector<1x32xf32> to vector<32x32xf32>
    %548 = arith.addf %546, %547 : vector<32x32xf32>
    %c3_242 = arith.constant 3 : index
    %c0_243 = arith.constant 0 : index
    %c0_244 = arith.constant 0 : index
    %549 = vector.load %arg8[%c3_242, %c0_243, %c0_244] : memref<6x32x32xf32, #tpu.memory_space<vmem>>, vector<1x32x32xf32>
    %550 = vector.shape_cast %549 : vector<1x32x32xf32> to vector<32x32xf32>
    %cst_245 = arith.constant dense<0.000000e+00> : vector<32x32xf32>
    %551 = tpu.matmul %548, %550, %cst_245 {dimension_numbers = #tpu.dot_dimension_numbers<[1], [0], [0], [1], [0, 0, 1, 1], [], []>} : vector<32x32xf32>, vector<32x32xf32>, vector<32x32xf32> -> vector<32x32xf32>
    %552 = vector.extract_strided_slice %354 {offsets = [8, 0], sizes = [1, 32], strides = [1, 1]} : vector<19x32xf32> to vector<1x32xf32>
    %553 = vector.broadcast %552 : vector<1x32xf32> to vector<32x32xf32>
    %554 = arith.addf %551, %553 : vector<32x32xf32>
    %c4_246 = arith.constant 4 : index
    %c0_247 = arith.constant 0 : index
    %c0_248 = arith.constant 0 : index
    %555 = vector.load %arg8[%c4_246, %c0_247, %c0_248] : memref<6x32x32xf32, #tpu.memory_space<vmem>>, vector<1x32x32xf32>
    %556 = vector.shape_cast %555 : vector<1x32x32xf32> to vector<32x32xf32>
    %cst_249 = arith.constant dense<0.000000e+00> : vector<32x32xf32>
    %557 = tpu.matmul %548, %556, %cst_249 {dimension_numbers = #tpu.dot_dimension_numbers<[1], [0], [0], [1], [0, 0, 1, 1], [], []>} : vector<32x32xf32>, vector<32x32xf32>, vector<32x32xf32> -> vector<32x32xf32>
    %558 = vector.extract_strided_slice %354 {offsets = [9, 0], sizes = [1, 32], strides = [1, 1]} : vector<19x32xf32> to vector<1x32xf32>
    %559 = vector.broadcast %558 : vector<1x32xf32> to vector<32x32xf32>
    %560 = arith.addf %557, %559 : vector<32x32xf32>
    %561 = arith.negf %560 : vector<32x32xf32>
    %562 = math.exp %561 : vector<32x32xf32>
    %cst_250 = arith.constant 1.000000e+00 : f32
    %563 = vector.broadcast %cst_250 : f32 to vector<32x32xf32>
    %564 = arith.addf %563, %562 : vector<32x32xf32>
    %565 = arith.divf %563, %564 : vector<32x32xf32>
    %566 = arith.mulf %554, %565 : vector<32x32xf32>
    %567 = vector.shape_cast %566 : vector<32x32xf32> to vector<2x16x32xf32>
    %c0_251 = arith.constant 0 : index
    %c3_252 = arith.constant 3 : index
    %c0_253 = arith.constant 0 : index
    %568 = vector.load %arg11[%c0_251, %c3_252, %c0_253] : memref<2x22x32xf32, #tpu.memory_space<vmem>>, vector<2x16x32xf32>
    tpu.vector_store %arg11[%c0_251, %c3_252, %c0_253], %567 {strides = array<i32>} : memref<2x22x32xf32, #tpu.memory_space<vmem>>, vector<2x16x32xf32>,
    %cst_254 = arith.constant 0.000000e+00 : f32
    %569 = vector.broadcast %cst_254 : f32 to vector<32x32xf32>
    %c0_255 = arith.constant 0 : index
    %c0_256 = arith.constant 0 : index
    %c0_257 = arith.constant 0 : index
    %570 = vector.load %arg11[%c0_255, %c0_256, %c0_257] : memref<2x22x32xf32, #tpu.memory_space<vmem>>, vector<2x16x32xf32>
    %571 = vector.shape_cast %570 : vector<2x16x32xf32> to vector<32x32xf32>
    %572 = vector.extract_strided_slice %358 {offsets = [0, 0], sizes = [1, 32], strides = [1, 1]} : vector<7x32xf32> to vector<1x32xf32>
    %573 = vector.broadcast %572 : vector<1x32xf32> to vector<32x32xf32>
    %574 = arith.mulf %571, %573 : vector<32x32xf32>
    %575 = arith.addf %569, %574 : vector<32x32xf32>
    %c0_258 = arith.constant 0 : index
    %c1_259 = arith.constant 1 : index
    %c0_260 = arith.constant 0 : index
    %576 = vector.load %arg11[%c0_258, %c1_259, %c0_260] : memref<2x22x32xf32, #tpu.memory_space<vmem>>, vector<2x16x32xf32>
    %577 = vector.shape_cast %576 : vector<2x16x32xf32> to vector<32x32xf32>
    %578 = vector.extract_strided_slice %358 {offsets = [1, 0], sizes = [1, 32], strides = [1, 1]} : vector<7x32xf32> to vector<1x32xf32>
    %579 = vector.broadcast %578 : vector<1x32xf32> to vector<32x32xf32>
    %580 = arith.mulf %577, %579 : vector<32x32xf32>
    %581 = arith.addf %575, %580 : vector<32x32xf32>
    %c0_261 = arith.constant 0 : index
    %c2_262 = arith.constant 2 : index
    %c0_263 = arith.constant 0 : index
    %582 = vector.load %arg11[%c0_261, %c2_262, %c0_263] : memref<2x22x32xf32, #tpu.memory_space<vmem>>, vector<2x16x32xf32>
    %583 = vector.shape_cast %582 : vector<2x16x32xf32> to vector<32x32xf32>
    %584 = vector.extract_strided_slice %358 {offsets = [2, 0], sizes = [1, 32], strides = [1, 1]} : vector<7x32xf32> to vector<1x32xf32>
    %585 = vector.broadcast %584 : vector<1x32xf32> to vector<32x32xf32>
    %586 = arith.mulf %583, %585 : vector<32x32xf32>
    %587 = arith.addf %581, %586 : vector<32x32xf32>
    %c0_264 = arith.constant 0 : index
    %c3_265 = arith.constant 3 : index
    %c0_266 = arith.constant 0 : index
    %588 = vector.load %arg11[%c0_264, %c3_265, %c0_266] : memref<2x22x32xf32, #tpu.memory_space<vmem>>, vector<2x16x32xf32>
    %589 = vector.shape_cast %588 : vector<2x16x32xf32> to vector<32x32xf32>
    %590 = vector.extract_strided_slice %358 {offsets = [3, 0], sizes = [1, 32], strides = [1, 1]} : vector<7x32xf32> to vector<1x32xf32>
    %591 = vector.broadcast %590 : vector<1x32xf32> to vector<32x32xf32>
    %592 = arith.mulf %589, %591 : vector<32x32xf32>
    %593 = arith.addf %587, %592 : vector<32x32xf32>
    %c0_267 = arith.constant 0 : index
    %c4_268 = arith.constant 4 : index
    %c0_269 = arith.constant 0 : index
    %594 = vector.load %arg11[%c0_267, %c4_268, %c0_269] : memref<2x22x32xf32, #tpu.memory_space<vmem>>, vector<2x16x32xf32>
    %595 = vector.shape_cast %594 : vector<2x16x32xf32> to vector<32x32xf32>
    %596 = vector.extract_strided_slice %358 {offsets = [4, 0], sizes = [1, 32], strides = [1, 1]} : vector<7x32xf32> to vector<1x32xf32>
    %597 = vector.broadcast %596 : vector<1x32xf32> to vector<32x32xf32>
    %598 = arith.mulf %595, %597 : vector<32x32xf32>
    %599 = arith.addf %593, %598 : vector<32x32xf32>
    %c0_270 = arith.constant 0 : index
    %c5_271 = arith.constant 5 : index
    %c0_272 = arith.constant 0 : index
    %600 = vector.load %arg11[%c0_270, %c5_271, %c0_272] : memref<2x22x32xf32, #tpu.memory_space<vmem>>, vector<2x16x32xf32>
    %601 = vector.shape_cast %600 : vector<2x16x32xf32> to vector<32x32xf32>
    %602 = vector.extract_strided_slice %358 {offsets = [5, 0], sizes = [1, 32], strides = [1, 1]} : vector<7x32xf32> to vector<1x32xf32>
    %603 = vector.broadcast %602 : vector<1x32xf32> to vector<32x32xf32>
    %604 = arith.mulf %601, %603 : vector<32x32xf32>
    %605 = arith.addf %599, %604 : vector<32x32xf32>
    %c0_273 = arith.constant 0 : index
    %c6_274 = arith.constant 6 : index
    %c0_275 = arith.constant 0 : index
    %606 = vector.load %arg11[%c0_273, %c6_274, %c0_275] : memref<2x22x32xf32, #tpu.memory_space<vmem>>, vector<2x16x32xf32>
    %607 = vector.shape_cast %606 : vector<2x16x32xf32> to vector<32x32xf32>
    %608 = vector.extract_strided_slice %358 {offsets = [6, 0], sizes = [1, 32], strides = [1, 1]} : vector<7x32xf32> to vector<1x32xf32>
    %609 = vector.broadcast %608 : vector<1x32xf32> to vector<32x32xf32>
    %610 = arith.mulf %607, %609 : vector<32x32xf32>
    %611 = arith.addf %605, %610 : vector<32x32xf32>
    %612 = vector.extract_strided_slice %354 {offsets = [10, 0], sizes = [1, 32], strides = [1, 1]} : vector<19x32xf32> to vector<1x32xf32>
    %613 = vector.broadcast %612 : vector<1x32xf32> to vector<32x32xf32>
    %614 = arith.addf %611, %613 : vector<32x32xf32>
    %615 = vector.extract_strided_slice %354 {offsets = [11, 0], sizes = [1, 32], strides = [1, 1]} : vector<19x32xf32> to vector<1x32xf32>
    %616 = vector.broadcast %615 : vector<1x32xf32> to vector<32x32xf32>
    %617 = arith.mulf %614, %616 : vector<32x32xf32>
    %618 = vector.extract_strided_slice %354 {offsets = [12, 0], sizes = [1, 32], strides = [1, 1]} : vector<19x32xf32> to vector<1x32xf32>
    %619 = vector.broadcast %618 : vector<1x32xf32> to vector<32x32xf32>
    %620 = arith.addf %617, %619 : vector<32x32xf32>
    %621 = arith.negf %620 : vector<32x32xf32>
    %622 = math.exp %621 : vector<32x32xf32>
    %cst_276 = arith.constant 1.000000e+00 : f32
    %623 = vector.broadcast %cst_276 : f32 to vector<32x32xf32>
    %624 = arith.addf %623, %622 : vector<32x32xf32>
    %625 = arith.divf %623, %624 : vector<32x32xf32>
    %626 = arith.mulf %620, %625 : vector<32x32xf32>
    %c5_277 = arith.constant 5 : index
    %c0_278 = arith.constant 0 : index
    %c0_279 = arith.constant 0 : index
    %627 = vector.load %arg8[%c5_277, %c0_278, %c0_279] : memref<6x32x32xf32, #tpu.memory_space<vmem>>, vector<1x32x32xf32>
    %628 = vector.shape_cast %627 : vector<1x32x32xf32> to vector<32x32xf32>
    %cst_280 = arith.constant dense<0.000000e+00> : vector<32x32xf32>
    %629 = tpu.matmul %626, %628, %cst_280 {dimension_numbers = #tpu.dot_dimension_numbers<[1], [0], [0], [1], [0, 0, 1, 1], [], []>} : vector<32x32xf32>, vector<32x32xf32>, vector<32x32xf32> -> vector<32x32xf32>
    %630 = vector.extract_strided_slice %354 {offsets = [13, 0], sizes = [1, 32], strides = [1, 1]} : vector<19x32xf32> to vector<1x32xf32>
    %631 = vector.broadcast %630 : vector<1x32xf32> to vector<32x32xf32>
    %632 = arith.addf %629, %631 : vector<32x32xf32>
    %633 = arith.addf %524, %632 : vector<32x32xf32>
    %634 = vector.extract_strided_slice %354 {offsets = [14, 0], sizes = [1, 32], strides = [1, 1]} : vector<19x32xf32> to vector<1x32xf32>
    %635 = vector.extract_strided_slice %354 {offsets = [15, 0], sizes = [1, 32], strides = [1, 1]} : vector<19x32xf32> to vector<1x32xf32>
    %cst_281 = arith.constant dense<0.000000e+00> : vector<32xf32>
    %636 = vector.multi_reduction <add>, %633, %cst_281 [1] : vector<32x32xf32> to vector<32xf32>
    %637 = vector.shape_cast %636 : vector<32xf32> to vector<32x1xf32>
    %cst_282 = arith.constant 3.200000e+01 : f32
    %638 = vector.broadcast %cst_282 : f32 to vector<32x1xf32>
    %639 = arith.divf %637, %638 : vector<32x1xf32>
    %640 = vector.broadcast %639 : vector<32x1xf32> to vector<32x32xf32>
    %641 = arith.subf %633, %640 : vector<32x32xf32>
    %642 = arith.mulf %641, %641 : vector<32x32xf32>
    %cst_283 = arith.constant dense<0.000000e+00> : vector<32xf32>
    %643 = vector.multi_reduction <add>, %642, %cst_283 [1] : vector<32x32xf32> to vector<32xf32>
    %644 = vector.shape_cast %643 : vector<32xf32> to vector<32x1xf32>
    %cst_284 = arith.constant 3.200000e+01 : f32
    %645 = vector.broadcast %cst_284 : f32 to vector<32x1xf32>
    %646 = arith.divf %644, %645 : vector<32x1xf32>
    %647 = vector.broadcast %639 : vector<32x1xf32> to vector<32x32xf32>
    %648 = arith.subf %633, %647 : vector<32x32xf32>
    %cst_285 = arith.constant 9.99999974E-6 : f32
    %649 = vector.broadcast %cst_285 : f32 to vector<32x1xf32>
    %650 = arith.addf %646, %649 : vector<32x1xf32>
    %651 = math.rsqrt %650 : vector<32x1xf32>
    %652 = vector.broadcast %651 : vector<32x1xf32> to vector<32x32xf32>
    %653 = arith.mulf %648, %652 : vector<32x32xf32>
    %654 = vector.broadcast %634 : vector<1x32xf32> to vector<32x32xf32>
    %655 = arith.mulf %653, %654 : vector<32x32xf32>
    %656 = vector.broadcast %635 : vector<1x32xf32> to vector<32x32xf32>
    %657 = arith.addf %655, %656 : vector<32x32xf32>
    %c3_286 = arith.constant 3 : index
    %c0_287 = arith.constant 0 : index
    %c0_288 = arith.constant 0 : index
    %658 = vector.load %arg3[%c3_286, %c0_287, %c0_288] : memref<4x32x64xf32, #tpu.memory_space<vmem>>, vector<1x32x64xf32>
    %659 = vector.shape_cast %658 : vector<1x32x64xf32> to vector<32x64xf32>
    %cst_289 = arith.constant dense<0.000000e+00> : vector<32x64xf32>
    %660 = tpu.matmul %657, %659, %cst_289 {dimension_numbers = #tpu.dot_dimension_numbers<[1], [0], [0], [1], [0, 0, 1, 1], [], []>} : vector<32x32xf32>, vector<32x64xf32>, vector<32x64xf32> -> vector<32x64xf32>
    %661 = vector.extract_strided_slice %356 {offsets = [1, 0], sizes = [1, 64], strides = [1, 1]} : vector<2x64xf32> to vector<1x64xf32>
    %662 = vector.broadcast %661 : vector<1x64xf32> to vector<32x64xf32>
    %663 = arith.addf %660, %662 : vector<32x64xf32>
    %664 = arith.negf %663 : vector<32x64xf32>
    %665 = math.exp %664 : vector<32x64xf32>
    %cst_290 = arith.constant 1.000000e+00 : f32
    %666 = vector.broadcast %cst_290 : f32 to vector<32x64xf32>
    %667 = arith.addf %666, %665 : vector<32x64xf32>
    %668 = arith.divf %666, %667 : vector<32x64xf32>
    %669 = arith.mulf %663, %668 : vector<32x64xf32>
    %c3_291 = arith.constant 3 : index
    %c0_292 = arith.constant 0 : index
    %c0_293 = arith.constant 0 : index
    %670 = vector.load %arg4[%c3_291, %c0_292, %c0_293] : memref<4x64x32xf32, #tpu.memory_space<vmem>>, vector<1x64x32xf32>
    %671 = vector.shape_cast %670 : vector<1x64x32xf32> to vector<64x32xf32>
    %cst_294 = arith.constant dense<0.000000e+00> : vector<32x32xf32>
    %672 = tpu.matmul %669, %671, %cst_294 {dimension_numbers = #tpu.dot_dimension_numbers<[1], [0], [0], [1], [0, 0, 1, 1], [], []>} : vector<32x64xf32>, vector<64x32xf32>, vector<32x32xf32> -> vector<32x32xf32>
    %673 = vector.extract_strided_slice %354 {offsets = [16, 0], sizes = [1, 32], strides = [1, 1]} : vector<19x32xf32> to vector<1x32xf32>
    %674 = vector.broadcast %673 : vector<1x32xf32> to vector<32x32xf32>
    %675 = arith.addf %672, %674 : vector<32x32xf32>
    %cst_295 = arith.constant 5.000000e-01 : f32
    %676 = vector.broadcast %cst_295 : f32 to vector<32x32xf32>
    %677 = arith.mulf %676, %675 : vector<32x32xf32>
    %678 = arith.addf %633, %677 : vector<32x32xf32>
    %679 = vector.extract_strided_slice %354 {offsets = [17, 0], sizes = [1, 32], strides = [1, 1]} : vector<19x32xf32> to vector<1x32xf32>
    %680 = vector.extract_strided_slice %354 {offsets = [18, 0], sizes = [1, 32], strides = [1, 1]} : vector<19x32xf32> to vector<1x32xf32>
    %cst_296 = arith.constant dense<0.000000e+00> : vector<32xf32>
    %681 = vector.multi_reduction <add>, %678, %cst_296 [1] : vector<32x32xf32> to vector<32xf32>
    %682 = vector.shape_cast %681 : vector<32xf32> to vector<32x1xf32>
    %cst_297 = arith.constant 3.200000e+01 : f32
    %683 = vector.broadcast %cst_297 : f32 to vector<32x1xf32>
    %684 = arith.divf %682, %683 : vector<32x1xf32>
    %685 = vector.broadcast %684 : vector<32x1xf32> to vector<32x32xf32>
    %686 = arith.subf %678, %685 : vector<32x32xf32>
    %687 = arith.mulf %686, %686 : vector<32x32xf32>
    %cst_298 = arith.constant dense<0.000000e+00> : vector<32xf32>
    %688 = vector.multi_reduction <add>, %687, %cst_298 [1] : vector<32x32xf32> to vector<32xf32>
    %689 = vector.shape_cast %688 : vector<32xf32> to vector<32x1xf32>
    %cst_299 = arith.constant 3.200000e+01 : f32
    %690 = vector.broadcast %cst_299 : f32 to vector<32x1xf32>
    %691 = arith.divf %689, %690 : vector<32x1xf32>
    %692 = vector.broadcast %684 : vector<32x1xf32> to vector<32x32xf32>
    %693 = arith.subf %678, %692 : vector<32x32xf32>
    %cst_300 = arith.constant 9.99999974E-6 : f32
    %694 = vector.broadcast %cst_300 : f32 to vector<32x1xf32>
    %695 = arith.addf %691, %694 : vector<32x1xf32>
    %696 = math.rsqrt %695 : vector<32x1xf32>
    %697 = vector.broadcast %696 : vector<32x1xf32> to vector<32x32xf32>
    %698 = arith.mulf %693, %697 : vector<32x32xf32>
    %699 = vector.broadcast %679 : vector<1x32xf32> to vector<32x32xf32>
    %700 = arith.mulf %698, %699 : vector<32x32xf32>
    %701 = vector.broadcast %680 : vector<1x32xf32> to vector<32x32xf32>
    %702 = arith.addf %700, %701 : vector<32x32xf32>
    %cst_301 = arith.constant 0.000000e+00 : f32
    %703 = vector.broadcast %cst_301 : f32 to vector<32x32xf32>
    %704 = arith.maximumf %702, %703 : vector<32x32xf32>
    %c0_302 = arith.constant 0 : index
    %c0_303 = arith.constant 0 : index
    %705 = vector.load %arg10[%c0_302, %c0_303] : memref<32x32xf32, #tpu.memory_space<vmem>>, vector<32x32xf32>
    tpu.vector_store %arg10[%c0_302, %c0_303], %704 {strides = array<i32>} : memref<32x32xf32, #tpu.memory_space<vmem>>, vector<32x32xf32>,
    return
  }
}

</mosaic_0001>

<bundles_post_ra>
// kernel: tpu_custom_call.1
= control target key start
LH: loop header
LB: loop body
LE: loop exit
PB: predicated region body
PF: predicated region fallthrough
CT: control target
= control target key end

     0   :  { %vm40_vm0 = vcmask 261120   ;;  %s6167_s0 = inlined_call_operand.vmem [shape: f32[32,32], index: 0, kind: input, shape index: {}]   ;;  %s6168_s1 = inlined_call_operand.vmem [shape: f32[2,19,32], index: 1, kind: input, shape index: {}]   ;;  %s6169_s2 = inlined_call_operand.vmem [shape: f32[2,2,64], index: 2, kind: input, shape index: {}]   ;;  %s6170_s3 = inlined_call_operand.vmem [shape: f32[4,32,64], index: 3, kind: input, shape index: {}]   ;;  %s6171_s4 = inlined_call_operand.vmem [shape: f32[4,64,32], index: 4, kind: input, shape index: {}]   ;;  %s6172_s5 = inlined_call_operand.vmem [shape: f32[12,32,16], index: 5, kind: input, shape index: {}]   ;;  %s6173_s6 = inlined_call_operand.vmem [shape: f32[6,2,16], index: 6, kind: input, shape index: {}]   ;;  %s6174_s7 = inlined_call_operand.vmem [shape: f32[4,16,32], index: 7, kind: input, shape index: {}]   ;;  %s6175_s8 = inlined_call_operand.vmem [shape: f32[6,32,32], index: 8, kind: input, shape index: {}]   ;;  %s6176_s9 = inlined_call_operand.vmem [shape: f32[2,7,32], index: 9, kind: input, shape index: {}]   ;;  %s6177_s10 = inlined_call_operand.hbm [shape: f32[32,32], index: 10, kind: output, shape index: {}]  }
   0x1   :  { %v4677_v0 = vld [vmem:[%s6167_s0 + $0x10] sm:$0xff]  ;;  %v4682_v1 = vld [vmem:[%s6167_s0] sm:$0xff] }
   0x2   :  { %v59_v2 = vsel %vm40_vm0, %v4677_v0, 0.0  ;;  %v53_v3 = vsel %vm40_vm0, %v4682_v1, 0.0 }
   0x3   :  { %15 = vsyncpa [#allocation4], 0  ;;  %60 = vadd.xlane.f32.xlu2 %v59_v2  ;;  %54 = vadd.xlane.f32.xlu0 %v53_v3  ;;  %v4691_v4 = vld [vmem:[%s6167_s0 + $0x8] sm:$0xff]  ;;  %v4696_v5 = vld [vmem:[%s6167_s0 + $0x18] sm:$0xff]  ;;  %v4614_v8 = vmov 32.0   ;;  %s3968_s21 = sshll.u32 %s6177_s10, 4  ;;  %s3969_s21 = int_to_ptr.hbm [resolvable:$true] %s3968_s21 }
   0x4   :  { %v56_v6 = vsel %vm40_vm0, %v4691_v4, 0.0  ;;  %v62_v7 = vsel %vm40_vm0, %v4696_v5, 0.0  ;;  %4310 = vrcp.f32 %v4614_v8  ;;  %v161_v35 = vld [vmem:[%s6170_s3 + $0x18] sm:$0xff]  ;;  %v160_v36 = vld [vmem:[%s6170_s3 + $0x10] sm:$0xff]  ;;  %v159_v37 = vld [vmem:[%s6170_s3 + $0x8] sm:$0xff]  ;;  %s4617_s22 = smov 128  }
   0x5   :  { %187 = vmatpush.msra.mxu0 %v161_v35  ;;  %v158_v38 = vld [vmem:[%s6170_s3] sm:$0xff]  ;;  %s4618_s23 = smov 8  }
   0x6   :  { %v4747_v58 = vld [vmem:[%s6168_s1] sm:$0xff] }
   0x7   :  { %188 = vmatpush.msra.mxu0 %v160_v36  ;;  %v148_v2 = vperm.slane %v4747_v58, 0  ;;  %v153_v8 = vperm.slane %v4747_v58, 1 }
   0x9   :  { %189 = vmatpush.msra.mxu0 %v159_v37 }
   0xa   :  { %v4311_v9 = vpop.eup %4310 }
   0xb   :  { %57 = vadd.xlane.f32.xlu0 %v56_v6  ;;  %63 = vadd.xlane.f32.xlu2 %v62_v7  ;;  %v66_v10 = vmul.f32 32.0, %v4311_v9  ;;  %vm70_vm1 = vweird.f32 %v4311_v9 }
   0xc   :  { %190 = vmatpush.msra.mxu0 %v158_v38  ;;  %v291_v38 = vld [vmem:[%s6171_s4 + $0x38] sm:$0xff] }
   0xd   :  { %v67_v11 = vsub.f32 1.0, %v66_v10  ;;  %314 = vmatpush.msra.mxu1 %v291_v38 }
   0xf   :  { %v68_v12 = vmul.f32 %v4311_v9, %v67_v11 }
  0x11   :  { %v69_v13 = vadd.f32 %v4311_v9, %v68_v12 }
  0x13   :  { %v4702_v14 = vsel %vm70_vm1, %v4311_v9, %v69_v13 }
  0x76   :  { %v61_v15 = vpop.xlane.xlu2 %60  ;;  %v55_v16 = vpop.xlane.xlu0 %54 }
  0x77   :  { %v74_v17 = vmul.f32 %v4702_v14, %v61_v15  ;;  %v72_v18 = vmul.f32 %v4702_v14, %v55_v16 }
  0x79   :  { %v4707_v19 = vsub.f32 %v4677_v0, %v74_v17  ;;  %v76_v20 = vsub.f32 %v4682_v1, %v72_v18 }
  0x7b   :  { %v82_v21 = vmul.f32 %v4707_v19, %v4707_v19  ;;  %v80_v22 = vmul.f32 %v76_v20, %v76_v20 }
  0x7d   :  { %v90_v23 = vsel %vm40_vm0, %v82_v21, 0.0  ;;  %v84_v24 = vsel %vm40_vm0, %v80_v22, 0.0 }
  0x7e   :  { %91 = vadd.xlane.f32.xlu0 %v90_v23  ;;  %85 = vadd.xlane.f32.xlu1 %v84_v24  ;;  %v58_v25 = vpop.xlane.xlu0 %57  ;;  %v64_v26 = vpop.xlane.xlu2 %63 }
  0x7f   :  { %v73_v27 = vmul.f32 %v4702_v14, %v58_v25  ;;  %v75_v28 = vmul.f32 %v4702_v14, %v64_v26 }
  0x81   :  { %v4717_v29 = vsub.f32 %v4691_v4, %v73_v27  ;;  %v4720_v30 = vsub.f32 %v4696_v5, %v75_v28 }
  0x83   :  { %v81_v31 = vmul.f32 %v4717_v29, %v4717_v29  ;;  %v83_v33 = vmul.f32 %v4720_v30, %v4720_v30 }
  0x85   :  { %v87_v32 = vsel %vm40_vm0, %v81_v31, 0.0  ;;  %v93_v34 = vsel %vm40_vm0, %v83_v33, 0.0 }
  0x86   :  { %88 = vadd.xlane.f32.xlu1 %v87_v32 }
  0x8e   :  { %94 = vadd.xlane.f32.xlu1 %v93_v34 }
  0xf1   :  { %v86_v39 = vpop.xlane.xlu1 %85  ;;  %v92_v40 = vpop.xlane.xlu0 %91 }
  0xf2   :  { %v96_v41 = vmul.f32 %v86_v39, %v4702_v14  ;;  %v98_v42 = vmul.f32 %v92_v40, %v4702_v14  ;;  %v288_v39 = vld [vmem:[%s6171_s4 + $0x20] sm:$0xff] }
  0xf3   :  { %v51_v40 = vld [vmem:[%s6169_s2] sm:$0x3] }
  0xf4   :  { %v100_v43 = vadd.f32 1e-05, %v96_v41  ;;  %v102_v44 = vadd.f32 1e-05, %v98_v42  ;;  %v287_v41 = vld [vmem:[%s6171_s4 + $0x18] sm:$0xff]  ;;  %v286_v42 = vld [vmem:[%s6171_s4 + $0x10] sm:$0xff] }
  0xf6   :  { %4312 = vrsqrt.f32 %v100_v43  ;;  %vm110_vm3 = vweird.f32 %v100_v43  ;;  %vm130_vm5 = vweird.f32 %v102_v44 }
  0xf7   :  { %4314 = vrsqrt.f32 %v102_v44 }
  0xf9   :  { %v89_v45 = vpop.xlane.xlu1 %88 }
  0xfa   :  { %v97_v46 = vmul.f32 %v89_v45, %v4702_v14 }
  0xfc   :  { %v4313_v47 = vpop.eup %4312  ;;  %v101_v48 = vadd.f32 1e-05, %v97_v46  ;;  %v284_v46 = vld [vmem:[%s6171_s4] sm:$0xff] }
  0xfd   :  { %v4315_v49 = vpop.eup %4314  ;;  %v105_v50 = vmul.f32 %v4313_v47, %v100_v43  ;;  %vm111_vm2 = vweird.f32 %v4313_v47  ;;  %v162_v43 = vperm.slane %v51_v40, 0 }
  0xfe   :  { %v125_v51 = vmul.f32 %v4315_v49, %v102_v44  ;;  %4316 = vrsqrt.f32 %v101_v48  ;;  %vm112_vm4 = vmor %vm110_vm3, %vm111_vm2  ;;  %vm131_vm6 = vweird.f32 %v4315_v49  ;;  %vm120_vm9 = vweird.f32 %v101_v48  ;;  %v285_v44 = vld [vmem:[%s6171_s4 + $0x8] sm:$0xff] }
  0xff   :  { %v106_v52 = vmul.f32 %v4313_v47, %v105_v50  ;;  %vm4751_vm8 = vmor %vm130_vm5, %vm131_vm6  ;;  %vm293_vm3 = vcmask 523264  }
 0x100   :  { %v126_v54 = vmul.f32 %v4315_v49, %v125_v51 }
 0x101   :  { %v107_v53 = vmul.f32 0.5, %v106_v52  ;;  %v95_v55 = vpop.xlane.xlu1 %94 }
 0x102   :  { %v99_v56 = vmul.f32 %v95_v55, %v4702_v14  ;;  %v127_v62 = vmul.f32 0.5, %v126_v54 }
 0x103   :  { %v108_v57 = vsub.f32 1.5, %v107_v53 }
 0x104   :  { %v4317_v59 = vpop.eup %4316  ;;  %v103_v60 = vadd.f32 1e-05, %v99_v56  ;;  %v128_v9 = vsub.f32 1.5, %v127_v62 }
 0x105   :  { %v109_v61 = vmul.f32 %v4313_v47, %v108_v57  ;;  %v115_v63 = vmul.f32 %v4317_v59, %v101_v48  ;;  %vm121_vm7 = vweird.f32 %v4317_v59 }
 0x106   :  { %4318 = vrsqrt.f32 %v103_v60  ;;  %v129_v16 = vmul.f32 %v4315_v49, %v128_v9  ;;  %vm122_vm10 = vmor %vm120_vm9, %vm121_vm7  ;;  %vm140_vm11 = vweird.f32 %v103_v60 }
 0x107   :  { %v113_v3 = vsel %vm112_vm4, %v4313_v47, %v109_v61  ;;  %v116_v6 = vmul.f32 %v4317_v59, %v115_v63 }
 0x108   :  { %v144_v7 = vmul.f32 %v113_v3, %v76_v20  ;;  %v133_v24 = vsel %vm4751_vm8, %v4315_v49, %v129_v16 }
 0x109   :  { %v117_v10 = vmul.f32 0.5, %v116_v6  ;;  %v146_v31 = vmul.f32 %v133_v24, %v4707_v19  ;;  %v290_v19 = vld [vmem:[%s6171_s4 + $0x30] sm:$0xff] }
 0x10a   :  { %v149_v11 = vmul.f32 %v148_v2, %v144_v7  ;;  %315 = vmatpush.msra.mxu1 %v290_v19 }
 0x10b   :  { %v118_v12 = vsub.f32 1.5, %v117_v10  ;;  %v151_v33 = vmul.f32 %v148_v2, %v146_v31 }
 0x10c   :  { %v4319_v13 = vpop.eup %4318  ;;  %v154_v15 = vadd.f32 %v153_v8, %v149_v11 }
 0x10d   :  { %v119_v18 = vmul.f32 %v4317_v59, %v118_v12  ;;  %v135_v21 = vmul.f32 %v4319_v13, %v103_v60  ;;  %vm141_vm12 = vweird.f32 %v4319_v13  ;;  %v156_v35 = vadd.f32 %v153_v8, %v151_v33 }
 0x10e   :  { %3980 = vmatmul.msk.f32.vlgmr.msra.gmra.mxu0 %vm40_vm0, %v154_v15  ;;  %vm142_vm13 = vmor %vm140_vm11, %vm141_vm12 }
 0x10f   :  { %v123_v20 = vsel %vm122_vm10, %v4317_v59, %v119_v18  ;;  %v136_v22 = vmul.f32 %v4319_v13, %v135_v21 }
 0x110   :  { %v145_v23 = vmul.f32 %v123_v20, %v4717_v29 }
 0x111   :  { %v137_v25 = vmul.f32 0.5, %v136_v22 }
 0x112   :  { %v150_v26 = vmul.f32 %v148_v2, %v145_v23 }
 0x113   :  { %v138_v27 = vsub.f32 1.5, %v137_v25 }
 0x114   :  { %v155_v28 = vadd.f32 %v153_v8, %v150_v26 }
 0x115   :  { %v139_v32 = vmul.f32 %v4319_v13, %v138_v27 }
 0x116   :  { %3981 = vmatmul.msk.f32.gmra.mxu0 %vm40_vm0, %v155_v28 }
 0x117   :  { %v143_v34 = vsel %vm142_vm13, %v4319_v13, %v139_v32 }
 0x118   :  { %v147_v29 = vmul.f32 %v143_v34, %v4720_v30  ;;  %v289_v30 = vld [vmem:[%s6171_s4 + $0x28] sm:$0xff] }
 0x119   :  { %316 = vmatpush.msra.mxu1 %v289_v30 }
 0x11a   :  { %v152_v36 = vmul.f32 %v148_v2, %v147_v29 }
 0x11b   :  { %317 = vmatpush.msra.mxu1 %v288_v39 }
 0x11c   :  { %v157_v37 = vadd.f32 %v153_v8, %v152_v36 }
 0x11d   :  { %318 = vmatpush.msra.mxu1 %v287_v41 }
 0x11e   :  { %3982 = vmatmul.msk.f32.gmra.mxu0 %vm40_vm0, %v156_v35 }
 0x11f   :  { %319 = vmatpush.msra.mxu1 %v286_v42 }
 0x121   :  { %320 = vmatpush.msra.mxu1 %v285_v44 }
 0x123   :  { %321 = vmatpush.msra.mxu1 %v284_v46 }
 0x126   :  { %3983 = vmatmul.msk.f32.gmra.mxu0 %vm40_vm0, %v157_v37 }
 0x18b   :  { %v192_v45 = vpop.f32.mrf.mxu0 }
 0x18c   :  { %v193_v47 = vadd.f32 %v192_v45, %v162_v43 }
 0x18e   :  { %v3984_v48 = vmul.f32 -1.442695, %v193_v47 }
 0x190   :  { %4320 = vpow2.f32 %v3984_v48 }
 0x193   :  { %v195_v49 = vpop.f32.mrf.mxu0 }
 0x194   :  { %v196_v50 = vadd.f32 %v195_v49, %v162_v43 }
 0x196   :  { %v4321_v51 = vpop.eup %4320  ;;  %v3985_v52 = vmul.f32 -1.442695, %v196_v50 }
 0x197   :  { %v216_v53 = vadd.f32 1.0, %v4321_v51 }
 0x198   :  { %4322 = vpow2.f32 %v3985_v52  ;;  %v292_v52 = vperm.slane %v4747_v58, 2 }
 0x199   :  { %4324 = vrcp.f32 %v216_v53  ;;  %v231_v63 = vand.u32 2147483648, %v216_v53  ;;  %v229_v6 = vand.u32 2147483647, %v216_v53  ;;  %vm225_vm15 = vweird.f32 %v216_v53 }
 0x19b   :  { %v198_v54 = vpop.f32.mrf.mxu0  ;;  %v232_v12 = vor.u32 1.1754944e-38, %v231_v63  ;;  %vm230_vm2 = vcmp.eq.f32.partialorder %v229_v6, 8.507059e+37 }
 0x19c   :  { %v4791_v55 = vadd.f32 %v198_v54, %v162_v43 }
 0x19e   :  { %v4323_v56 = vpop.eup %4322  ;;  %v3986_v57 = vmul.f32 -1.442695, %v4791_v55 }
 0x19f   :  { %v4325_v59 = vpop.eup %4324  ;;  %v217_v60 = vadd.f32 1.0, %v4323_v56 }
 0x1a0   :  { %v221_v61 = vmul.f32 %v4325_v59, %v216_v53  ;;  %4326 = vpow2.f32 %v3986_v57  ;;  %vm226_vm14 = vweird.f32 %v4325_v59 }
 0x1a1   :  { %4328 = vrcp.f32 %v217_v60  ;;  %vm227_vm1 = vmor %vm225_vm15, %vm226_vm14  ;;  %v246_v20 = vand.u32 2147483648, %v217_v60  ;;  %v244_v23 = vand.u32 2147483647, %v217_v60  ;;  %vm240_vm5 = vweird.f32 %v217_v60 }
 0x1a2   :  { %v222_v62 = vsub.f32 1.0, %v221_v61 }
 0x1a3   :  { %v201_v2 = vpop.f32.mrf.mxu0  ;;  %v247_v27 = vor.u32 1.1754944e-38, %v246_v20  ;;  %vm245_vm7 = vcmp.eq.f32.partialorder %v244_v23, 8.507059e+37 }
 0x1a4   :  { %v223_v3 = vmul.f32 %v4325_v59, %v222_v62  ;;  %v4794_v7 = vadd.f32 %v201_v2, %v162_v43 }
 0x1a6   :  { %v4327_v8 = vpop.eup %4326  ;;  %v224_v9 = vadd.f32 %v4325_v59, %v223_v3  ;;  %v3987_v10 = vmul.f32 -1.442695, %v4794_v7 }
 0x1a7   :  { %v4329_v11 = vpop.eup %4328  ;;  %v218_v13 = vadd.f32 1.0, %v4327_v8 }
 0x1a8   :  { %v228_v15 = vsel %vm227_vm1, %v4325_v59, %v224_v9  ;;  %v236_v16 = vmul.f32 %v4329_v11, %v217_v60  ;;  %4330 = vpow2.f32 %v3987_v10  ;;  %vm241_vm4 = vweird.f32 %v4329_v11 }
 0x1a9   :  { %v233_v17 = vsel %vm230_vm2, %v232_v12, %v228_v15  ;;  %4332 = vrcp.f32 %v218_v13  ;;  %vm242_vm6 = vmor %vm240_vm5, %vm241_vm4  ;;  %v261_v29 = vand.u32 2147483648, %v218_v13  ;;  %v259_v37 = vand.u32 2147483647, %v218_v13 }
 0x1aa   :  { %v280_v18 = vmul.f32 %v233_v17, %v193_v47  ;;  %v237_v21 = vsub.f32 1.0, %v236_v16  ;;  %vm255_vm9 = vweird.f32 %v218_v13 }
 0x1ab   :  { %v262_v30 = vor.u32 1.1754944e-38, %v261_v29  ;;  %vm260_vm11 = vcmp.eq.f32.partialorder %v259_v37, 8.507059e+37  ;;  %v3997_v29 = vld [vmem:[%s6172_s5 + $0x48] sm:$0xff]  ;;  %v441_v37 = vld [vmem:[%s6172_s5] sm:$0xff] }
 0x1ac   :  { %v238_v22 = vmul.f32 %v4329_v11, %v237_v21  ;;  %3988 = vmatmul.msk.f32.vlgmr.msra.gmra.mxu1 %vm293_vm3, %v280_v18 }
 0x1ae   :  { %v4331_v24 = vpop.eup %4330  ;;  %v239_v25 = vadd.f32 %v4329_v11, %v238_v22 }
 0x1af   :  { %v4333_v26 = vpop.eup %4332  ;;  %v219_v28 = vadd.f32 1.0, %v4331_v24 }
 0x1b0   :  { %v243_v31 = vsel %vm242_vm6, %v4329_v11, %v239_v25  ;;  %v251_v32 = vmul.f32 %v4333_v26, %v218_v13  ;;  %vm256_vm8 = vweird.f32 %v4333_v26 }
 0x1b1   :  { %v248_v33 = vsel %vm245_vm7, %v247_v27, %v243_v31  ;;  %4334 = vrcp.f32 %v219_v28  ;;  %vm257_vm10 = vmor %vm255_vm9, %vm256_vm8  ;;  %v276_v44 = vand.u32 2147483648, %v219_v28  ;;  %v274_v46 = vand.u32 2147483647, %v219_v28  ;;  %v444_v27 = vld [vmem:[%s6172_s5 + $0x18] sm:$0xff] }
 0x1b2   :  { %v281_v34 = vmul.f32 %v248_v33, %v196_v50  ;;  %v252_v35 = vsub.f32 1.0, %v251_v32  ;;  %vm270_vm13 = vweird.f32 %v219_v28  ;;  %v4008_v31 = vld [vmem:[%s6172_s5 + $0x98] sm:$0xff]  ;;  %471 = vmatpush.msra.mxu2 %v444_v27  ;;  %v443_v32 = vld [vmem:[%s6172_s5 + $0x10] sm:$0xff] }
 0x1b3   :  { %v277_v48 = vor.u32 1.1754944e-38, %v276_v44  ;;  %vm275_vm15 = vcmp.eq.f32.partialorder %v274_v46, 8.507059e+37  ;;  %545 = vmatpush.msrb.mxu0 %v4008_v31  ;;  %v3998_v33 = vld [vmem:[%s6172_s5 + $0x50] sm:$0xff]  ;;  %v4046_v27 = vld [vmem:[%s6172_s5 + $0xb8] sm:$0xff] }
 0x1b4   :  { %v253_v36 = vmul.f32 %v4333_v26, %v252_v35  ;;  %3989 = vmatmul.msk.f32.gmra.mxu1 %vm293_vm3, %v281_v34  ;;  %v4007_v34 = vld [vmem:[%s6172_s5 + $0x90] sm:$0xff]  ;;  %472 = vmatpush.msra.mxu2 %v443_v32  ;;  %v442_v35 = vld [vmem:[%s6172_s5 + $0x8] sm:$0xff] }
 0x1b5   :  { %546 = vmatpush.msrb.mxu0 %v4007_v34  ;;  %v4044_v32 = vld [vmem:[%s6172_s5 + $0xa8] sm:$0xff]  ;;  %v4043_v34 = vld [vmem:[%s6172_s5 + $0xa0] sm:$0xff] }
 0x1b6   :  { %v254_v38 = vadd.f32 %v4333_v26, %v253_v36  ;;  %v4006_v36 = vld [vmem:[%s6172_s5 + $0x88] sm:$0xff]  ;;  %473 = vmatpush.msra.mxu2 %v442_v35 }
 0x1b7   :  { %v4335_v19 = vpop.eup %4334  ;;  %547 = vmatpush.msrb.mxu0 %v4006_v36 }
 0x1b8   :  { %v258_v39 = vsel %vm257_vm10, %v4333_v26, %v254_v38  ;;  %v266_v40 = vmul.f32 %v4335_v19, %v219_v28  ;;  %vm271_vm12 = vweird.f32 %v4335_v19  ;;  %v3999_v28 = vld [vmem:[%s6172_s5 + $0x58] sm:$0xff]  ;;  %v3996_v38 = vld [vmem:[%s6172_s5 + $0x40] sm:$0xff]  ;;  %474 = vmatpush.msra.mxu2 %v441_v37 }
 0x1b9   :  { %v263_v41 = vsel %vm260_vm11, %v262_v30, %v258_v39  ;;  %vm272_vm14 = vmor %vm270_vm13, %vm271_vm12  ;;  %508 = vmatpush.msra.mxu3 %v3999_v28 }
 0x1ba   :  { %v282_v42 = vmul.f32 %v263_v41, %v4791_v55  ;;  %v267_v43 = vsub.f32 1.0, %v266_v40 }
 0x1bb   :  { %509 = vmatpush.msra.mxu3 %v3998_v33 }
 0x1bc   :  { %v268_v45 = vmul.f32 %v4335_v19, %v267_v43  ;;  %3990 = vmatmul.msk.f32.gmra.mxu1 %vm293_vm3, %v282_v42 }
 0x1bd   :  { %510 = vmatpush.msra.mxu3 %v3997_v29 }
 0x1be   :  { %v269_v47 = vadd.f32 %v4335_v19, %v268_v45 }
 0x1bf   :  { %511 = vmatpush.msra.mxu3 %v3996_v38 }
 0x1c0   :  { %v273_v49 = vsel %vm272_vm14, %v4335_v19, %v269_v47  ;;  %v4005_v19 = vld [vmem:[%s6172_s5 + $0x80] sm:$0xff]  ;;  %vm562_vm14 = vcmask 130048  }
 0x1c1   :  { %v278_v50 = vsel %vm275_vm15, %v277_v48, %v273_v49  ;;  %548 = vmatpush.msrb.mxu0 %v4005_v19 }
 0x1c2   :  { %v283_v51 = vmul.f32 %v278_v50, %v4794_v7 }
 0x1c3   :  { %832 = vmatpush.msra.mxu0 %v4046_v27 }
 0x1c4   :  { %3991 = vmatmul.msk.f32.gmra.mxu1 %vm293_vm3, %v283_v51 }
 0x229   :  { %v323_v53 = vpop.f32.mrf.mxu1 }
 0x22a   :  { %v324_v54 = vadd.f32 %v323_v53, %v292_v52 }
 0x22c   :  { %v335_v55 = vmul.f32 0.5, %v324_v54 }
 0x22e   :  { %v4805_v56 = vadd.f32 %v335_v55, %v4682_v1 }
 0x230   :  { %v343_v57 = vsel %vm40_vm0, %v4805_v56, 0.0 }
 0x231   :  { %344 = vadd.xlane.f32.xlu2 %v343_v57  ;;  %v326_v59 = vpop.f32.mrf.mxu1 }
 0x232   :  { %v327_v60 = vadd.f32 %v326_v59, %v292_v52 }
 0x234   :  { %v336_v61 = vmul.f32 0.5, %v327_v60 }
 0x236   :  { %v4810_v62 = vadd.f32 %v336_v61, %v4691_v4 }
 0x238   :  { %v346_v63 = vsel %vm40_vm0, %v4810_v62, 0.0 }
 0x239   :  { %347 = vadd.xlane.f32.xlu0 %v346_v63  ;;  %v329_v2 = vpop.f32.mrf.mxu1  ;;  %v4892_v63 = vperm.slane %v4747_v58, 3 }
 0x23a   :  { %v330_v3 = vadd.f32 %v329_v2, %v292_v52 }
 0x23c   :  { %v337_v6 = vmul.f32 0.5, %v330_v3 }
 0x23e   :  { %v4815_v1 = vadd.f32 %v337_v6, %v4677_v0  ;;  %v436_v6 = vperm.slane %v4747_v58, 4 }
 0x240   :  { %v349_v7 = vsel %vm40_vm0, %v4815_v1, 0.0 }
 0x241   :  { %350 = vadd.xlane.f32.xlu0 %v349_v7  ;;  %v332_v8 = vpop.f32.mrf.mxu1 }
 0x242   :  { %v333_v4 = vadd.f32 %v332_v8, %v292_v52 }
 0x244   :  { %v338_v13 = vmul.f32 0.5, %v333_v4 }
 0x246   :  { %v4828_v17 = vadd.f32 %v338_v13, %v4696_v5 }
 0x248   :  { %v352_v20 = vsel %vm40_vm0, %v4828_v17, 0.0 }
 0x2a4   :  { %v345_v9 = vpop.xlane.xlu2 %344 }
 0x2a5   :  { %v355_v10 = vmul.f32 %v345_v9, %v4702_v14 }
 0x2a7   :  { %v4821_v11 = vsub.f32 %v4805_v56, %v355_v10 }
 0x2a9   :  { %v363_v12 = vmul.f32 %v4821_v11, %v4821_v11 }
 0x2ab   :  { %v367_v15 = vsel %vm40_vm0, %v363_v12, 0.0 }
 0x2ac   :  { %368 = vadd.xlane.f32.xlu1 %v367_v15  ;;  %v348_v0 = vpop.xlane.xlu0 %347 }
 0x2ad   :  { %v356_v16 = vmul.f32 %v348_v0, %v4702_v14 }
 0x2af   :  { %v4831_v18 = vsub.f32 %v4810_v62, %v356_v16 }
 0x2b1   :  { %v364_v21 = vmul.f32 %v4831_v18, %v4831_v18 }
 0x2b3   :  { %v370_v22 = vsel %vm40_vm0, %v364_v21, 0.0 }
 0x2b4   :  { %353 = vadd.xlane.f32.xlu1 %v352_v20  ;;  %371 = vadd.xlane.f32.xlu2 %v370_v22  ;;  %v351_v23 = vpop.xlane.xlu0 %350 }
 0x2b5   :  { %v357_v24 = vmul.f32 %v351_v23, %v4702_v14 }
 0x2b7   :  { %v4840_v25 = vsub.f32 %v4815_v1, %v357_v24 }
 0x2b9   :  { %v365_v5 = vmul.f32 %v4840_v25, %v4840_v25 }
 0x2bb   :  { %v373_v26 = vsel %vm40_vm0, %v365_v5, 0.0 }
 0x2bc   :  { %374 = vadd.xlane.f32.xlu2 %v373_v26 }
 0x31f   :  { %v369_v30 = vpop.xlane.xlu1 %368 }
 0x320   :  { %v379_v39 = vmul.f32 %v369_v30, %v4702_v14 }
 0x322   :  { %v383_v40 = vadd.f32 1e-05, %v379_v39 }
 0x324   :  { %4336 = vrsqrt.f32 %v383_v40  ;;  %vm393_vm2 = vweird.f32 %v383_v40 }
 0x327   :  { %v354_v41 = vpop.xlane.xlu1 %353  ;;  %v372_v42 = vpop.xlane.xlu2 %371 }
 0x328   :  { %v358_v43 = vmul.f32 %v354_v41, %v4702_v14  ;;  %v380_v44 = vmul.f32 %v372_v42, %v4702_v14 }
 0x32a   :  { %v4337_v45 = vpop.eup %4336  ;;  %v4885_v46 = vsub.f32 %v4828_v17, %v358_v43  ;;  %v384_v47 = vadd.f32 1e-05, %v380_v44  ;;  %v4009_v43 = vld [vmem:[%s6173_s6 + $0x4] sm:$0x3] }
 0x32b   :  { %v388_v48 = vmul.f32 %v4337_v45, %v383_v40  ;;  %vm394_vm1 = vweird.f32 %v4337_v45 }
 0x32c   :  { %4338 = vrsqrt.f32 %v384_v47  ;;  %v366_v49 = vmul.f32 %v4885_v46, %v4885_v46  ;;  %vm395_vm4 = vmor %vm393_vm2, %vm394_vm1  ;;  %vm403_vm6 = vweird.f32 %v384_v47 }
 0x32d   :  { %v389_v50 = vmul.f32 %v4337_v45, %v388_v48 }
 0x32e   :  { %v376_v51 = vsel %vm40_vm0, %v366_v49, 0.0 }
 0x32f   :  { %v390_v52 = vmul.f32 0.5, %v389_v50  ;;  %377 = vadd.xlane.f32.xlu0 %v376_v51  ;;  %v375_v53 = vpop.xlane.xlu2 %374 }
 0x330   :  { %v381_v54 = vmul.f32 %v375_v53, %v4702_v14 }
 0x331   :  { %v391_v55 = vsub.f32 1.5, %v390_v52  ;;  %v445_v52 = vld [vmem:[%s6173_s6] sm:$0x3] }
 0x332   :  { %v4339_v57 = vpop.eup %4338  ;;  %v385_v59 = vadd.f32 1e-05, %v381_v54 }
 0x333   :  { %v392_v60 = vmul.f32 %v4337_v45, %v391_v55  ;;  %v398_v61 = vmul.f32 %v4339_v57, %v384_v47  ;;  %vm404_vm5 = vweird.f32 %v4339_v57  ;;  %v4000_v47 = vld [vmem:[%s6173_s6 + $0x2] sm:$0x3]  ;;  %v446_v55 = vperm.slane %v445_v52, 0 }
 0x334   :  { %4340 = vrsqrt.f32 %v385_v59  ;;  %vm405_vm7 = vmor %vm403_vm6, %vm404_vm5  ;;  %vm413_vm9 = vweird.f32 %v385_v59  ;;  %v495_v50 = vperm.slane %v4000_v47, 0  ;;  %v4034_v52 = vld [vmem:[%s6172_s5 + $0x60] sm:$0xff] }
 0x335   :  { %v396_v2 = vsel %vm395_vm4, %v4337_v45, %v392_v60  ;;  %v399_v3 = vmul.f32 %v4339_v57, %v398_v61  ;;  %v532_v45 = vperm.slane %v4009_v43, 0 }
 0x336   :  { %v427_v7 = vmul.f32 %v396_v2, %v4821_v11 }
 0x337   :  { %v400_v8 = vmul.f32 0.5, %v399_v3 }
 0x338   :  { %v432_v9 = vmul.f32 %v4892_v63, %v427_v7 }
 0x339   :  { %v401_v10 = vsub.f32 1.5, %v400_v8 }
 0x33a   :  { %v4341_v4 = vpop.eup %4340  ;;  %v4897_v12 = vadd.f32 %v436_v6, %v432_v9 }
 0x33b   :  { %v402_v13 = vmul.f32 %v4339_v57, %v401_v10  ;;  %v408_v15 = vmul.f32 %v4341_v4, %v385_v59  ;;  %vm414_vm8 = vweird.f32 %v4341_v4 }
 0x33c   :  { %3992 = vmatmul.msk.f32.vlgmr.msra.gmra.mxu2 %vm40_vm0, %v4897_v12  ;;  %4001 = vmatmul.msk.f32.vlgmr.msra.gmra.mxu3 %vm40_vm0, %v4897_v12  ;;  %vm415_vm10 = vmor %vm413_vm9, %vm414_vm8 }
 0x33d   :  { %v406_v58 = vsel %vm405_vm7, %v4339_v57, %v402_v13  ;;  %v409_v11 = vmul.f32 %v4341_v4, %v408_v15  ;;  %4010 = vmatmul.msk.f32.vlgmr.msrb.gmra.mxu0 %vm40_vm0, %v4897_v12  ;;  %v4029_v15 = vld [vmem:[%s6172_s5 + $0x38] sm:$0xff] }
 0x33e   :  { %v428_v0 = vmul.f32 %v406_v58, %v4831_v18 }
 0x33f   :  { %v410_v16 = vmul.f32 0.5, %v409_v11  ;;  %v4028_v11 = vld [vmem:[%s6172_s5 + $0x30] sm:$0xff] }
 0x340   :  { %v433_v21 = vmul.f32 %v4892_v63, %v428_v0  ;;  %v4047_v0 = vld [vmem:[%s6173_s6 + $0x4] sm:$0x3] }
 0x341   :  { %v411_v20 = vsub.f32 1.5, %v410_v16 }
 0x342   :  { %v4907_v22 = vadd.f32 %v436_v6, %v433_v21  ;;  %v4027_v21 = vld [vmem:[%s6172_s5 + $0x28] sm:$0xff] }
 0x343   :  { %v412_v23 = vmul.f32 %v4341_v4, %v411_v20 }
 0x344   :  { %3993 = vmatmul.msk.f32.gmra.mxu2 %vm40_vm0, %v4907_v22  ;;  %4002 = vmatmul.msk.f32.gmra.mxu3 %vm40_vm0, %v4907_v22 }
 0x345   :  { %v416_v24 = vsel %vm415_vm10, %v4341_v4, %v412_v23  ;;  %4011 = vmatmul.msk.f32.gmra.mxu0 %vm40_vm0, %v4907_v22  ;;  %v4984_v23 = vperm.slane %v4047_v0, 1 }
 0x346   :  { %v429_v18 = vmul.f32 %v416_v24, %v4840_v25  ;;  %v4045_v25 = vld [vmem:[%s6172_s5 + $0xb0] sm:$0xff]  ;;  %v4026_v24 = vld [vmem:[%s6172_s5 + $0x20] sm:$0xff] }
 0x347   :  { %833 = vmatpush.msra.mxu0 %v4045_v25 }
 0x348   :  { %v434_v5 = vmul.f32 %v4892_v63, %v429_v18 }
 0x349   :  { %834 = vmatpush.msra.mxu0 %v4044_v32 }
 0x34a   :  { %v4917_v26 = vadd.f32 %v436_v6, %v434_v5 }
 0x34b   :  { %835 = vmatpush.msra.mxu0 %v4043_v34 }
 0x34c   :  { %3994 = vmatmul.msk.f32.gmra.mxu2 %vm40_vm0, %v4917_v26  ;;  %4003 = vmatmul.msk.f32.gmra.mxu3 %vm40_vm0, %v4917_v26 }
 0x34d   :  { %4012 = vmatmul.msk.f32.gmra.mxu0 %vm40_vm0, %v4917_v26 }
 0x3a2   :  { %v378_v28 = vpop.xlane.xlu0 %377 }
 0x3a3   :  { %v382_v31 = vmul.f32 %v378_v28, %v4702_v14 }
 0x3a5   :  { %v386_v33 = vadd.f32 1e-05, %v382_v31 }
 0x3a7   :  { %4342 = vrsqrt.f32 %v386_v33  ;;  %vm423_vm12 = vweird.f32 %v386_v33 }
 0x3ad   :  { %v4343_v35 = vpop.eup %4342 }
 0x3ae   :  { %v418_v29 = vmul.f32 %v4343_v35, %v386_v33  ;;  %vm424_vm11 = vweird.f32 %v4343_v35 }
 0x3af   :  { %vm425_vm13 = vmor %vm423_vm12, %vm424_vm11 }
 0x3b0   :  { %v419_v36 = vmul.f32 %v4343_v35, %v418_v29 }
 0x3b2   :  { %v420_v37 = vmul.f32 0.5, %v419_v36 }
 0x3b4   :  { %v421_v38 = vsub.f32 1.5, %v420_v37 }
 0x3b6   :  { %v422_v19 = vmul.f32 %v4343_v35, %v421_v38 }
 0x3b8   :  { %v426_v30 = vsel %vm425_vm13, %v4343_v35, %v422_v19  ;;  %vm43_vm13 = vcmask 259072  }
 0x3b9   :  { %v430_v39 = vmul.f32 %v426_v30, %v4885_v46 }
 0x3ba   :  { %v550_v40 = vpop.f32.mrf.mxu0 }
 0x3bb   :  { %v435_v41 = vmul.f32 %v4892_v63, %v430_v39  ;;  %v551_v49 = vadd.f32 %v550_v40, %v532_v45 }
 0x3bd   :  { %v4940_v42 = vadd.f32 %v436_v6, %v435_v41 }
 0x3bf   :  { %3995 = vmatmul.msk.f32.gmra.mxu2 %vm40_vm0, %v4940_v42  ;;  %v513_v44 = vpop.f32.mrf.mxu3  ;;  %4004 = vmatmul.msk.f32.gmra.mxu3 %vm40_vm0, %v4940_v42  ;;  %v476_v54 = vpop.f32.mrf.mxu2 }
 0x3c0   :  { %4013 = vmatmul.msk.f32.gmra.mxu0 %vm40_vm0, %v4940_v42  ;;  %v514_v57 = vadd.f32 %v513_v44, %v495_v50  ;;  %v477_v59 = vadd.f32 %v476_v54, %v446_v55 }
 0x3c2   :  { %v553_v46 = vpop.f32.mrf.mxu0 }
 0x3c3   :  { %v554_v48 = vadd.f32 %v553_v46, %v532_v45 }
 0x3c5   :  { %701 = vmatpush.msrb.mxu1 %v554_v48 }
 0x3c7   :  { %702 = vmatpush.msrb.mxu1 %v551_v49  ;;  %v516_v51 = vpop.f32.mrf.mxu3  ;;  %v479_v60 = vpop.f32.mrf.mxu2  ;;  %v4037_v49 = vld [vmem:[%s6172_s5 + $0x78] sm:$0xff] }
 0x3c8   :  { %v517_v53 = vadd.f32 %v516_v51, %v495_v50  ;;  %4048 = vmatmul.msk.f32.vlgmr.msra.gmra.mxu0 %vm40_vm0, %v4897_v12  ;;  %v480_v61 = vadd.f32 %v479_v60, %v446_v55  ;;  %v4035_v51 = vld [vmem:[%s6172_s5 + $0x68] sm:$0xff] }
 0x3c9   :  { %796 = vmatpush.msra.mxu1 %v4037_v49 }
 0x3ca   :  { %4014 = vmatpush.xpose.msk.msrb.mxu2 %vm562_vm14, %v517_v53  ;;  %v556_v63 = vpop.f32.mrf.mxu0 }
 0x3cb   :  { %v557_v7 = vadd.f32 %v556_v63, %v532_v45 }
 0x3ce   :  { %4015 = vmatpush.xpose.msk.msrb.mxu2 %vm562_vm14, %v514_v57 }
 0x3cf   :  { %v519_v2 = vpop.f32.mrf.mxu3  ;;  %v482_v10 = vpop.f32.mrf.mxu2 }
 0x3d0   :  { %4049 = vmatmul.msk.f32.gmra.mxu0 %vm40_vm0, %v4907_v22  ;;  %v520_v13 = vadd.f32 %v519_v2, %v495_v50  ;;  %v483_v58 = vadd.f32 %v482_v10, %v446_v55 }
 0x3d1   :  { %4016 = vmatmul.msk.f32.vlgmr.msrb.gmra.mxu2 %vm562_vm14, %v477_v59 }
 0x3d8   :  { %4050 = vmatmul.msk.f32.gmra.mxu0 %vm40_vm0, %v4917_v26 }
 0x3d9   :  { %4017 = vmatmul.msk.f32.gmra.mxu2 %vm562_vm14, %v480_v61 }
 0x3e0   :  { %4051 = vmatmul.msk.f32.gmra.mxu0 %vm40_vm0, %v4940_v42 }
 0x43d   :  { %v559_v3 = vpop.f32.mrf.mxu0 }
 0x43e   :  { %v560_v6 = vadd.f32 %v559_v3, %v532_v45 }
 0x440   :  { %730 = vmatpush.msra.mxu2 %v560_v6 }
 0x442   :  { %731 = vmatpush.msra.mxu2 %v557_v7  ;;  %v522_v8 = vpop.f32.mrf.mxu3  ;;  %v485_v16 = vpop.f32.mrf.mxu2 }
 0x443   :  { %v523_v9 = vadd.f32 %v522_v8, %v495_v50  ;;  %v486_v27 = vadd.f32 %v485_v16, %v446_v55  ;;  %v4036_v50 = vld [vmem:[%s6172_s5 + $0x70] sm:$0xff] }
 0x444   :  { %797 = vmatpush.msra.mxu1 %v4036_v50 }
 0x445   :  { %v837_v4 = vpop.f32.mrf.mxu0  ;;  %4018 = vmatpush.xpose.msk.msrb.mxu3 %vm562_vm14, %v523_v9 }
 0x446   :  { %v838_v5 = vadd.f32 %v837_v4, %v4984_v23  ;;  %798 = vmatpush.msra.mxu1 %v4035_v51 }
 0x448   :  { %799 = vmatpush.msra.mxu1 %v4034_v52 }
 0x449   :  { %4019 = vmatpush.xpose.msk.msrb.mxu3 %vm562_vm14, %v520_v13 }
 0x44c   :  { %4020 = vmatmul.msk.f32.vlgmr.msrb.gmra.mxu3 %vm562_vm14, %v483_v58 }
 0x44d   :  { %760 = vmatpush.msra.mxu3 %v4029_v15  ;;  %v840_v20 = vpop.f32.mrf.mxu0 }
 0x44e   :  { %v841_v18 = vadd.f32 %v840_v20, %v4984_v23 }
 0x44f   :  { %761 = vmatpush.msra.mxu3 %v4028_v11 }
 0x451   :  { %762 = vmatpush.msra.mxu3 %v4027_v21 }
 0x453   :  { %763 = vmatpush.msra.mxu3 %v4026_v24 }
 0x454   :  { %v592_v28 = vpop.f32.mrf.mxu2  ;;  %4021 = vmatmul.msk.f32.gmra.mxu3 %vm562_vm14, %v486_v27 }
 0x455   :  { %987 = vmatpush.msrb.mxu3 %v841_v18  ;;  %v633_v25 = vmul.f32 0.25, %v592_v28  ;;  %v843_v54 = vpop.f32.mrf.mxu0  ;;  %v746_v28 = vld [vmem:[%s6173_s6] sm:$0x3] }
 0x456   :  { %v844_v10 = vadd.f32 %v843_v54, %v4984_v23 }
 0x457   :  { %988 = vmatpush.msrb.mxu3 %v838_v5  ;;  %v637_v31 = vsel %vm562_vm14, %v633_v25, -inf }
 0x458   :  { %638 = vmax.xlane.f32.xlu1 %v637_v31  ;;  %v747_v31 = vperm.slane %v746_v28, 1 }
 0x45c   :  { %v595_v32 = vpop.f32.mrf.mxu2  ;;  %4030 = vmatmul.msk.f32.vlgmr.msra.gmra.mxu3 %vm40_vm0, %v4897_v12 }
 0x45d   :  { %v634_v33 = vmul.f32 0.25, %v595_v32  ;;  %v846_v61 = vpop.f32.mrf.mxu0 }
 0x45e   :  { %v847_v8 = vadd.f32 %v846_v61, %v4984_v23 }
 0x45f   :  { %v640_v34 = vsel %vm562_vm14, %v634_v33, -inf }
 0x460   :  { %641 = vmax.xlane.f32.xlu2 %v640_v34 }
 0x464   :  { %4031 = vmatmul.msk.f32.gmra.mxu3 %vm40_vm0, %v4907_v22 }
 0x46c   :  { %4032 = vmatmul.msk.f32.gmra.mxu3 %vm40_vm0, %v4917_v26 }
 0x474   :  { %4033 = vmatmul.msk.f32.gmra.mxu3 %vm40_vm0, %v4940_v42 }
 0x4cb   :  { %v639_v35 = vpop.xlane.xlu1 %638 }
 0x4cc   :  { %v649_v29 = vsub.f32 %v633_v25, %v639_v35 }
 0x4ce   :  { %v653_v36 = vmul.f32 1.442695, %v649_v29 }
 0x4cf   :  { %v627_v37 = vpop.f32.mrf.mxu3 }
 0x4d0   :  { %4344 = vpow2.f32 %v653_v36  ;;  %v635_v38 = vmul.f32 0.25, %v627_v37 }
 0x4d2   :  { %v643_v19 = vsel %vm562_vm14, %v635_v38, -inf }
 0x4d3   :  { %644 = vmax.xlane.f32.xlu2 %v643_v19  ;;  %v642_v30 = vpop.xlane.xlu2 %641 }
 0x4d4   :  { %v650_v39 = vsub.f32 %v634_v33, %v642_v30  ;;  %v740_v30 = vld [vmem:[%s6174_s7 + $0x8] sm:$0xff] }
 0x4d6   :  { %v4345_v40 = vpop.eup %4344  ;;  %v655_v41 = vmul.f32 1.442695, %v650_v39 }
 0x4d7   :  { %v661_v43 = vsel %vm562_vm14, %v4345_v40, 0.0  ;;  %v630_v44 = vpop.f32.mrf.mxu3 }
 0x4d8   :  { %4346 = vpow2.f32 %v655_v41  ;;  %662 = vadd.xlane.f32.xlu0 %v661_v43  ;;  %v636_v45 = vmul.f32 0.25, %v630_v44 }
 0x4da   :  { %v646_v48 = vsel %vm562_vm14, %v636_v45, -inf }
 0x4de   :  { %v4347_v46 = vpop.eup %4346 }
 0x4df   :  { %v664_v47 = vsel %vm562_vm14, %v4347_v46, 0.0 }
 0x4e0   :  { %665 = vadd.xlane.f32.xlu1 %v664_v47  ;;  %647 = vmax.xlane.f32.xlu0 %v646_v48 }
 0x546   :  { %v645_v53 = vpop.xlane.xlu2 %644 }
 0x547   :  { %v651_v55 = vsub.f32 %v635_v38, %v645_v53 }
 0x549   :  { %v657_v57 = vmul.f32 1.442695, %v651_v55 }
 0x54b   :  { %4348 = vpow2.f32 %v657_v57  ;;  %v663_v59 = vpop.xlane.xlu0 %662 }
 0x54c   :  { %4350 = vrcp.f32 %v663_v59 }
 0x551   :  { %v4349_v60 = vpop.eup %4348 }
 0x552   :  { %v4351_v63 = vpop.eup %4350  ;;  %v667_v2 = vsel %vm562_vm14, %v4349_v60, 0.0 }
 0x553   :  { %v666_v3 = vpop.xlane.xlu1 %665  ;;  %668 = vadd.xlane.f32.xlu1 %v667_v2  ;;  %v648_v6 = vpop.xlane.xlu0 %647  ;;  %v677_v7 = vmul.f32 %v4351_v63, %v4345_v40  ;;  %v739_v40 = vld [vmem:[%s6174_s7] sm:$0xff] }
 0x554   :  { %4352 = vrcp.f32 %v666_v3  ;;  %v652_v9 = vsub.f32 %v636_v45, %v648_v6 }
 0x555   :  { %4022 = vmatmul.msk.f32.vlgmr.msrb.gmra.mxu1 %vm562_vm14, %v677_v7 }
 0x556   :  { %v659_v4 = vmul.f32 1.442695, %v652_v9  ;;  %1016 = vmatpush.msrb.mxu1 %v847_v8 }
 0x558   :  { %4354 = vpow2.f32 %v659_v4  ;;  %1017 = vmatpush.msrb.mxu1 %v844_v10 }
 0x55a   :  { %v4353_v13 = vpop.eup %4352 }
 0x55b   :  { %v678_v15 = vmul.f32 %v4353_v13, %v4347_v46 }
 0x55d   :  { %4023 = vmatmul.msk.f32.gmra.mxu1 %vm562_vm14, %v678_v15 }
 0x55e   :  { %v4355_v58 = vpop.eup %4354 }
 0x55f   :  { %v670_v11 = vsel %vm562_vm14, %v4355_v58, 0.0 }
 0x560   :  { %671 = vadd.xlane.f32.xlu2 %v670_v11 }
 0x565   :  { %4039 = vmatmul.msk.f32.vlgmr.msra.gmra.mxu1 %vm40_vm0, %v4897_v12 }
 0x56d   :  { %4040 = vmatmul.msk.f32.gmra.mxu1 %vm40_vm0, %v4907_v22 }
 0x575   :  { %4041 = vmatmul.msk.f32.gmra.mxu1 %vm40_vm0, %v4917_v26  ;;  %v4038_v26 = vld [vmem:[%s6173_s6 + $0x2] sm:$0x3] }
 0x576   :  { %v783_v5 = vperm.slane %v4038_v26, 1 }
 0x57d   :  { %4042 = vmatmul.msk.f32.gmra.mxu1 %vm40_vm0, %v4940_v42  ;;  %v765_v42 = vpop.f32.mrf.mxu3 }
 0x57e   :  { %v766_v33 = vadd.f32 %v765_v42, %v747_v31 }
 0x585   :  { %v768_v35 = vpop.f32.mrf.mxu3 }
 0x586   :  { %v769_v29 = vadd.f32 %v768_v35, %v747_v31 }
 0x58d   :  { %v771_v38 = vpop.f32.mrf.mxu3 }
 0x58e   :  { %v772_v39 = vadd.f32 %v771_v38, %v747_v31 }
 0x595   :  { %v774_v41 = vpop.f32.mrf.mxu3 }
 0x596   :  { %v775_v43 = vadd.f32 %v774_v41, %v747_v31 }
 0x5c6   :  { %v669_v0 = vpop.xlane.xlu1 %668 }
 0x5c7   :  { %4356 = vrcp.f32 %v669_v0 }
 0x5cd   :  { %v4357_v16 = vpop.eup %4356 }
 0x5ce   :  { %v679_v21 = vmul.f32 %v4357_v16, %v4349_v60 }
 0x5d0   :  { %4024 = vmatmul.msk.f32.vlgmr.msra.gmra.mxu2 %vm562_vm14, %v679_v21 }
 0x5d2   :  { %v704_v20 = vpop.f32.mrf.mxu1 }
 0x5d3   :  { %v672_v23 = vpop.xlane.xlu2 %671 }
 0x5d4   :  { %4358 = vrcp.f32 %v672_v23 }
 0x5da   :  { %v4359_v24 = vpop.eup %4358  ;;  %v707_v12 = vpop.f32.mrf.mxu1 }
 0x5db   :  { %v680_v18 = vmul.f32 %v4359_v24, %v4355_v58 }
 0x5dd   :  { %4025 = vmatmul.msk.f32.gmra.mxu2 %vm562_vm14, %v680_v18 }
 0x5e2   :  { %v801_v22 = vpop.f32.mrf.mxu1 }
 0x5e3   :  { %v802_v32 = vadd.f32 %v801_v22, %v783_v5 }
 0x5ea   :  { %v804_v27 = vpop.f32.mrf.mxu1 }
 0x5eb   :  { %v805_v25 = vadd.f32 %v804_v27, %v783_v5 }
 0x5ed   :  { %4052 = vmatpush.xpose.msk.msrb.mxu2 %vm562_vm14, %v805_v25 }
 0x5f1   :  { %4053 = vmatpush.xpose.msk.msrb.mxu2 %vm562_vm14, %v802_v32 }
 0x5f2   :  { %v807_v34 = vpop.f32.mrf.mxu1 }
 0x5f3   :  { %v808_v19 = vadd.f32 %v807_v34, %v783_v5  ;;  %v4064_v34 = vld [vmem:[%s6174_s7 + $0x10] sm:$0xff] }
 0x5f4   :  { %4054 = vmatmul.msk.f32.vlgmr.msrb.gmra.mxu2 %vm562_vm14, %v766_v33 }
 0x5fa   :  { %v810_v36 = vpop.f32.mrf.mxu1 }
 0x5fb   :  { %v811_v37 = vadd.f32 %v810_v36, %v783_v5 }
 0x5fc   :  { %4055 = vmatmul.msk.f32.gmra.mxu2 %vm562_vm14, %v769_v29 }
 0x5fd   :  { %4056 = vmatpush.xpose.msk.msra.mxu2 %vm562_vm14, %v811_v37 }
 0x601   :  { %4057 = vmatpush.xpose.msk.msra.mxu2 %vm562_vm14, %v808_v19 }
 0x604   :  { %4058 = vmatmul.msk.f32.vlgmr.msra.gmra.mxu2 %vm562_vm14, %v772_v39  ;;  %v5083_v39 = vld [vmem:[%s6168_s1] sm:$0xff] }
 0x605   :  { %1095 = vmatpush.msrb.mxu2 %v740_v30 }
 0x607   :  { %1096 = vmatpush.msrb.mxu2 %v739_v40  ;;  %v1114_v40 = vperm.slane %v5083_v39, 5 }
 0x60c   :  { %4059 = vmatmul.msk.f32.gmra.mxu2 %vm562_vm14, %v775_v43 }
 0x614   :  { %4070 = vmatmul.msk.f32.vlgmr.msrb.gmra.mxu2 %vm562_vm14, %v704_v20 }
 0x61c   :  { %4071 = vmatmul.msk.f32.gmra.mxu2 %vm562_vm14, %v707_v12  ;;  %v4065_v12 = vld [vmem:[%s6174_s7 + $0x18] sm:$0xff] }
 0x61d   :  { %1054 = vmatpush.msrb.mxu0 %v4065_v12  ;;  %v1220_v12 = vld [vmem:[%s6175_s8 + $0x18] sm:$0xff] }
 0x61e   :  { %1246 = vmatpush.msra.mxu3 %v1220_v12 }
 0x61f   :  { %1055 = vmatpush.msrb.mxu0 %v4064_v34 }
 0x653   :  { %v733_v44 = vpop.f32.mrf.mxu2 }
 0x654   :  { %4072 = vmatmul.msk.f32.gmra.mxu2 %vm562_vm14, %v733_v44 }
 0x660   :  { %v736_v45 = vpop.f32.mrf.mxu2 }
 0x661   :  { %4073 = vmatmul.msk.f32.gmra.mxu2 %vm562_vm14, %v736_v45 }
 0x677   :  { %v878_v46 = vpop.f32.mrf.mxu2 }
 0x678   :  { %v919_v47 = vmul.f32 0.25, %v878_v46 }
 0x67a   :  { %v923_v48 = vsel %vm562_vm14, %v919_v47, -inf }
 0x67b   :  { %924 = vmax.xlane.f32.xlu0 %v923_v48 }
 0x67f   :  { %v881_v49 = vpop.f32.mrf.mxu2 }
 0x680   :  { %v920_v50 = vmul.f32 0.25, %v881_v49 }
 0x682   :  { %v926_v51 = vsel %vm562_vm14, %v920_v50, -inf }
 0x683   :  { %927 = vmax.xlane.f32.xlu1 %v926_v51 }
 0x687   :  { %v913_v52 = vpop.f32.mrf.mxu2 }
 0x688   :  { %v921_v53 = vmul.f32 0.25, %v913_v52 }
 0x68a   :  { %v929_v54 = vsel %vm562_vm14, %v921_v53, -inf }
 0x68b   :  { %930 = vmax.xlane.f32.xlu2 %v929_v54 }
 0x68f   :  { %v916_v55 = vpop.f32.mrf.mxu2 }
 0x690   :  { %v922_v57 = vmul.f32 0.25, %v916_v55 }
 0x692   :  { %v932_v59 = vsel %vm562_vm14, %v922_v57, -inf }
 0x693   :  { %933 = vmax.xlane.f32.xlu0 %v932_v59 }
 0x697   :  { %v1098_v38 = vpop.f32.mrf.mxu2 }
 0x69f   :  { %v1101_v45 = vpop.f32.mrf.mxu2 }
 0x6d7   :  { %v1104_v51 = vpop.f32.mrf.mxu2 }
 0x6ee   :  { %v925_v60 = vpop.xlane.xlu0 %924 }
 0x6ef   :  { %v935_v61 = vsub.f32 %v919_v47, %v925_v60 }
 0x6f1   :  { %v939_v63 = vmul.f32 1.442695, %v935_v61 }
 0x6f3   :  { %4360 = vpow2.f32 %v939_v63 }
 0x6f6   :  { %v928_v2 = vpop.xlane.xlu1 %927 }
 0x6f7   :  { %v936_v3 = vsub.f32 %v920_v50, %v928_v2 }
 0x6f9   :  { %v4361_v6 = vpop.eup %4360  ;;  %v941_v7 = vmul.f32 1.442695, %v936_v3 }
 0x6fa   :  { %v947_v8 = vsel %vm562_vm14, %v4361_v6, 0.0 }
 0x6fb   :  { %4362 = vpow2.f32 %v941_v7  ;;  %948 = vadd.xlane.f32.xlu1 %v947_v8 }
 0x6fe   :  { %v931_v9 = vpop.xlane.xlu2 %930 }
 0x6ff   :  { %v937_v10 = vsub.f32 %v921_v53, %v931_v9 }
 0x701   :  { %v4363_v4 = vpop.eup %4362  ;;  %v943_v13 = vmul.f32 1.442695, %v937_v10 }
 0x702   :  { %v950_v15 = vsel %vm562_vm14, %v4363_v4, 0.0 }
 0x703   :  { %4364 = vpow2.f32 %v943_v13  ;;  %951 = vadd.xlane.f32.xlu2 %v950_v15 }
 0x706   :  { %v934_v58 = vpop.xlane.xlu0 %933 }
 0x707   :  { %v938_v11 = vsub.f32 %v922_v57, %v934_v58  ;;  %v1107_v57 = vpop.f32.mrf.mxu2 }
 0x709   :  { %v4365_v0 = vpop.eup %4364  ;;  %v945_v16 = vmul.f32 1.442695, %v938_v11 }
 0x70a   :  { %v953_v21 = vsel %vm562_vm14, %v4365_v0, 0.0 }
 0x70b   :  { %4366 = vpow2.f32 %v945_v16  ;;  %954 = vadd.xlane.f32.xlu0 %v953_v21 }
 0x711   :  { %v4367_v20 = vpop.eup %4366 }
 0x712   :  { %v956_v23 = vsel %vm562_vm14, %v4367_v20, 0.0 }
 0x713   :  { %957 = vadd.xlane.f32.xlu1 %v956_v23 }
 0x76e   :  { %v949_v24 = vpop.xlane.xlu1 %948 }
 0x76f   :  { %4368 = vrcp.f32 %v949_v24 }
 0x775   :  { %v4369_v18 = vpop.eup %4368 }
 0x776   :  { %v963_v22 = vmul.f32 %v4369_v18, %v4361_v6  ;;  %v952_v26 = vpop.xlane.xlu2 %951  ;;  %v4081_v18 = vld [vmem:[%s6175_s8 + $0x38] sm:$0xff] }
 0x777   :  { %4370 = vrcp.f32 %v952_v26  ;;  %1281 = vmatpush.msra.mxu1 %v4081_v18  ;;  %v4080_v26 = vld [vmem:[%s6175_s8 + $0x30] sm:$0xff] }
 0x778   :  { %4060 = vmatmul.msk.f32.vlgmr.msrb.gmra.mxu3 %vm562_vm14, %v963_v22  ;;  %v1219_v22 = vld [vmem:[%s6175_s8 + $0x10] sm:$0xff] }
 0x779   :  { %1247 = vmatpush.msra.mxu3 %v1219_v22  ;;  %1282 = vmatpush.msra.mxu1 %v4080_v26 }
 0x77d   :  { %v4371_v42 = vpop.eup %4370 }
 0x77e   :  { %v955_v5 = vpop.xlane.xlu0 %954  ;;  %v964_v27 = vmul.f32 %v4371_v42, %v4363_v4  ;;  %v1218_v42 = vld [vmem:[%s6175_s8 + $0x8] sm:$0xff] }
 0x77f   :  { %4372 = vrcp.f32 %v955_v5  ;;  %v4079_v5 = vld [vmem:[%s6175_s8 + $0x28] sm:$0xff]  ;;  %1248 = vmatpush.msra.mxu3 %v1218_v42 }
 0x780   :  { %4061 = vmatmul.msk.f32.gmra.mxu3 %vm562_vm14, %v964_v27  ;;  %1283 = vmatpush.msra.mxu1 %v4079_v5  ;;  %v1217_v27 = vld [vmem:[%s6175_s8] sm:$0xff]  ;;  %v5183_v5 = vld [vmem:[%s6168_s1 + $0x8] sm:$0xff] }
 0x781   :  { %1249 = vmatpush.msra.mxu3 %v1217_v27 }
 0x785   :  { %v4373_v28 = vpop.eup %4372 }
 0x786   :  { %v965_v25 = vmul.f32 %v4373_v28, %v4365_v0  ;;  %v958_v31 = vpop.xlane.xlu1 %957  ;;  %v4078_v28 = vld [vmem:[%s6175_s8 + $0x20] sm:$0xff] }
 0x787   :  { %4374 = vrcp.f32 %v958_v31  ;;  %1284 = vmatpush.msra.mxu1 %v4078_v28 }
 0x788   :  { %4062 = vmatmul.msk.f32.vlgmr.msrb.gmra.mxu1 %vm562_vm14, %v965_v25 }
 0x78d   :  { %v4375_v32 = vpop.eup %4374 }
 0x78e   :  { %v966_v33 = vmul.f32 %v4375_v32, %v4367_v20 }
 0x790   :  { %4063 = vmatmul.msk.f32.gmra.mxu1 %vm562_vm14, %v966_v33 }
 0x7fb   :  { %v990_v35 = vpop.f32.mrf.mxu3 }
 0x7fc   :  { %4066 = vmatmul.msk.f32.vlgmr.msrb.gmra.mxu0 %vm562_vm14, %v990_v35 }
 0x803   :  { %v993_v29 = vpop.f32.mrf.mxu3 }
 0x804   :  { %4067 = vmatmul.msk.f32.gmra.mxu0 %vm562_vm14, %v993_v29 }
 0x805   :  { %v1019_v36 = vpop.f32.mrf.mxu1 }
 0x80c   :  { %4068 = vmatmul.msk.f32.gmra.mxu0 %vm562_vm14, %v1019_v36 }
 0x80d   :  { %v1022_v37 = vpop.f32.mrf.mxu1 }
 0x814   :  { %4069 = vmatmul.msk.f32.gmra.mxu0 %vm562_vm14, %v1022_v37 }
 0x879   :  { %v1057_v19 = vpop.f32.mrf.mxu0 }
 0x87a   :  { %v1099_v30 = vadd.f32 %v1098_v38, %v1057_v19 }
 0x87c   :  { %v1110_v41 = vadd.f32 %v1099_v30, %v4805_v56 }
 0x87e   :  { %v5087_v43 = vadd.f32 %v1114_v40, %v1110_v41 }
 0x880   :  { %v1119_v44 = vsel %vm40_vm0, %v5087_v43, 0.0 }
 0x881   :  { %v1060_v46 = vpop.f32.mrf.mxu0  ;;  %1120 = vadd.xlane.f32.xlu2 %v1119_v44 }
 0x882   :  { %v1102_v47 = vadd.f32 %v1101_v45, %v1060_v46 }
 0x884   :  { %v1111_v48 = vadd.f32 %v1102_v47, %v4810_v62  ;;  %v1207_v47 = vperm.slane %v5083_v39, 6 }
 0x886   :  { %v5092_v49 = vadd.f32 %v1114_v40, %v1111_v48 }
 0x888   :  { %v1122_v50 = vsel %vm40_vm0, %v5092_v49, 0.0 }
 0x889   :  { %1123 = vadd.xlane.f32.xlu0 %v1122_v50  ;;  %v1063_v52 = vpop.f32.mrf.mxu0 }
 0x88a   :  { %v1105_v56 = vadd.f32 %v1104_v51, %v1063_v52  ;;  %v1212_v52 = vperm.slane %v5083_v39, 7 }
 0x88c   :  { %v1112_v53 = vadd.f32 %v1105_v56, %v4815_v1 }
 0x88e   :  { %v5097_v54 = vadd.f32 %v1114_v40, %v1112_v53 }
 0x890   :  { %v1125_v55 = vsel %vm40_vm0, %v5097_v54, 0.0 }
 0x891   :  { %1126 = vadd.xlane.f32.xlu1 %v1125_v55  ;;  %v1066_v59 = vpop.f32.mrf.mxu0 }
 0x892   :  { %v1108_v62 = vadd.f32 %v1107_v57, %v1066_v59 }
 0x894   :  { %v1113_v60 = vadd.f32 %v1108_v62, %v4828_v17 }
 0x896   :  { %v5102_v61 = vadd.f32 %v1114_v40, %v1113_v60 }
 0x898   :  { %v1128_v63 = vsel %vm40_vm0, %v5102_v61, 0.0 }
 0x899   :  { %1129 = vadd.xlane.f32.xlu2 %v1128_v63 }
 0x8f4   :  { %v1121_v2 = vpop.xlane.xlu2 %1120 }
 0x8f5   :  { %v1131_v1 = vmul.f32 %v1121_v2, %v4702_v14 }
 0x8f7   :  { %v5108_v3 = vsub.f32 %v5087_v43, %v1131_v1 }
 0x8f9   :  { %v1139_v6 = vmul.f32 %v5108_v3, %v5108_v3 }
 0x8fb   :  { %v1143_v7 = vsel %vm40_vm0, %v1139_v6, 0.0 }
 0x8fc   :  { %1144 = vadd.xlane.f32.xlu0 %v1143_v7  ;;  %v1124_v8 = vpop.xlane.xlu0 %1123 }
 0x8fd   :  { %v1132_v17 = vmul.f32 %v1124_v8, %v4702_v14 }
 0x8ff   :  { %v5115_v9 = vsub.f32 %v5092_v49, %v1132_v17 }
 0x901   :  { %v1140_v10 = vmul.f32 %v5115_v9, %v5115_v9 }
 0x903   :  { %v1146_v4 = vsel %vm40_vm0, %v1140_v10, 0.0 }
 0x904   :  { %v1127_v13 = vpop.xlane.xlu1 %1126  ;;  %1147 = vadd.xlane.f32.xlu1 %v1146_v4 }
 0x905   :  { %v1133_v15 = vmul.f32 %v1127_v13, %v4702_v14 }
 0x907   :  { %v5122_v58 = vsub.f32 %v5097_v54, %v1133_v15 }
 0x909   :  { %v1141_v11 = vmul.f32 %v5122_v58, %v5122_v58 }
 0x90b   :  { %v1149_v0 = vsel %vm40_vm0, %v1141_v11, 0.0 }
 0x90c   :  { %1150 = vadd.xlane.f32.xlu2 %v1149_v0  ;;  %v1130_v16 = vpop.xlane.xlu2 %1129 }
 0x90d   :  { %v1134_v21 = vmul.f32 %v1130_v16, %v4702_v14 }
 0x90f   :  { %v5129_v20 = vsub.f32 %v5102_v61, %v1134_v21 }
 0x911   :  { %v1142_v23 = vmul.f32 %v5129_v20, %v5129_v20 }
 0x913   :  { %v1152_v24 = vsel %vm40_vm0, %v1142_v23, 0.0 }
 0x914   :  { %1153 = vadd.xlane.f32.xlu0 %v1152_v24 }
 0x96f   :  { %v1145_v25 = vpop.xlane.xlu0 %1144 }
 0x970   :  { %v1155_v31 = vmul.f32 %v1145_v25, %v4702_v14 }
 0x972   :  { %v1159_v32 = vadd.f32 1e-05, %v1155_v31 }
 0x974   :  { %4376 = vrsqrt.f32 %v1159_v32  ;;  %vm1169_vm1 = vweird.f32 %v1159_v32 }
 0x977   :  { %v1148_v33 = vpop.xlane.xlu1 %1147 }
 0x978   :  { %v1156_v34 = vmul.f32 %v1148_v33, %v4702_v14 }
 0x97a   :  { %v4377_v35 = vpop.eup %4376  ;;  %v1160_v29 = vadd.f32 1e-05, %v1156_v34 }
 0x97b   :  { %v1164_v36 = vmul.f32 %v4377_v35, %v1159_v32  ;;  %vm1170_vm15 = vweird.f32 %v4377_v35 }
 0x97c   :  { %4378 = vrsqrt.f32 %v1160_v29  ;;  %vm1171_vm2 = vmor %vm1169_vm1, %vm1170_vm15  ;;  %vm1179_vm5 = vweird.f32 %v1160_v29 }
 0x97d   :  { %v1165_v37 = vmul.f32 %v4377_v35, %v1164_v36 }
 0x97f   :  { %v1166_v38 = vmul.f32 0.5, %v1165_v37  ;;  %v1151_v19 = vpop.xlane.xlu2 %1150 }
 0x980   :  { %v1157_v30 = vmul.f32 %v1151_v19, %v4702_v14 }
 0x981   :  { %v1167_v40 = vsub.f32 1.5, %v1166_v38 }
 0x982   :  { %v4379_v41 = vpop.eup %4378  ;;  %v1161_v44 = vadd.f32 1e-05, %v1157_v30 }
 0x983   :  { %v1168_v45 = vmul.f32 %v4377_v35, %v1167_v40  ;;  %v1174_v46 = vmul.f32 %v4379_v41, %v1160_v29  ;;  %vm1180_vm4 = vweird.f32 %v4379_v41 }
 0x984   :  { %4380 = vrsqrt.f32 %v1161_v44  ;;  %vm1181_vm6 = vmor %vm1179_vm5, %vm1180_vm4  ;;  %vm1189_vm8 = vweird.f32 %v1161_v44 }
 0x985   :  { %v1172_v48 = vsel %vm1171_vm2, %v4377_v35, %v1168_v45  ;;  %v1175_v50 = vmul.f32 %v4379_v41, %v1174_v46  ;;  %v5187_v45 = vperm.slane %v5183_v5, 0 }
 0x986   :  { %v1203_v51 = vmul.f32 %v1172_v48, %v5108_v3 }
 0x987   :  { %v1176_v56 = vmul.f32 0.5, %v1175_v50  ;;  %v1154_v53 = vpop.xlane.xlu0 %1153 }
 0x988   :  { %v1208_v55 = vmul.f32 %v1207_v47, %v1203_v51  ;;  %v1158_v57 = vmul.f32 %v1154_v53, %v4702_v14 }
 0x989   :  { %v1177_v59 = vsub.f32 1.5, %v1176_v56  ;;  %v4096_v56 = vld [vmem:[%s6175_s8 + $0x50] sm:$0xff] }
 0x98a   :  { %v4381_v62 = vpop.eup %4380  ;;  %v1162_v60 = vadd.f32 1e-05, %v1158_v57  ;;  %v1213_v63 = vadd.f32 %v1212_v52, %v1208_v55 }
 0x98b   :  { %v1178_v2 = vmul.f32 %v4379_v41, %v1177_v59  ;;  %v1184_v1 = vmul.f32 %v4381_v62, %v1161_v44  ;;  %vm1190_vm7 = vweird.f32 %v4381_v62  ;;  %v4095_v59 = vld [vmem:[%s6175_s8 + $0x48] sm:$0xff] }
 0x98c   :  { %4382 = vrsqrt.f32 %v1162_v60  ;;  %4074 = vmatmul.msk.f32.vlgmr.msra.gmra.mxu3 %vm40_vm0, %v1213_v63  ;;  %4082 = vmatmul.msk.f32.vlgmr.msra.gmra.mxu1 %vm40_vm0, %v1213_v63  ;;  %vm1191_vm9 = vmor %vm1189_vm8, %vm1190_vm7  ;;  %vm1199_vm11 = vweird.f32 %v1162_v60 }
 0x98d   :  { %v1182_v39 = vsel %vm1181_vm6, %v4379_v41, %v1178_v2  ;;  %v1185_v3 = vmul.f32 %v4381_v62, %v1184_v1 }
 0x98e   :  { %v1204_v6 = vmul.f32 %v1182_v39, %v5115_v9 }
 0x98f   :  { %v1186_v7 = vmul.f32 0.5, %v1185_v3 }
 0x990   :  { %v1209_v8 = vmul.f32 %v1207_v47, %v1204_v6  ;;  %v4094_v6 = vld [vmem:[%s6175_s8 + $0x40] sm:$0xff] }
 0x991   :  { %v1187_v17 = vsub.f32 1.5, %v1186_v7 }
 0x992   :  { %v4383_v10 = vpop.eup %4382  ;;  %v1214_v4 = vadd.f32 %v1212_v52, %v1209_v8 }
 0x993   :  { %v1188_v13 = vmul.f32 %v4381_v62, %v1187_v17  ;;  %v1194_v15 = vmul.f32 %v4383_v10, %v1162_v60  ;;  %vm1200_vm10 = vweird.f32 %v4383_v10 }
 0x994   :  { %4075 = vmatmul.msk.f32.gmra.mxu3 %vm40_vm0, %v1214_v4  ;;  %4083 = vmatmul.msk.f32.gmra.mxu1 %vm40_vm0, %v1214_v4  ;;  %vm1201_vm12 = vmor %vm1199_vm11, %vm1200_vm10 }
 0x995   :  { %v1192_v11 = vsel %vm1191_vm9, %v4381_v62, %v1188_v13  ;;  %v1195_v0 = vmul.f32 %v4383_v10, %v1194_v15  ;;  %v52_v15 = vld [vmem:[%s6176_s9] sm:$0x7f] }
 0x996   :  { %v1205_v16 = vmul.f32 %v1192_v11, %v5122_v58  ;;  %v4615_v58 = vmov 0.0  }
 0x997   :  { %v1196_v21 = vmul.f32 0.5, %v1195_v0  ;;  %41 = vst.msk [vmem:[#allocation2] sm:$0xff] %vm40_vm0, %v4615_v58 }
 0x998   :  { %v1210_v9 = vmul.f32 %v1207_v47, %v1205_v16  ;;  %42 = vst.msk [vmem:[#allocation2 + $0x8] sm:$0xff] %vm40_vm0, %v4615_v58 }
 0x999   :  { %v1197_v23 = vsub.f32 1.5, %v1196_v21  ;;  %45 = vst.msk [vmem:[#allocation2 + $0x18] sm:$0xff] %vm40_vm0, %v4615_v58 }
 0x99a   :  { %v1215_v24 = vadd.f32 %v1212_v52, %v1210_v9  ;;  %46 = vst.msk [vmem:[#allocation2 + $0x20] sm:$0xff] %vm40_vm0, %v4615_v58 }
 0x99b   :  { %v1198_v12 = vmul.f32 %v4383_v10, %v1197_v23  ;;  %44 = vst.msk [vmem:[#allocation2 + $0x10] sm:$0x3f] %vm43_vm13, %v4615_v58  ;;  %v5211_v23 = vperm.slane %v52_v15, 0 }
 0x99c   :  { %4076 = vmatmul.msk.f32.gmra.mxu3 %vm40_vm0, %v1215_v24  ;;  %4084 = vmatmul.msk.f32.gmra.mxu1 %vm40_vm0, %v1215_v24  ;;  %47 = vst.msk [vmem:[#allocation2 + $0x28] sm:$0x3f] %vm43_vm13, %v4615_v58  ;;  %v5213_v24 = vperm.slane %v52_v15, 1 }
 0x99d   :  { %v1202_v18 = vsel %vm1201_vm12, %v4383_v10, %v1198_v12 }
 0x99e   :  { %v1206_v22 = vmul.f32 %v1202_v18, %v5129_v20  ;;  %v1268_v20 = vperm.slane %v5183_v5, 1 }
 0x9a0   :  { %v1211_v26 = vmul.f32 %v1207_v47, %v1206_v22 }
 0x9a2   :  { %v1216_v42 = vadd.f32 %v1212_v52, %v1211_v26  ;;  %v4097_v52 = vld [vmem:[%s6175_s8 + $0x58] sm:$0xff] }
 0x9a3   :  { %1598 = vmatpush.msra.mxu0 %v4097_v52  ;;  %4301 = vmatpush.msra.mxu2 %v4097_v52 }
 0x9a4   :  { %4077 = vmatmul.msk.f32.gmra.mxu3 %vm40_vm0, %v1216_v42  ;;  %4085 = vmatmul.msk.f32.gmra.mxu1 %vm40_vm0, %v1216_v42 }
 0x9a5   :  { %1599 = vmatpush.msra.mxu0 %v4096_v56  ;;  %4302 = vmatpush.msra.mxu2 %v4096_v56 }
 0x9a7   :  { %1600 = vmatpush.msra.mxu0 %v4095_v59  ;;  %4303 = vmatpush.msra.mxu2 %v4095_v59 }
 0x9a9   :  { %1601 = vmatpush.msra.mxu0 %v4094_v6  ;;  %4304 = vmatpush.msra.mxu2 %v4094_v6 }
 0xa09   :  { %v1286_v27 = vpop.f32.mrf.mxu1 }
 0xa0a   :  { %v1287_v28 = vadd.f32 %v1286_v27, %v1268_v20  ;;  %v5218_v27 = vperm.slane %v52_v15, 2 }
 0xa0c   :  { %v4086_v25 = vmul.f32 -1.442695, %v1287_v28 }
 0xa0e   :  { %4384 = vpow2.f32 %v4086_v25 }
 0xa0f   :  { %v1251_v38 = vpop.f32.mrf.mxu3 }
 0xa10   :  { %v1252_v60 = vadd.f32 %v1251_v38, %v5187_v45 }
 0xa11   :  { %v1289_v31 = vpop.f32.mrf.mxu1 }
 0xa12   :  { %v1290_v32 = vadd.f32 %v1289_v31, %v1268_v20 }
 0xa14   :  { %v4385_v33 = vpop.eup %4384  ;;  %v4087_v34 = vmul.f32 -1.442695, %v1290_v32 }
 0xa15   :  { %v1310_v35 = vadd.f32 1.0, %v4385_v33 }
 0xa16   :  { %4386 = vpow2.f32 %v4087_v34 }
 0xa17   :  { %4388 = vrcp.f32 %v1310_v35  ;;  %v1325_v46 = vand.u32 2147483648, %v1310_v35  ;;  %v1323_v50 = vand.u32 2147483647, %v1310_v35  ;;  %vm1319_vm1 = vweird.f32 %v1310_v35  ;;  %v1254_v39 = vpop.f32.mrf.mxu3 }
 0xa18   :  { %v1255_v12 = vadd.f32 %v1254_v39, %v5187_v45 }
 0xa19   :  { %v1292_v29 = vpop.f32.mrf.mxu1  ;;  %v1326_v63 = vor.u32 1.1754944e-38, %v1325_v46  ;;  %vm1324_vm4 = vcmp.eq.f32.partialorder %v1323_v50, 8.507059e+37  ;;  %v5230_v46 = vperm.slane %v52_v15, 4 }
 0xa1a   :  { %v1293_v36 = vadd.f32 %v1292_v29, %v1268_v20 }
 0xa1c   :  { %v4387_v37 = vpop.eup %4386  ;;  %v4088_v19 = vmul.f32 -1.442695, %v1293_v36  ;;  %v5225_v36 = vperm.slane %v52_v15, 3 }
 0xa1d   :  { %v4389_v30 = vpop.eup %4388  ;;  %v1311_v40 = vadd.f32 1.0, %v4387_v37 }
 0xa1e   :  { %v1315_v41 = vmul.f32 %v4389_v30, %v1310_v35  ;;  %4390 = vpow2.f32 %v4088_v19  ;;  %vm1320_vm15 = vweird.f32 %v4389_v30 }
 0xa1f   :  { %4392 = vrcp.f32 %v1311_v40  ;;  %vm1321_vm2 = vmor %vm1319_vm1, %vm1320_vm15  ;;  %v1340_v10 = vand.u32 2147483648, %v1311_v40  ;;  %v1338_v13 = vand.u32 2147483647, %v1311_v40  ;;  %vm1334_vm6 = vweird.f32 %v1311_v40  ;;  %v1257_v58 = vpop.f32.mrf.mxu3 }
 0xa20   :  { %v1316_v44 = vsub.f32 1.0, %v1315_v41 }
 0xa21   :  { %v1295_v47 = vpop.f32.mrf.mxu1  ;;  %v1341_v21 = vor.u32 1.1754944e-38, %v1340_v10  ;;  %vm1339_vm8 = vcmp.eq.f32.partialorder %v1338_v13, 8.507059e+37  ;;  %v5243_v10 = vperm.slane %v5183_v5, 2 }
 0xa22   :  { %v1317_v48 = vmul.f32 %v4389_v30, %v1316_v44  ;;  %v1296_v51 = vadd.f32 %v1295_v47, %v1268_v20 }
 0xa24   :  { %v4391_v53 = vpop.eup %4390  ;;  %v1318_v55 = vadd.f32 %v4389_v30, %v1317_v48  ;;  %v4089_v57 = vmul.f32 -1.442695, %v1296_v51 }
 0xa25   :  { %v4393_v62 = vpop.eup %4392  ;;  %v5199_v2 = vadd.f32 1.0, %v4391_v53 }
 0xa26   :  { %v1322_v1 = vsel %vm1321_vm2, %v4389_v30, %v1318_v55  ;;  %v1330_v3 = vmul.f32 %v4393_v62, %v1311_v40  ;;  %4394 = vpow2.f32 %v4089_v57  ;;  %vm1335_vm5 = vweird.f32 %v4393_v62 }
 0xa27   :  { %v1327_v7 = vsel %vm1324_vm4, %v1326_v63, %v1322_v1  ;;  %4396 = vrcp.f32 %v5199_v2  ;;  %vm1336_vm7 = vmor %vm1334_vm6, %vm1335_vm5  ;;  %v1353_v28 = vand.u32 2147483647, %v5199_v2  ;;  %v1355_v25 = vand.u32 2147483648, %v5199_v2 }
 0xa28   :  { %v1374_v8 = vmul.f32 %v1327_v7, %v1252_v60  ;;  %v1331_v17 = vsub.f32 1.0, %v1330_v3  ;;  %vm1349_vm10 = vweird.f32 %v5199_v2  ;;  %v1258_v40 = vadd.f32 %v1257_v58, %v5187_v45 }
 0xa29   :  { %v1356_v41 = vor.u32 1.1754944e-38, %v1355_v25  ;;  %vm1354_vm12 = vcmp.eq.f32.partialorder %v1353_v28, 8.507059e+37  ;;  %v5234_v55 = vperm.slane %v52_v15, 5  ;;  %v5238_v63 = vperm.slane %v52_v15, 6 }
 0xa2a   :  { %1378 = vst.msk [vmem:[#allocation2 + $0x3] sm:$0xff] %vm40_vm0, %v1374_v8  ;;  %v1332_v4 = vmul.f32 %v4393_v62, %v1331_v17 }
 0xa2c   :  { %v4395_v11 = vpop.eup %4394  ;;  %v1333_v0 = vadd.f32 %v4393_v62, %v1332_v4 }
 0xa2d   :  { %v4397_v16 = vpop.eup %4396  ;;  %v5209_v9 = vadd.f32 1.0, %v4395_v11 }
 0xa2e   :  { %v1337_v18 = vsel %vm1336_vm7, %v4393_v62, %v1333_v0  ;;  %v1345_v22 = vmul.f32 %v4397_v16, %v5199_v2  ;;  %vm1350_vm9 = vweird.f32 %v4397_v16  ;;  %v1260_v2 = vpop.f32.mrf.mxu3 }
 0xa2f   :  { %v1342_v26 = vsel %vm1339_vm8, %v1341_v21, %v1337_v18  ;;  %4398 = vrcp.f32 %v5209_v9  ;;  %vm1351_vm11 = vmor %vm1349_vm10, %vm1350_vm9  ;;  %v1368_v57 = vand.u32 2147483647, %v5209_v9  ;;  %v1370_v59 = vand.u32 2147483648, %v5209_v9 }
 0xa30   :  { %v1375_v42 = vmul.f32 %v1342_v26, %v1255_v12  ;;  %v1346_v20 = vsub.f32 1.0, %v1345_v22  ;;  %vm1364_vm15 = vweird.f32 %v5209_v9  ;;  %v1261_v21 = vadd.f32 %v1260_v2, %v5187_v45 }
 0xa31   :  { %v1382_v31 = vld [vmem:[#allocation2] sm:$0xff]  ;;  %v1371_v12 = vor.u32 1.1754944e-38, %v1370_v59  ;;  %vm1369_vm2 = vcmp.eq.f32.partialorder %v1368_v57, 8.507059e+37  ;;  %v5255_v45 = vperm.slane %v5183_v5, 3 }
 0xa32   :  { %v1395_v32 = vld [vmem:[#allocation2 + $0x1] sm:$0xff]  ;;  %1379 = vst.msk [vmem:[#allocation2 + $0xb] sm:$0xff] %vm40_vm0, %v1375_v42  ;;  %v1347_v34 = vmul.f32 %v4397_v16, %v1346_v20  ;;  %v1387_v35 = vmul.f32 %v5211_v23, %v1382_v31 }
 0xa33   :  { %v1408_v33 = vld [vmem:[#allocation2 + $0x2] sm:$0xff]  ;;  %v1400_v29 = vmul.f32 %v5213_v24, %v1395_v32 }
 0xa34   :  { %v1348_v37 = vadd.f32 %v4397_v16, %v1347_v34  ;;  %v1413_v19 = vmul.f32 %v5218_v27, %v1408_v33  ;;  %v1421_v44 = vld [vmem:[#allocation2 + $0x3] sm:$0xff] }
 0xa35   :  { %v1404_v38 = vadd.f32 %v1400_v29, %v1387_v35  ;;  %v4399_v30 = vpop.eup %4398  ;;  %v1426_v53 = vmul.f32 %v5225_v36, %v1421_v44 }
 0xa36   :  { %v1352_v47 = vsel %vm1351_vm11, %v4397_v16, %v1348_v37  ;;  %v1360_v48 = vmul.f32 %v4399_v30, %v5209_v9  ;;  %vm1365_vm13 = vweird.f32 %v4399_v30 }
 0xa37   :  { %v1417_v50 = vadd.f32 %v1413_v19, %v1404_v38  ;;  %v1357_v51 = vsel %vm1354_vm12, %v1356_v41, %v1352_v47  ;;  %vm1366_vm1 = vmor %vm1364_vm15, %vm1365_vm13 }
 0xa38   :  { %v1376_v52 = vmul.f32 %v1357_v51, %v1258_v40  ;;  %v1361_v56 = vsub.f32 1.0, %v1360_v48 }
 0xa39   :  { %v1434_v62 = vld [vmem:[#allocation2 + $0x4] sm:$0xff]  ;;  %v1430_v39 = vadd.f32 %v1426_v53, %v1417_v50  ;;  %v1435_v20 = vld [vmem:[#allocation2 + $0xc] sm:$0xff] }
 0xa3a   :  { %v1447_v60 = vld [vmem:[#allocation2 + $0x5] sm:$0xff]  ;;  %1380 = vst.msk [vmem:[#allocation2 + $0x1b] sm:$0xff] %vm40_vm0, %v1376_v52  ;;  %v1362_v1 = vmul.f32 %v4399_v30, %v1361_v56  ;;  %v1439_v3 = vmul.f32 %v5230_v46, %v1434_v62  ;;  %v1448_v33 = vld [vmem:[#allocation2 + $0xd] sm:$0xff]  ;;  %v1440_v35 = vmul.f32 %v5230_v46, %v1435_v20 }
 0xa3b   :  { %v1383_v6 = vld [vmem:[#allocation2 + $0x8] sm:$0xff]  ;;  %v1452_v0 = vmul.f32 %v5234_v55, %v1447_v60  ;;  %v1453_v48 = vmul.f32 %v5234_v55, %v1448_v33 }
 0xa3c   :  { %v1396_v7 = vld [vmem:[#allocation2 + $0x9] sm:$0xff]  ;;  %v1388_v4 = vmul.f32 %v5211_v23, %v1383_v6  ;;  %v1363_v15 = vadd.f32 %v4399_v30, %v1362_v1  ;;  %v1443_v11 = vadd.f32 %v1439_v3, %v1430_v39 }
 0xa3d   :  { %v1409_v8 = vld [vmem:[#allocation2 + $0xa] sm:$0xff]  ;;  %v1401_v13 = vmul.f32 %v5213_v24, %v1396_v7 }
 0xa3e   :  { %v1460_v17 = vld [vmem:[#allocation2 + $0x6] sm:$0xff]  ;;  %v1414_v22 = vmul.f32 %v5218_v27, %v1409_v8  ;;  %v1367_v26 = vsel %vm1366_vm1, %v4399_v30, %v1363_v15  ;;  %v1456_v42 = vadd.f32 %v1452_v0, %v1443_v11  ;;  %v5261_v30 = vperm.slane %v5183_v5, 4  ;;  %v1461_v40 = vld [vmem:[#allocation2 + $0xe] sm:$0xff] }
 0xa3f   :  { %v1422_v16 = vld [vmem:[#allocation2 + $0xb] sm:$0xff]  ;;  %v1405_v18 = vadd.f32 %v1401_v13, %v1388_v4  ;;  %v1465_v58 = vmul.f32 %v5238_v63, %v1460_v17  ;;  %v1372_v28 = vsel %vm1369_vm2, %v1371_v12, %v1367_v26  ;;  %v1466_v53 = vmul.f32 %v5238_v63, %v1461_v40 }
 0xa40   :  { %v1427_v25 = vmul.f32 %v5225_v36, %v1422_v16  ;;  %v1377_v31 = vmul.f32 %v1372_v28, %v1261_v21 }
 0xa41   :  { %v1418_v9 = vadd.f32 %v1414_v22, %v1405_v18  ;;  %v1469_v32 = vadd.f32 %v1465_v58, %v1456_v42  ;;  %v1384_v29 = vld [vmem:[#allocation2 + $0x18] sm:$0xff] }
 0xa42   :  { %v1397_v37 = vld [vmem:[#allocation2 + $0x19] sm:$0xff]  ;;  %1381 = vst.msk [vmem:[#allocation2 + $0x23] sm:$0xff] %vm40_vm0, %v1377_v31  ;;  %v1389_v41 = vmul.f32 %v5211_v23, %v1384_v29 }
 0xa43   :  { %v1431_v34 = vadd.f32 %v1427_v25, %v1418_v9  ;;  %v1410_v38 = vld [vmem:[#allocation2 + $0x1a] sm:$0xff]  ;;  %v1474_v19 = vadd.f32 %v5243_v10, %v1469_v32  ;;  %v1402_v44 = vmul.f32 %v5213_v24, %v1397_v37 }
 0xa44   :  { %v1415_v52 = vmul.f32 %v5218_v27, %v1410_v38  ;;  %v1423_v57 = vld [vmem:[#allocation2 + $0x1b] sm:$0xff] }
 0xa45   :  { %v1444_v47 = vadd.f32 %v1440_v35, %v1431_v34  ;;  %v1479_v50 = vmul.f32 %v5255_v45, %v1474_v19  ;;  %v1406_v51 = vadd.f32 %v1402_v44, %v1389_v41  ;;  %v1428_v1 = vmul.f32 %v5225_v36, %v1423_v57 }
 0xa47   :  { %v1457_v56 = vadd.f32 %v1453_v48, %v1444_v47  ;;  %v5270_v59 = vadd.f32 %v5261_v30, %v1479_v50  ;;  %v1419_v62 = vadd.f32 %v1415_v52, %v1406_v51 }
 0xa49   :  { %v1470_v60 = vadd.f32 %v1466_v53, %v1457_v56  ;;  %v4090_v2 = vmul.f32 -1.442695, %v5270_v59  ;;  %v1436_v3 = vld [vmem:[#allocation2 + $0x1c] sm:$0xff]  ;;  %v1432_v7 = vadd.f32 %v1428_v1, %v1419_v62  ;;  %v1437_v25 = vld [vmem:[#allocation2 + $0x24] sm:$0xff] }
 0xa4a   :  { %v1449_v6 = vld [vmem:[#allocation2 + $0x1d] sm:$0xff]  ;;  %v1441_v8 = vmul.f32 %v5230_v46, %v1436_v3  ;;  %v1450_v34 = vld [vmem:[#allocation2 + $0x25] sm:$0xff]  ;;  %v1442_v29 = vmul.f32 %v5230_v46, %v1437_v25 }
 0xa4b   :  { %v1475_v39 = vadd.f32 %v5243_v10, %v1470_v60  ;;  %4400 = vpow2.f32 %v4090_v2  ;;  %v1385_v17 = vld [vmem:[#allocation2 + $0x20] sm:$0xff]  ;;  %v1454_v12 = vmul.f32 %v5234_v55, %v1449_v6  ;;  %v1455_v19 = vmul.f32 %v5234_v55, %v1450_v34 }
 0xa4c   :  { %v1398_v4 = vld [vmem:[#allocation2 + $0x21] sm:$0xff]  ;;  %v1390_v0 = vmul.f32 %v5211_v23, %v1385_v17  ;;  %v1445_v21 = vadd.f32 %v1441_v8, %v1432_v7 }
 0xa4d   :  { %v1411_v13 = vld [vmem:[#allocation2 + $0x22] sm:$0xff]  ;;  %v1480_v15 = vmul.f32 %v5255_v45, %v1475_v39  ;;  %v1403_v16 = vmul.f32 %v5213_v24, %v1398_v4 }
 0xa4e   :  { %v1462_v11 = vld [vmem:[#allocation2 + $0x1e] sm:$0xff]  ;;  %v1416_v42 = vmul.f32 %v5218_v27, %v1411_v13  ;;  %v1458_v58 = vadd.f32 %v1454_v12, %v1445_v21  ;;  %v1463_v27 = vld [vmem:[#allocation2 + $0x26] sm:$0xff] }
 0xa4f   :  { %v1424_v18 = vld [vmem:[#allocation2 + $0x23] sm:$0xff]  ;;  %v5281_v22 = vadd.f32 %v5261_v30, %v1480_v15  ;;  %v1407_v26 = vadd.f32 %v1403_v16, %v1390_v0  ;;  %v1467_v20 = vmul.f32 %v5238_v63, %v1462_v11  ;;  %v1468_v41 = vmul.f32 %v5238_v63, %v1463_v27 }
 0xa50   :  { %v1429_v23 = vmul.f32 %v5225_v36, %v1424_v18 }
 0xa51   :  { %v4091_v28 = vmul.f32 -1.442695, %v5281_v22  ;;  %v1420_v9 = vadd.f32 %v1416_v42, %v1407_v26  ;;  %v4401_v24 = vpop.eup %4400  ;;  %v1471_v31 = vadd.f32 %v1467_v20, %v1458_v58 }
 0xa52   :  { %v1500_v32 = vadd.f32 1.0, %v4401_v24 }
 0xa53   :  { %4402 = vpow2.f32 %v4091_v28  ;;  %v1433_v33 = vadd.f32 %v1429_v23, %v1420_v9  ;;  %v1476_v35 = vadd.f32 %v5243_v10, %v1471_v31 }
 0xa54   :  { %4404 = vrcp.f32 %v1500_v32  ;;  %v1515_v53 = vand.u32 2147483648, %v1500_v32  ;;  %v1513_v62 = vand.u32 2147483647, %v1500_v32  ;;  %vm1509_vm5 = vweird.f32 %v1500_v32 }
 0xa55   :  { %v1481_v37 = vmul.f32 %v5255_v45, %v1476_v35  ;;  %v1446_v38 = vadd.f32 %v1442_v29, %v1433_v33 }
 0xa56   :  { %v1516_v39 = vor.u32 1.1754944e-38, %v1515_v53  ;;  %vm1514_vm7 = vcmp.eq.f32.partialorder %v1513_v62, 8.507059e+37 }
 0xa57   :  { %v5292_v36 = vadd.f32 %v5261_v30, %v1481_v37  ;;  %v1459_v40 = vadd.f32 %v1455_v19, %v1446_v38 }
 0xa59   :  { %v4403_v44 = vpop.eup %4402  ;;  %v4092_v48 = vmul.f32 -1.442695, %v5292_v36  ;;  %v1472_v50 = vadd.f32 %v1468_v41, %v1459_v40 }
 0xa5a   :  { %v1501_v47 = vadd.f32 1.0, %v4403_v44  ;;  %v4405_v51 = vpop.eup %4404 }
 0xa5b   :  { %v1505_v46 = vmul.f32 %v4405_v51, %v1500_v32  ;;  %v1477_v52 = vadd.f32 %v5243_v10, %v1472_v50  ;;  %vm1510_vm4 = vweird.f32 %v4405_v51 }
 0xa5c   :  { %4406 = vrcp.f32 %v1501_v47  ;;  %vm1511_vm6 = vmor %vm1509_vm5, %vm1510_vm4  ;;  %v1530_v4 = vand.u32 2147483648, %v1501_v47  ;;  %v1528_v13 = vand.u32 2147483647, %v1501_v47  ;;  %vm1524_vm9 = vweird.f32 %v1501_v47 }
 0xa5d   :  { %4408 = vpow2.f32 %v4092_v48  ;;  %v1506_v56 = vsub.f32 1.0, %v1505_v46  ;;  %v1482_v55 = vmul.f32 %v5255_v45, %v1477_v52 }
 0xa5e   :  { %v1531_v11 = vor.u32 1.1754944e-38, %v1530_v4  ;;  %vm1529_vm11 = vcmp.eq.f32.partialorder %v1528_v13, 8.507059e+37 }
 0xa5f   :  { %v1507_v57 = vmul.f32 %v4405_v51, %v1506_v56  ;;  %v5299_v63 = vadd.f32 %v5261_v30, %v1482_v55 }
 0xa61   :  { %v1508_v2 = vadd.f32 %v4405_v51, %v1507_v57  ;;  %v4093_v6 = vmul.f32 -1.442695, %v5299_v63 }
 0xa62   :  { %v4407_v60 = vpop.eup %4406 }
 0xa63   :  { %v4409_v1 = vpop.eup %4408  ;;  %v1520_v3 = vmul.f32 %v4407_v60, %v1501_v47  ;;  %v1512_v10 = vsel %vm1511_vm6, %v4405_v51, %v1508_v2  ;;  %4410 = vpow2.f32 %v4093_v6  ;;  %vm1525_vm8 = vweird.f32 %v4407_v60 }
 0xa64   :  { %v1502_v7 = vadd.f32 1.0, %v4409_v1  ;;  %v1517_v8 = vsel %vm1514_vm7, %v1516_v39, %v1512_v10  ;;  %vm1526_vm10 = vmor %vm1524_vm9, %vm1525_vm8 }
 0xa65   :  { %v1521_v45 = vsub.f32 1.0, %v1520_v3  ;;  %v1564_v17 = vmul.f32 %v1517_v8, %v5270_v59 }
 0xa66   :  { %4412 = vrcp.f32 %v1502_v7  ;;  %v1545_v58 = vand.u32 2147483648, %v1502_v7  ;;  %v1543_v28 = vand.u32 2147483647, %v1502_v7  ;;  %vm1539_vm13 = vweird.f32 %v1502_v7 }
 0xa67   :  { %v1522_v30 = vmul.f32 %v4407_v60, %v1521_v45  ;;  %4098 = vmatmul.msk.f32.vlgmr.msra.gmra.mxu0 %vm40_vm0, %v1564_v17 }
 0xa68   :  { %v1546_v25 = vor.u32 1.1754944e-38, %v1545_v58  ;;  %vm1544_vm1 = vcmp.eq.f32.partialorder %v1543_v28, 8.507059e+37 }
 0xa69   :  { %v1523_v15 = vadd.f32 %v4407_v60, %v1522_v30  ;;  %v4411_v0 = vpop.eup %4410 }
 0xa6a   :  { %v1503_v18 = vadd.f32 1.0, %v4411_v0 }
 0xa6b   :  { %v1527_v16 = vsel %vm1526_vm10, %v4407_v60, %v1523_v15 }
 0xa6c   :  { %v4413_v21 = vpop.eup %4412  ;;  %v1532_v12 = vsel %vm1529_vm11, %v1531_v11, %v1527_v16  ;;  %4414 = vrcp.f32 %v1503_v18  ;;  %v1560_v34 = vand.u32 2147483648, %v1503_v18  ;;  %v1558_v29 = vand.u32 2147483647, %v1503_v18 }
 0xa6d   :  { %v1535_v26 = vmul.f32 %v4413_v21, %v1502_v7  ;;  %v1565_v59 = vmul.f32 %v1532_v12, %v5281_v22  ;;  %vm1540_vm12 = vweird.f32 %v4413_v21  ;;  %vm1554_vm4 = vweird.f32 %v1503_v18  ;;  %v4104_v12 = vld [vmem:[%s6170_s3 + $0x30] sm:$0xff] }
 0xa6e   :  { %vm1541_vm15 = vmor %vm1539_vm13, %vm1540_vm12  ;;  %v1561_v37 = vor.u32 1.1754944e-38, %v1560_v34  ;;  %vm1559_vm6 = vcmp.eq.f32.partialorder %v1558_v29, 8.507059e+37 }
 0xa6f   :  { %v1536_v42 = vsub.f32 1.0, %v1535_v26  ;;  %4099 = vmatmul.msk.f32.gmra.mxu0 %vm40_vm0, %v1565_v59  ;;  %v4102_v26 = vld [vmem:[%s6170_s3 + $0x20] sm:$0xff] }
 0xa71   :  { %v1537_v20 = vmul.f32 %v4413_v21, %v1536_v42 }
 0xa72   :  { %v4415_v23 = vpop.eup %4414 }
 0xa73   :  { %v1538_v9 = vadd.f32 %v4413_v21, %v1537_v20  ;;  %v1550_v31 = vmul.f32 %v4415_v23, %v1503_v18  ;;  %vm1555_vm2 = vweird.f32 %v4415_v23  ;;  %v4103_v18 = vld [vmem:[%s6170_s3 + $0x28] sm:$0xff] }
 0xa74   :  { %vm1556_vm5 = vmor %vm1554_vm4, %vm1555_vm2 }
 0xa75   :  { %v1542_v24 = vsel %vm1541_vm15, %v4413_v21, %v1538_v9  ;;  %v1551_v22 = vsub.f32 1.0, %v1550_v31  ;;  %v4105_v21 = vld [vmem:[%s6170_s3 + $0x38] sm:$0xff] }
 0xa76   :  { %v1547_v32 = vsel %vm1544_vm1, %v1546_v25, %v1542_v24  ;;  %1747 = vmatpush.msrb.mxu2 %v4105_v21 }
 0xa77   :  { %v1566_v33 = vmul.f32 %v1547_v32, %v5292_v36  ;;  %v1552_v35 = vmul.f32 %v4415_v23, %v1551_v22  ;;  %v1573_v36 = vperm.slane %v5183_v5, 5 }
 0xa78   :  { %1748 = vmatpush.msrb.mxu2 %v4104_v12  ;;  %v4120_v12 = vld [vmem:[%s6171_s4 + $0x70] sm:$0xff] }
 0xa79   :  { %4100 = vmatmul.msk.f32.vlgmr.msra.gmra.mxu2 %vm40_vm0, %v1566_v33  ;;  %v1553_v27 = vadd.f32 %v4415_v23, %v1552_v35  ;;  %v1707_v35 = vperm.slane %v5183_v5, 6 }
 0xa7a   :  { %1749 = vmatpush.msrb.mxu2 %v4103_v18  ;;  %v4119_v18 = vld [vmem:[%s6171_s4 + $0x68] sm:$0xff] }
 0xa7b   :  { %v1557_v38 = vsel %vm1556_vm5, %v4415_v23, %v1553_v27 }
 0xa7c   :  { %v1562_v19 = vsel %vm1559_vm6, %v1561_v37, %v1557_v38  ;;  %1750 = vmatpush.msrb.mxu2 %v4102_v26  ;;  %v4117_v26 = vld [vmem:[%s6171_s4 + $0x58] sm:$0xff] }
 0xa7d   :  { %v1567_v40 = vmul.f32 %v1562_v19, %v5299_v63  ;;  %v1712_v19 = vperm.slane %v5183_v5, 7 }
 0xa81   :  { %4101 = vmatmul.msk.f32.gmra.mxu2 %vm40_vm0, %v1567_v40 }
 0xae4   :  { %v1603_v41 = vpop.f32.mrf.mxu0 }
 0xae5   :  { %v1604_v44 = vadd.f32 %v1603_v41, %v1573_v36 }
 0xae7   :  { %v5312_v47 = vadd.f32 %v1604_v44, %v5087_v43 }
 0xae9   :  { %v1619_v48 = vsel %vm40_vm0, %v5312_v47, 0.0 }
 0xaea   :  { %1620 = vadd.xlane.f32.xlu1 %v1619_v48 }
 0xaec   :  { %v1606_v50 = vpop.f32.mrf.mxu0 }
 0xaed   :  { %v1607_v51 = vadd.f32 %v1606_v50, %v1573_v36 }
 0xaef   :  { %v5317_v46 = vadd.f32 %v1607_v51, %v5092_v49 }
 0xaf1   :  { %v1622_v52 = vsel %vm40_vm0, %v5317_v46, 0.0 }
 0xaf2   :  { %1623 = vadd.xlane.f32.xlu2 %v1622_v52 }
 0xafc   :  { %v1609_v56 = vpop.f32.mrf.mxu2 }
 0xafd   :  { %v1610_v53 = vadd.f32 %v1609_v56, %v1573_v36 }
 0xaff   :  { %v5322_v55 = vadd.f32 %v1610_v53, %v5097_v54 }
 0xb01   :  { %v1625_v43 = vsel %vm40_vm0, %v5322_v55, 0.0 }
 0xb02   :  { %1626 = vadd.xlane.f32.xlu0 %v1625_v43 }
 0xb04   :  { %v1612_v57 = vpop.f32.mrf.mxu2 }
 0xb05   :  { %v1613_v62 = vadd.f32 %v1612_v57, %v1573_v36 }
 0xb07   :  { %v5327_v63 = vadd.f32 %v1613_v62, %v5102_v61 }
 0xb09   :  { %v1628_v49 = vsel %vm40_vm0, %v5327_v63, 0.0 }
 0xb0a   :  { %1629 = vadd.xlane.f32.xlu1 %v1628_v49 }
 0xb5d   :  { %v1621_v60 = vpop.xlane.xlu1 %1620 }
 0xb5e   :  { %v1631_v2 = vmul.f32 %v1621_v60, %v4702_v14 }
 0xb60   :  { %v1635_v1 = vsub.f32 %v5312_v47, %v1631_v2 }
 0xb62   :  { %v1639_v54 = vmul.f32 %v1635_v1, %v1635_v1 }
 0xb64   :  { %v1643_v39 = vsel %vm40_vm0, %v1639_v54, 0.0 }
 0xb65   :  { %v1624_v3 = vpop.xlane.xlu2 %1623  ;;  %1644 = vadd.xlane.f32.xlu2 %v1643_v39 }
 0xb66   :  { %v1632_v6 = vmul.f32 %v1624_v3, %v4702_v14 }
 0xb68   :  { %v5336_v10 = vsub.f32 %v5317_v46, %v1632_v6 }
 0xb6a   :  { %v1640_v61 = vmul.f32 %v5336_v10, %v5336_v10 }
 0xb6c   :  { %v1646_v7 = vsel %vm40_vm0, %v1640_v61, 0.0 }
 0xb6d   :  { %1647 = vadd.xlane.f32.xlu0 %v1646_v7 }
 0xb75   :  { %v1627_v8 = vpop.xlane.xlu0 %1626 }
 0xb76   :  { %v1633_v45 = vmul.f32 %v1627_v8, %v4702_v14 }
 0xb78   :  { %v5343_v17 = vsub.f32 %v5322_v55, %v1633_v45 }
 0xb7a   :  { %v1641_v4 = vmul.f32 %v5343_v17, %v5343_v17 }
 0xb7c   :  { %v1649_v30 = vsel %vm40_vm0, %v1641_v4, 0.0 }
 0xb7d   :  { %1650 = vadd.xlane.f32.xlu1 %v1649_v30  ;;  %v1630_v13 = vpop.xlane.xlu1 %1629 }
 0xb7e   :  { %v1634_v15 = vmul.f32 %v1630_v13, %v4702_v14 }
 0xb80   :  { %v5350_v11 = vsub.f32 %v5327_v63, %v1634_v15 }
 0xb82   :  { %v1642_v0 = vmul.f32 %v5350_v11, %v5350_v11 }
 0xb84   :  { %v1652_v16 = vsel %vm40_vm0, %v1642_v0, 0.0 }
 0xb85   :  { %1653 = vadd.xlane.f32.xlu2 %v1652_v16 }
 0xbd8   :  { %v1645_v59 = vpop.xlane.xlu2 %1644 }
 0xbd9   :  { %v1655_v42 = vmul.f32 %v1645_v59, %v4702_v14  ;;  %v4585_v59 = vld [vmem:[%s6169_s2] sm:$0x3] }
 0xbdb   :  { %v1659_v58 = vadd.f32 1e-05, %v1655_v42  ;;  %v1722_v42 = vperm.slane %v4585_v59, 1 }
 0xbdd   :  { %4416 = vrsqrt.f32 %v1659_v58  ;;  %vm1669_vm8 = vweird.f32 %v1659_v58 }
 0xbe0   :  { %v1648_v20 = vpop.xlane.xlu0 %1647 }
 0xbe1   :  { %v1656_v28 = vmul.f32 %v1648_v20, %v4702_v14 }
 0xbe3   :  { %v4417_v9 = vpop.eup %4416  ;;  %v1660_v23 = vadd.f32 1e-05, %v1656_v28  ;;  %v4115_v28 = vld [vmem:[%s6171_s4 + $0x48] sm:$0xff] }
 0xbe4   :  { %v1664_v25 = vmul.f32 %v4417_v9, %v1659_v58  ;;  %vm1670_vm7 = vweird.f32 %v4417_v9  ;;  %v4116_v58 = vld [vmem:[%s6171_s4 + $0x50] sm:$0xff] }
 0xbe5   :  { %4418 = vrsqrt.f32 %v1660_v23  ;;  %vm1671_vm9 = vmor %vm1669_vm8, %vm1670_vm7  ;;  %vm1679_vm11 = vweird.f32 %v1660_v23 }
 0xbe6   :  { %v1665_v24 = vmul.f32 %v4417_v9, %v1664_v25 }
 0xbe8   :  { %v1666_v31 = vmul.f32 0.5, %v1665_v24 }
 0xbea   :  { %v1667_v32 = vsub.f32 1.5, %v1666_v31 }
 0xbeb   :  { %v4419_v33 = vpop.eup %4418 }
 0xbec   :  { %v1668_v22 = vmul.f32 %v4417_v9, %v1667_v32  ;;  %v1674_v34 = vmul.f32 %v4419_v33, %v1660_v23  ;;  %vm1680_vm10 = vweird.f32 %v4419_v33  ;;  %v4114_v23 = vld [vmem:[%s6171_s4 + $0x40] sm:$0xff] }
 0xbed   :  { %vm1681_vm12 = vmor %vm1679_vm11, %vm1680_vm10 }
 0xbee   :  { %v1672_v29 = vsel %vm1671_vm9, %v4417_v9, %v1668_v22  ;;  %v1675_v27 = vmul.f32 %v4419_v33, %v1674_v34 }
 0xbef   :  { %v1703_v37 = vmul.f32 %v1672_v29, %v1635_v1 }
 0xbf0   :  { %v1651_v38 = vpop.xlane.xlu1 %1650  ;;  %v1676_v40 = vmul.f32 0.5, %v1675_v27 }
 0xbf1   :  { %v1657_v36 = vmul.f32 %v1651_v38, %v4702_v14  ;;  %v1708_v41 = vmul.f32 %v1707_v35, %v1703_v37 }
 0xbf2   :  { %v1677_v44 = vsub.f32 1.5, %v1676_v40 }
 0xbf3   :  { %v1661_v48 = vadd.f32 1e-05, %v1657_v36  ;;  %v1713_v50 = vadd.f32 %v1712_v19, %v1708_v41 }
 0xbf4   :  { %v1678_v51 = vmul.f32 %v4419_v33, %v1677_v44 }
 0xbf5   :  { %4420 = vrsqrt.f32 %v1661_v48  ;;  %4106 = vmatmul.msk.f32.vlgmr.msrb.gmra.mxu2 %vm40_vm0, %v1713_v50  ;;  %vm1689_vm15 = vweird.f32 %v1661_v48 }
 0xbf6   :  { %v1682_v52 = vsel %vm1681_vm12, %v4419_v33, %v1678_v51 }
 0xbf7   :  { %v1704_v53 = vmul.f32 %v1682_v52, %v5336_v10 }
 0xbf8   :  { %v1654_v56 = vpop.xlane.xlu2 %1653 }
 0xbf9   :  { %v1658_v5 = vmul.f32 %v1654_v56, %v4702_v14  ;;  %v1709_v43 = vmul.f32 %v1707_v35, %v1704_v53 }
 0xbfb   :  { %v4421_v57 = vpop.eup %4420  ;;  %v1662_v62 = vadd.f32 1e-05, %v1658_v5  ;;  %v1714_v60 = vadd.f32 %v1712_v19, %v1709_v43 }
 0xbfc   :  { %v1684_v49 = vmul.f32 %v4421_v57, %v1661_v48  ;;  %vm1690_vm13 = vweird.f32 %v4421_v57 }
 0xbfd   :  { %4422 = vrsqrt.f32 %v1662_v62  ;;  %4107 = vmatmul.msk.f32.gmra.mxu2 %vm40_vm0, %v1714_v60  ;;  %vm1691_vm1 = vmor %vm1689_vm15, %vm1690_vm13  ;;  %vm1699_vm4 = vweird.f32 %v1662_v62 }
 0xbfe   :  { %v1685_v2 = vmul.f32 %v4421_v57, %v1684_v49 }
 0xc00   :  { %v1686_v1 = vmul.f32 0.5, %v1685_v2 }
 0xc02   :  { %v1687_v54 = vsub.f32 1.5, %v1686_v1 }
 0xc03   :  { %v4423_v39 = vpop.eup %4422 }
 0xc04   :  { %v1688_v3 = vmul.f32 %v4421_v57, %v1687_v54  ;;  %v1694_v6 = vmul.f32 %v4423_v39, %v1662_v62  ;;  %vm1700_vm2 = vweird.f32 %v4423_v39 }
 0xc05   :  { %vm1701_vm5 = vmor %vm1699_vm4, %vm1700_vm2 }
 0xc06   :  { %v1692_v10 = vsel %vm1691_vm1, %v4421_v57, %v1688_v3  ;;  %v1695_v61 = vmul.f32 %v4423_v39, %v1694_v6 }
 0xc07   :  { %v1705_v7 = vmul.f32 %v1692_v10, %v5343_v17  ;;  %v4121_v17 = vld [vmem:[%s6171_s4 + $0x78] sm:$0xff] }
 0xc08   :  { %v1696_v8 = vmul.f32 0.5, %v1695_v61  ;;  %1874 = vmatpush.msrb.mxu3 %v4121_v17 }
 0xc09   :  { %v1710_v45 = vmul.f32 %v1707_v35, %v1705_v7 }
 0xc0a   :  { %v1697_v4 = vsub.f32 1.5, %v1696_v8  ;;  %1875 = vmatpush.msrb.mxu3 %v4120_v12 }
 0xc0b   :  { %v1715_v30 = vadd.f32 %v1712_v19, %v1710_v45 }
 0xc0c   :  { %v1698_v13 = vmul.f32 %v4423_v39, %v1697_v4  ;;  %1876 = vmatpush.msrb.mxu3 %v4119_v18 }
 0xc0d   :  { %4108 = vmatmul.msk.f32.gmra.mxu2 %vm40_vm0, %v1715_v30 }
 0xc0e   :  { %v1702_v15 = vsel %vm1701_vm5, %v4423_v39, %v1698_v13 }
 0xc0f   :  { %v1706_v0 = vmul.f32 %v1702_v15, %v5350_v11  ;;  %v4118_v11 = vld [vmem:[%s6171_s4 + $0x60] sm:$0xff] }
 0xc10   :  { %1877 = vmatpush.msrb.mxu3 %v4118_v11 }
 0xc11   :  { %v1711_v16 = vmul.f32 %v1707_v35, %v1706_v0 }
 0xc12   :  { %1878 = vmatpush.msrb.mxu3 %v4117_v26 }
 0xc13   :  { %v1716_v21 = vadd.f32 %v1712_v19, %v1711_v16 }
 0xc14   :  { %1879 = vmatpush.msrb.mxu3 %v4116_v58 }
 0xc15   :  { %4109 = vmatmul.msk.f32.gmra.mxu2 %vm40_vm0, %v1716_v21 }
 0xc16   :  { %1880 = vmatpush.msrb.mxu3 %v4115_v28 }
 0xc18   :  { %1881 = vmatpush.msrb.mxu3 %v4114_v23 }
 0xc78   :  { %v1752_v20 = vpop.f32.mrf.mxu2 }
 0xc79   :  { %v1753_v9 = vadd.f32 %v1752_v20, %v1722_v42 }
 0xc7b   :  { %v4110_v25 = vmul.f32 -1.442695, %v1753_v9 }
 0xc7d   :  { %4424 = vpow2.f32 %v4110_v25 }
 0xc80   :  { %v1755_v24 = vpop.f32.mrf.mxu2 }
 0xc81   :  { %v1756_v31 = vadd.f32 %v1755_v24, %v1722_v42 }
 0xc83   :  { %v4425_v32 = vpop.eup %4424  ;;  %v4111_v33 = vmul.f32 -1.442695, %v1756_v31 }
 0xc84   :  { %v1776_v22 = vadd.f32 1.0, %v4425_v32  ;;  %v5414_v32 = vld [vmem:[%s6168_s1 + $0x10] sm:$0x7] }
 0xc85   :  { %4426 = vpow2.f32 %v4111_v33  ;;  %v1853_v33 = vperm.slane %v5414_v32, 0 }
 0xc86   :  { %4428 = vrcp.f32 %v1776_v22  ;;  %v1791_v19 = vand.u32 2147483648, %v1776_v22  ;;  %v1789_v41 = vand.u32 2147483647, %v1776_v22  ;;  %vm1785_vm7 = vweird.f32 %v1776_v22 }
 0xc88   :  { %v1792_v51 = vor.u32 1.1754944e-38, %v1791_v19  ;;  %vm1790_vm9 = vcmp.eq.f32.partialorder %v1789_v41, 8.507059e+37 }
 0xc8b   :  { %v4427_v34 = vpop.eup %4426 }
 0xc8c   :  { %v4429_v35 = vpop.eup %4428  ;;  %v1777_v29 = vadd.f32 1.0, %v4427_v34 }
 0xc8d   :  { %v1781_v27 = vmul.f32 %v4429_v35, %v1776_v22  ;;  %vm1786_vm6 = vweird.f32 %v4429_v35 }
 0xc8e   :  { %4430 = vrcp.f32 %v1777_v29  ;;  %vm1787_vm8 = vmor %vm1785_vm7, %vm1786_vm6  ;;  %v1806_v62 = vand.u32 2147483648, %v1777_v29  ;;  %v1804_v2 = vand.u32 2147483647, %v1777_v29  ;;  %vm1800_vm11 = vweird.f32 %v1777_v29 }
 0xc8f   :  { %v1782_v37 = vsub.f32 1.0, %v1781_v27 }
 0xc90   :  { %v1758_v38 = vpop.f32.mrf.mxu2  ;;  %v1807_v6 = vor.u32 1.1754944e-38, %v1806_v62  ;;  %vm1805_vm13 = vcmp.eq.f32.partialorder %v1804_v2, 8.507059e+37 }
 0xc91   :  { %v1759_v40 = vadd.f32 %v1758_v38, %v1722_v42  ;;  %v1783_v36 = vmul.f32 %v4429_v35, %v1782_v37 }
 0xc93   :  { %v4112_v44 = vmul.f32 -1.442695, %v1759_v40  ;;  %v1784_v48 = vadd.f32 %v4429_v35, %v1783_v36 }
 0xc94   :  { %v4431_v50 = vpop.eup %4430 }
 0xc95   :  { %4432 = vpow2.f32 %v4112_v44  ;;  %v1788_v52 = vsel %vm1787_vm8, %v4429_v35, %v1784_v48  ;;  %v1796_v56 = vmul.f32 %v4431_v50, %v1777_v29  ;;  %vm1801_vm10 = vweird.f32 %v4431_v50 }
 0xc96   :  { %v1793_v53 = vsel %vm1790_vm9, %v1792_v51, %v1788_v52  ;;  %vm1802_vm12 = vmor %vm1800_vm11, %vm1801_vm10 }
 0xc97   :  { %v1840_v5 = vmul.f32 %v1793_v53, %v1753_v9  ;;  %v1797_v43 = vsub.f32 1.0, %v1796_v56 }
 0xc98   :  { %v1761_v57 = vpop.f32.mrf.mxu2 }
 0xc99   :  { %v1762_v49 = vadd.f32 %v1761_v57, %v1722_v42  ;;  %v1798_v60 = vmul.f32 %v4431_v50, %v1797_v43  ;;  %4122 = vmatmul.msk.f32.vlgmr.msrb.gmra.mxu3 %vm293_vm3, %v1840_v5 }
 0xc9b   :  { %v4433_v1 = vpop.eup %4432  ;;  %v4113_v54 = vmul.f32 -1.442695, %v1762_v49  ;;  %v1799_v39 = vadd.f32 %v4431_v50, %v1798_v60 }
 0xc9c   :  { %v1778_v3 = vadd.f32 1.0, %v4433_v1 }
 0xc9d   :  { %4434 = vpow2.f32 %v4113_v54  ;;  %v1803_v10 = vsel %vm1802_vm12, %v4431_v50, %v1799_v39 }
 0xc9e   :  { %4436 = vrcp.f32 %v1778_v3  ;;  %v1808_v61 = vsel %vm1805_vm13, %v1807_v6, %v1803_v10  ;;  %v1821_v15 = vand.u32 2147483648, %v1778_v3  ;;  %v1819_v16 = vand.u32 2147483647, %v1778_v3 }
 0xc9f   :  { %v1841_v7 = vmul.f32 %v1808_v61, %v1756_v31  ;;  %vm1815_vm1 = vweird.f32 %v1778_v3 }
 0xca0   :  { %v1822_v12 = vor.u32 1.1754944e-38, %v1821_v15  ;;  %vm1820_vm4 = vcmp.eq.f32.partialorder %v1819_v16, 8.507059e+37 }
 0xca1   :  { %4123 = vmatmul.msk.f32.gmra.mxu3 %vm293_vm3, %v1841_v7 }
 0xca3   :  { %v4435_v8 = vpop.eup %4434 }
 0xca4   :  { %v4437_v45 = vpop.eup %4436  ;;  %v1779_v4 = vadd.f32 1.0, %v4435_v8 }
 0xca5   :  { %v1811_v30 = vmul.f32 %v4437_v45, %v1778_v3  ;;  %vm1816_vm15 = vweird.f32 %v4437_v45 }
 0xca6   :  { %4438 = vrcp.f32 %v1779_v4  ;;  %vm1817_vm2 = vmor %vm1815_vm1, %vm1816_vm15  ;;  %v1836_v58 = vand.u32 2147483648, %v1779_v4  ;;  %v1834_v28 = vand.u32 2147483647, %v1779_v4  ;;  %vm1830_vm6 = vweird.f32 %v1779_v4 }
 0xca7   :  { %v1812_v13 = vsub.f32 1.0, %v1811_v30 }
 0xca8   :  { %v1837_v23 = vor.u32 1.1754944e-38, %v1836_v58  ;;  %vm1835_vm8 = vcmp.eq.f32.partialorder %v1834_v28, 8.507059e+37 }
 0xca9   :  { %v1813_v0 = vmul.f32 %v4437_v45, %v1812_v13 }
 0xcab   :  { %v1814_v21 = vadd.f32 %v4437_v45, %v1813_v0 }
 0xcac   :  { %v4439_v17 = vpop.eup %4438 }
 0xcad   :  { %v1818_v18 = vsel %vm1817_vm2, %v4437_v45, %v1814_v21  ;;  %v1826_v11 = vmul.f32 %v4439_v17, %v1779_v4  ;;  %vm1831_vm5 = vweird.f32 %v4439_v17 }
 0xcae   :  { %v1823_v26 = vsel %vm1820_vm4, %v1822_v12, %v1818_v18  ;;  %vm1832_vm7 = vmor %vm1830_vm6, %vm1831_vm5 }
 0xcaf   :  { %v1842_v59 = vmul.f32 %v1823_v26, %v1759_v40  ;;  %v1827_v42 = vsub.f32 1.0, %v1826_v11 }
 0xcb1   :  { %v1828_v20 = vmul.f32 %v4439_v17, %v1827_v42  ;;  %4124 = vmatmul.msk.f32.gmra.mxu3 %vm293_vm3, %v1842_v59 }
 0xcb3   :  { %v1829_v9 = vadd.f32 %v4439_v17, %v1828_v20  ;;  %v1991_v20 = vperm.slane %v5414_v32, 1 }
 0xcb5   :  { %v1833_v25 = vsel %vm1832_vm7, %v4439_v17, %v1829_v9 }
 0xcb6   :  { %v1838_v24 = vsel %vm1835_vm8, %v1837_v23, %v1833_v25 }
 0xcb7   :  { %v1843_v31 = vmul.f32 %v1838_v24, %v1762_v49  ;;  %v1996_v24 = vperm.slane %v5414_v32, 2 }
 0xcb9   :  { %4125 = vmatmul.msk.f32.gmra.mxu3 %vm293_vm3, %v1843_v31 }
 0xd1c   :  { %v1883_v22 = vpop.f32.mrf.mxu3 }
 0xd1d   :  { %v1884_v34 = vadd.f32 %v1883_v22, %v1853_v33 }
 0xd1f   :  { %v1895_v35 = vmul.f32 0.5, %v1884_v34 }
 0xd21   :  { %v1899_v29 = vadd.f32 %v1895_v35, %v5312_v47 }
 0xd23   :  { %v1903_v27 = vsel %vm40_vm0, %v1899_v29, 0.0 }
 0xd24   :  { %v1886_v37 = vpop.f32.mrf.mxu3  ;;  %1904 = vadd.xlane.f32.xlu0 %v1903_v27 }
 0xd25   :  { %v1887_v38 = vadd.f32 %v1886_v37, %v1853_v33 }
 0xd27   :  { %v1896_v19 = vmul.f32 0.5, %v1887_v38 }
 0xd29   :  { %v1900_v40 = vadd.f32 %v1896_v19, %v5317_v46 }
 0xd2b   :  { %v1906_v36 = vsel %vm40_vm0, %v1900_v40, 0.0 }
 0xd2c   :  { %1907 = vadd.xlane.f32.xlu1 %v1906_v36 }
 0xd34   :  { %v1889_v41 = vpop.f32.mrf.mxu3 }
 0xd35   :  { %v1890_v44 = vadd.f32 %v1889_v41, %v1853_v33 }
 0xd37   :  { %v1897_v48 = vmul.f32 0.5, %v1890_v44 }
 0xd39   :  { %v1901_v50 = vadd.f32 %v1897_v48, %v5322_v55 }
 0xd3b   :  { %v1909_v51 = vsel %vm40_vm0, %v1901_v50, 0.0 }
 0xd3c   :  { %v1892_v52 = vpop.f32.mrf.mxu3  ;;  %1910 = vadd.xlane.f32.xlu2 %v1909_v51 }
 0xd3d   :  { %v1893_v47 = vadd.f32 %v1892_v52, %v1853_v33 }
 0xd3f   :  { %v1898_v56 = vmul.f32 0.5, %v1893_v47 }
 0xd41   :  { %v1902_v53 = vadd.f32 %v1898_v56, %v5327_v63 }
 0xd43   :  { %v1912_v5 = vsel %vm40_vm0, %v1902_v53, 0.0 }
 0xd44   :  { %1913 = vadd.xlane.f32.xlu0 %v1912_v5 }
 0xd97   :  { %v1905_v46 = vpop.xlane.xlu0 %1904 }
 0xd98   :  { %v1915_v43 = vmul.f32 %v1905_v46, %v4702_v14 }
 0xd9a   :  { %v1919_v57 = vsub.f32 %v1899_v29, %v1915_v43 }
 0xd9c   :  { %v1923_v62 = vmul.f32 %v1919_v57, %v1919_v57 }
 0xd9e   :  { %v1927_v49 = vsel %vm40_vm0, %v1923_v62, 0.0 }
 0xd9f   :  { %1928 = vadd.xlane.f32.xlu1 %v1927_v49  ;;  %v1908_v55 = vpop.xlane.xlu1 %1907 }
 0xda0   :  { %v1916_v60 = vmul.f32 %v1908_v55, %v4702_v14 }
 0xda2   :  { %v1920_v2 = vsub.f32 %v1900_v40, %v1916_v60 }
 0xda4   :  { %v1924_v1 = vmul.f32 %v1920_v2, %v1920_v2 }
 0xda6   :  { %v1930_v54 = vsel %vm40_vm0, %v1924_v1, 0.0 }
 0xda7   :  { %1931 = vadd.xlane.f32.xlu2 %v1930_v54 }
 0xdaf   :  { %v1911_v63 = vpop.xlane.xlu2 %1910 }
 0xdb0   :  { %v1917_v39 = vmul.f32 %v1911_v63, %v4702_v14 }
 0xdb2   :  { %v5430_v3 = vsub.f32 %v1901_v50, %v1917_v39 }
 0xdb4   :  { %v1925_v6 = vmul.f32 %v5430_v3, %v5430_v3 }
 0xdb6   :  { %v1933_v10 = vsel %vm40_vm0, %v1925_v6, 0.0 }
 0xdb7   :  { %v1914_v61 = vpop.xlane.xlu0 %1913  ;;  %1934 = vadd.xlane.f32.xlu0 %v1933_v10 }
 0xdb8   :  { %v1918_v7 = vmul.f32 %v1914_v61, %v4702_v14 }
 0xdba   :  { %v5436_v8 = vsub.f32 %v1902_v53, %v1918_v7 }
 0xdbc   :  { %v1926_v45 = vmul.f32 %v5436_v8, %v5436_v8 }
 0xdbe   :  { %v1936_v4 = vsel %vm40_vm0, %v1926_v45, 0.0 }
 0xdbf   :  { %1937 = vadd.xlane.f32.xlu1 %v1936_v4 }
 0xe12   :  { %v1929_v30 = vpop.xlane.xlu1 %1928 }
 0xe13   :  { %v1939_v13 = vmul.f32 %v1929_v30, %v4702_v14 }
 0xe15   :  { %v1943_v15 = vadd.f32 1e-05, %v1939_v13 }
 0xe17   :  { %4440 = vrsqrt.f32 %v1943_v15  ;;  %vm1953_vm10 = vweird.f32 %v1943_v15 }
 0xe1a   :  { %v1932_v0 = vpop.xlane.xlu2 %1931 }
 0xe1b   :  { %v1940_v16 = vmul.f32 %v1932_v0, %v4702_v14 }
 0xe1d   :  { %v4441_v21 = vpop.eup %4440  ;;  %v1944_v17 = vadd.f32 1e-05, %v1940_v16 }
 0xe1e   :  { %v1948_v12 = vmul.f32 %v4441_v21, %v1943_v15  ;;  %vm1954_vm9 = vweird.f32 %v4441_v21 }
 0xe1f   :  { %4442 = vrsqrt.f32 %v1944_v17  ;;  %vm1955_vm11 = vmor %vm1953_vm10, %vm1954_vm9  ;;  %vm1963_vm13 = vweird.f32 %v1944_v17 }
 0xe20   :  { %v1949_v18 = vmul.f32 %v4441_v21, %v1948_v12 }
 0xe22   :  { %v1950_v11 = vmul.f32 0.5, %v1949_v18 }
 0xe24   :  { %v1951_v26 = vsub.f32 1.5, %v1950_v11 }
 0xe25   :  { %v4443_v59 = vpop.eup %4442 }
 0xe26   :  { %v1952_v42 = vmul.f32 %v4441_v21, %v1951_v26  ;;  %v1958_v58 = vmul.f32 %v4443_v59, %v1944_v17  ;;  %vm1964_vm12 = vweird.f32 %v4443_v59 }
 0xe27   :  { %vm1965_vm15 = vmor %vm1963_vm13, %vm1964_vm12 }
 0xe28   :  { %v1956_v28 = vsel %vm1955_vm11, %v4441_v21, %v1952_v42  ;;  %v1959_v9 = vmul.f32 %v4443_v59, %v1958_v58 }
 0xe29   :  { %v1987_v25 = vmul.f32 %v1956_v28, %v1919_v57  ;;  %v4134_v28 = vld [vmem:[%s6170_s3 + $0x58] sm:$0xff] }
 0xe2a   :  { %v1935_v23 = vpop.xlane.xlu0 %1934  ;;  %v1960_v31 = vmul.f32 0.5, %v1959_v9  ;;  %2137 = vmatpush.msrb.mxu1 %v4134_v28  ;;  %v4133_v9 = vld [vmem:[%s6170_s3 + $0x50] sm:$0xff] }
 0xe2b   :  { %v1941_v33 = vmul.f32 %v1935_v23, %v4702_v14  ;;  %v1992_v22 = vmul.f32 %v1991_v20, %v1987_v25  ;;  %v4132_v23 = vld [vmem:[%s6170_s3 + $0x48] sm:$0xff]  ;;  %v4131_v25 = vld [vmem:[%s6170_s3 + $0x40] sm:$0xff] }
 0xe2c   :  { %v1961_v34 = vsub.f32 1.5, %v1960_v31  ;;  %2138 = vmatpush.msrb.mxu1 %v4133_v9 }
 0xe2d   :  { %v1945_v35 = vadd.f32 1e-05, %v1941_v33  ;;  %v5446_v29 = vadd.f32 %v1996_v24, %v1992_v22 }
 0xe2e   :  { %v1962_v27 = vmul.f32 %v4443_v59, %v1961_v34  ;;  %2139 = vmatpush.msrb.mxu1 %v4132_v23  ;;  %v4149_v23 = vld [vmem:[%s6171_s4 + $0xb0] sm:$0xff] }
 0xe2f   :  { %4444 = vrsqrt.f32 %v1945_v35  ;;  %v2009_v37 = vsel %vm40_vm0, %v5446_v29, 0.0  ;;  %vm1973_vm2 = vweird.f32 %v1945_v35 }
 0xe30   :  { %v1966_v38 = vsel %vm1965_vm15, %v4443_v59, %v1962_v27  ;;  %2010 = vadd.xlane.f32.xlu2 %v2009_v37  ;;  %2140 = vmatpush.msrb.mxu1 %v4131_v25  ;;  %v4148_v25 = vld [vmem:[%s6171_s4 + $0xa8] sm:$0xff] }
 0xe31   :  { %v1988_v32 = vmul.f32 %v1966_v38, %v1920_v2 }
 0xe32   :  { %v1938_v19 = vpop.xlane.xlu1 %1937 }
 0xe33   :  { %v1942_v40 = vmul.f32 %v1938_v19, %v4702_v14  ;;  %v1993_v36 = vmul.f32 %v1991_v20, %v1988_v32  ;;  %v5506_v32 = vld [vmem:[%s6168_s1 + $0x18] sm:$0xff] }
 0xe35   :  { %v4445_v41 = vpop.eup %4444  ;;  %v1946_v44 = vadd.f32 1e-05, %v1942_v40  ;;  %v5451_v50 = vadd.f32 %v1996_v24, %v1993_v36 }
 0xe36   :  { %v1968_v48 = vmul.f32 %v4445_v41, %v1945_v35  ;;  %vm1974_vm1 = vweird.f32 %v4445_v41 }
 0xe37   :  { %4446 = vrsqrt.f32 %v1946_v44  ;;  %v2012_v52 = vsel %vm40_vm0, %v5451_v50, 0.0  ;;  %vm1975_vm4 = vmor %vm1973_vm2, %vm1974_vm1  ;;  %vm1983_vm6 = vweird.f32 %v1946_v44 }
 0xe38   :  { %v1969_v51 = vmul.f32 %v4445_v41, %v1968_v48  ;;  %2013 = vadd.xlane.f32.xlu0 %v2012_v52  ;;  %v2097_v48 = vperm.slane %v5506_v32, 0 }
 0xe3a   :  { %v1970_v47 = vmul.f32 0.5, %v1969_v51 }
 0xe3c   :  { %v1971_v56 = vsub.f32 1.5, %v1970_v47 }
 0xe3d   :  { %v4447_v53 = vpop.eup %4446 }
 0xe3e   :  { %v1972_v5 = vmul.f32 %v4445_v41, %v1971_v56  ;;  %v1978_v46 = vmul.f32 %v4447_v53, %v1946_v44  ;;  %vm1984_vm5 = vweird.f32 %v4447_v53 }
 0xe3f   :  { %vm1985_vm7 = vmor %vm1983_vm6, %vm1984_vm5 }
 0xe40   :  { %v1976_v43 = vsel %vm1975_vm4, %v4445_v41, %v1972_v5  ;;  %v1979_v57 = vmul.f32 %v4447_v53, %v1978_v46 }
 0xe41   :  { %v1989_v62 = vmul.f32 %v1976_v43, %v5430_v3 }
 0xe42   :  { %v1980_v49 = vmul.f32 0.5, %v1979_v57 }
 0xe43   :  { %v1994_v55 = vmul.f32 %v1991_v20, %v1989_v62 }
 0xe44   :  { %v1981_v60 = vsub.f32 1.5, %v1980_v49 }
 0xe45   :  { %v5456_v2 = vadd.f32 %v1996_v24, %v1994_v55 }
 0xe46   :  { %v1982_v1 = vmul.f32 %v4447_v53, %v1981_v60 }
 0xe47   :  { %v2015_v54 = vsel %vm40_vm0, %v5456_v2, 0.0 }
 0xe48   :  { %v1986_v63 = vsel %vm1985_vm7, %v4447_v53, %v1982_v1  ;;  %2016 = vadd.xlane.f32.xlu1 %v2015_v54  ;;  %v2102_v53 = vperm.slane %v5506_v32, 1 }
 0xe49   :  { %v1990_v39 = vmul.f32 %v1986_v63, %v5436_v8 }
 0xe4b   :  { %v1995_v6 = vmul.f32 %v1991_v20, %v1990_v39 }
 0xe4d   :  { %v5461_v10 = vadd.f32 %v1996_v24, %v1995_v6 }
 0xe4f   :  { %v2018_v3 = vsel %vm40_vm0, %v5461_v10, 0.0 }
 0xe50   :  { %2019 = vadd.xlane.f32.xlu2 %v2018_v3 }
 0xea3   :  { %v2011_v61 = vpop.xlane.xlu2 %2010 }
 0xea4   :  { %v2021_v7 = vmul.f32 %v2011_v61, %v4702_v14 }
 0xea6   :  { %v2025_v45 = vsub.f32 %v5446_v29, %v2021_v7 }
 0xea8   :  { %v2029_v4 = vmul.f32 %v2025_v45, %v2025_v45 }
 0xeaa   :  { %v2033_v30 = vsel %vm40_vm0, %v2029_v4, 0.0 }
 0xeab   :  { %v2014_v13 = vpop.xlane.xlu0 %2013  ;;  %2034 = vadd.xlane.f32.xlu0 %v2033_v30 }
 0xeac   :  { %v2022_v15 = vmul.f32 %v2014_v13, %v4702_v14 }
 0xeae   :  { %v5470_v8 = vsub.f32 %v5451_v50, %v2022_v15 }
 0xeb0   :  { %v2030_v0 = vmul.f32 %v5470_v8, %v5470_v8 }
 0xeb2   :  { %v2036_v16 = vsel %vm40_vm0, %v2030_v0, 0.0 }
 0xeb3   :  { %2037 = vadd.xlane.f32.xlu1 %v2036_v16 }
 0xebb   :  { %v2017_v21 = vpop.xlane.xlu1 %2016 }
 0xebc   :  { %v2023_v17 = vmul.f32 %v2017_v21, %v4702_v14 }
 0xebe   :  { %v5477_v12 = vsub.f32 %v5456_v2, %v2023_v17 }
 0xec0   :  { %v2031_v18 = vmul.f32 %v5477_v12, %v5477_v12 }
 0xec2   :  { %v2039_v11 = vsel %vm40_vm0, %v2031_v18, 0.0 }
 0xec3   :  { %v2020_v26 = vpop.xlane.xlu2 %2019  ;;  %2040 = vadd.xlane.f32.xlu2 %v2039_v11 }
 0xec4   :  { %v2024_v59 = vmul.f32 %v2020_v26, %v4702_v14 }
 0xec6   :  { %v5484_v42 = vsub.f32 %v5461_v10, %v2024_v59 }
 0xec8   :  { %v2032_v58 = vmul.f32 %v5484_v42, %v5484_v42 }
 0xeca   :  { %v2042_v20 = vsel %vm40_vm0, %v2032_v58, 0.0 }
 0xecb   :  { %2043 = vadd.xlane.f32.xlu0 %v2042_v20 }
 0xf1e   :  { %v2035_v24 = vpop.xlane.xlu0 %2034 }
 0xf1f   :  { %v2045_v31 = vmul.f32 %v2035_v24, %v4702_v14  ;;  %v4147_v24 = vld [vmem:[%s6171_s4 + $0xa0] sm:$0xff] }
 0xf21   :  { %v2049_v33 = vadd.f32 1e-05, %v2045_v31  ;;  %v4146_v31 = vld [vmem:[%s6171_s4 + $0x98] sm:$0xff] }
 0xf23   :  { %4448 = vrsqrt.f32 %v2049_v33  ;;  %vm2059_vm9 = vweird.f32 %v2049_v33 }
 0xf26   :  { %v2038_v22 = vpop.xlane.xlu1 %2037 }
 0xf27   :  { %v2046_v34 = vmul.f32 %v2038_v22, %v4702_v14  ;;  %v4145_v22 = vld [vmem:[%s6171_s4 + $0x90] sm:$0xff] }
 0xf29   :  { %v4449_v35 = vpop.eup %4448  ;;  %v2050_v27 = vadd.f32 1e-05, %v2046_v34 }
 0xf2a   :  { %v2054_v37 = vmul.f32 %v4449_v35, %v2049_v33  ;;  %vm2060_vm8 = vweird.f32 %v4449_v35 }
 0xf2b   :  { %4450 = vrsqrt.f32 %v2050_v27  ;;  %vm2061_vm10 = vmor %vm2059_vm9, %vm2060_vm8  ;;  %vm2069_vm12 = vweird.f32 %v2050_v27 }
 0xf2c   :  { %v2055_v38 = vmul.f32 %v4449_v35, %v2054_v37  ;;  %v4143_v37 = vld [vmem:[%s6171_s4 + $0x80] sm:$0xff] }
 0xf2e   :  { %v2056_v19 = vmul.f32 0.5, %v2055_v38 }
 0xf30   :  { %v2057_v40 = vsub.f32 1.5, %v2056_v19 }
 0xf31   :  { %v4451_v36 = vpop.eup %4450 }
 0xf32   :  { %v2058_v41 = vmul.f32 %v4449_v35, %v2057_v40  ;;  %v2064_v44 = vmul.f32 %v4451_v36, %v2050_v27  ;;  %vm2070_vm11 = vweird.f32 %v4451_v36 }
 0xf33   :  { %vm2071_vm13 = vmor %vm2069_vm12, %vm2070_vm11 }
 0xf34   :  { %v2062_v51 = vsel %vm2061_vm10, %v4449_v35, %v2058_v41  ;;  %v2065_v52 = vmul.f32 %v4451_v36, %v2064_v44  ;;  %v4144_v35 = vld [vmem:[%s6171_s4 + $0x88] sm:$0xff] }
 0xf35   :  { %v2093_v47 = vmul.f32 %v2062_v51, %v2025_v45 }
 0xf36   :  { %v2041_v56 = vpop.xlane.xlu2 %2040  ;;  %v2066_v5 = vmul.f32 0.5, %v2065_v52 }
 0xf37   :  { %v2047_v46 = vmul.f32 %v2041_v56, %v4702_v14  ;;  %v2098_v43 = vmul.f32 %v2097_v48, %v2093_v47 }
 0xf38   :  { %v2067_v57 = vsub.f32 1.5, %v2066_v5 }
 0xf39   :  { %v2051_v62 = vadd.f32 1e-05, %v2047_v46  ;;  %v2103_v49 = vadd.f32 %v2102_v53, %v2098_v43 }
 0xf3a   :  { %v2068_v55 = vmul.f32 %v4451_v36, %v2067_v57 }
 0xf3b   :  { %4452 = vrsqrt.f32 %v2051_v62  ;;  %4135 = vmatmul.msk.f32.vlgmr.msrb.gmra.mxu1 %vm40_vm0, %v2103_v49  ;;  %vm2079_vm1 = vweird.f32 %v2051_v62 }
 0xf3c   :  { %v2072_v60 = vsel %vm2071_vm13, %v4451_v36, %v2068_v55 }
 0xf3d   :  { %v2094_v54 = vmul.f32 %v2072_v60, %v5470_v8 }
 0xf3e   :  { %v2044_v1 = vpop.xlane.xlu0 %2043 }
 0xf3f   :  { %v2048_v63 = vmul.f32 %v2044_v1, %v4702_v14  ;;  %v2099_v39 = vmul.f32 %v2097_v48, %v2094_v54 }
 0xf41   :  { %v4453_v6 = vpop.eup %4452  ;;  %v2052_v3 = vadd.f32 1e-05, %v2048_v63  ;;  %v2104_v7 = vadd.f32 %v2102_v53, %v2099_v39 }
 0xf42   :  { %v2074_v61 = vmul.f32 %v4453_v6, %v2051_v62  ;;  %vm2080_vm15 = vweird.f32 %v4453_v6 }
 0xf43   :  { %4454 = vrsqrt.f32 %v2052_v3  ;;  %4136 = vmatmul.msk.f32.gmra.mxu1 %vm40_vm0, %v2104_v7  ;;  %vm2081_vm2 = vmor %vm2079_vm1, %vm2080_vm15  ;;  %vm2089_vm5 = vweird.f32 %v2052_v3 }
 0xf44   :  { %v2075_v45 = vmul.f32 %v4453_v6, %v2074_v61 }
 0xf46   :  { %v2076_v4 = vmul.f32 0.5, %v2075_v45 }
 0xf48   :  { %v2077_v30 = vsub.f32 1.5, %v2076_v4 }
 0xf49   :  { %v4455_v13 = vpop.eup %4454 }
 0xf4a   :  { %v2078_v15 = vmul.f32 %v4453_v6, %v2077_v30  ;;  %v2084_v0 = vmul.f32 %v4455_v13, %v2052_v3  ;;  %vm2090_vm4 = vweird.f32 %v4455_v13 }
 0xf4b   :  { %vm2091_vm6 = vmor %vm2089_vm5, %vm2090_vm4 }
 0xf4c   :  { %v2082_v8 = vsel %vm2081_vm2, %v4453_v6, %v2078_v15  ;;  %v2085_v16 = vmul.f32 %v4455_v13, %v2084_v0 }
 0xf4d   :  { %v2095_v21 = vmul.f32 %v2082_v8, %v5477_v12  ;;  %v4150_v12 = vld [vmem:[%s6171_s4 + $0xb8] sm:$0xff] }
 0xf4e   :  { %v2086_v17 = vmul.f32 0.5, %v2085_v16  ;;  %2264 = vmatpush.msrb.mxu0 %v4150_v12 }
 0xf4f   :  { %v2100_v18 = vmul.f32 %v2097_v48, %v2095_v21 }
 0xf50   :  { %v2087_v11 = vsub.f32 1.5, %v2086_v17  ;;  %2265 = vmatpush.msrb.mxu0 %v4149_v23 }
 0xf51   :  { %v2105_v26 = vadd.f32 %v2102_v53, %v2100_v18 }
 0xf52   :  { %v2088_v59 = vmul.f32 %v4455_v13, %v2087_v11  ;;  %2266 = vmatpush.msrb.mxu0 %v4148_v25 }
 0xf53   :  { %4137 = vmatmul.msk.f32.gmra.mxu1 %vm40_vm0, %v2105_v26 }
 0xf54   :  { %v2092_v58 = vsel %vm2091_vm6, %v4455_v13, %v2088_v59  ;;  %2267 = vmatpush.msrb.mxu0 %v4147_v24 }
 0xf55   :  { %v2096_v20 = vmul.f32 %v2092_v58, %v5484_v42  ;;  %v4129_v42 = vld [vmem:[%s6169_s2 + $0x2] sm:$0x3] }
 0xf56   :  { %v2112_v33 = vperm.slane %v4129_v42, 0  ;;  %2268 = vmatpush.msrb.mxu0 %v4146_v31 }
 0xf57   :  { %v2101_v28 = vmul.f32 %v2097_v48, %v2096_v20 }
 0xf58   :  { %2269 = vmatpush.msrb.mxu0 %v4145_v22 }
 0xf59   :  { %v2106_v9 = vadd.f32 %v2102_v53, %v2101_v28 }
 0xf5a   :  { %2270 = vmatpush.msrb.mxu0 %v4144_v35 }
 0xf5b   :  { %4138 = vmatmul.msk.f32.gmra.mxu1 %vm40_vm0, %v2106_v9 }
 0xf5c   :  { %2271 = vmatpush.msrb.mxu0 %v4143_v37 }
 0xfb8   :  { %v2142_v34 = vpop.f32.mrf.mxu1 }
 0xfb9   :  { %v2143_v27 = vadd.f32 %v2142_v34, %v2112_v33 }
 0xfbb   :  { %v4139_v38 = vmul.f32 -1.442695, %v2143_v27 }
 0xfbd   :  { %4456 = vpow2.f32 %v4139_v38 }
 0xfc0   :  { %v2145_v19 = vpop.f32.mrf.mxu1 }
 0xfc1   :  { %v2146_v40 = vadd.f32 %v2145_v19, %v2112_v33 }
 0xfc3   :  { %v4457_v36 = vpop.eup %4456  ;;  %v4140_v41 = vmul.f32 -1.442695, %v2146_v40 }
 0xfc4   :  { %v2166_v44 = vadd.f32 1.0, %v4457_v36 }
 0xfc5   :  { %4458 = vpow2.f32 %v4140_v41  ;;  %v2243_v41 = vperm.slane %v5506_v32, 2 }
 0xfc6   :  { %4460 = vrcp.f32 %v2166_v44  ;;  %v2181_v5 = vand.u32 2147483648, %v2166_v44  ;;  %v2179_v57 = vand.u32 2147483647, %v2166_v44  ;;  %vm2175_vm8 = vweird.f32 %v2166_v44 }
 0xfc8   :  { %v2182_v60 = vor.u32 1.1754944e-38, %v2181_v5  ;;  %vm2180_vm10 = vcmp.eq.f32.partialorder %v2179_v57, 8.507059e+37 }
 0xfcb   :  { %v4459_v48 = vpop.eup %4458 }
 0xfcc   :  { %v4461_v51 = vpop.eup %4460  ;;  %v2167_v52 = vadd.f32 1.0, %v4459_v48 }
 0xfcd   :  { %v2171_v47 = vmul.f32 %v4461_v51, %v2166_v44  ;;  %vm2176_vm7 = vweird.f32 %v4461_v51 }
 0xfce   :  { %4462 = vrcp.f32 %v2167_v52  ;;  %vm2177_vm9 = vmor %vm2175_vm8, %vm2176_vm7  ;;  %v2196_v61 = vand.u32 2147483648, %v2167_v52  ;;  %v2194_v4 = vand.u32 2147483647, %v2167_v52  ;;  %vm2190_vm12 = vweird.f32 %v2167_v52 }
 0xfcf   :  { %v2172_v56 = vsub.f32 1.0, %v2171_v47 }
 0xfd0   :  { %v2148_v53 = vpop.f32.mrf.mxu1  ;;  %v2197_v8 = vor.u32 1.1754944e-38, %v2196_v61  ;;  %vm2195_vm15 = vcmp.eq.f32.partialorder %v2194_v4, 8.507059e+37 }
 0xfd1   :  { %v2149_v46 = vadd.f32 %v2148_v53, %v2112_v33  ;;  %v2173_v43 = vmul.f32 %v4461_v51, %v2172_v56 }
 0xfd3   :  { %v4141_v62 = vmul.f32 -1.442695, %v2149_v46  ;;  %v2174_v49 = vadd.f32 %v4461_v51, %v2173_v43 }
 0xfd4   :  { %v4463_v55 = vpop.eup %4462 }
 0xfd5   :  { %4464 = vpow2.f32 %v4141_v62  ;;  %v2178_v1 = vsel %vm2177_vm9, %v4461_v51, %v2174_v49  ;;  %v2186_v54 = vmul.f32 %v4463_v55, %v2167_v52  ;;  %vm2191_vm11 = vweird.f32 %v4463_v55 }
 0xfd6   :  { %v2183_v63 = vsel %vm2180_vm10, %v2182_v60, %v2178_v1  ;;  %vm2192_vm13 = vmor %vm2190_vm12, %vm2191_vm11 }
 0xfd7   :  { %v2230_v39 = vmul.f32 %v2183_v63, %v2143_v27  ;;  %v2187_v6 = vsub.f32 1.0, %v2186_v54 }
 0xfd8   :  { %v2151_v3 = vpop.f32.mrf.mxu1 }
 0xfd9   :  { %v2152_v7 = vadd.f32 %v2151_v3, %v2112_v33  ;;  %v2188_v45 = vmul.f32 %v4463_v55, %v2187_v6  ;;  %4151 = vmatmul.msk.f32.vlgmr.msrb.gmra.mxu0 %vm293_vm3, %v2230_v39 }
 0xfdb   :  { %v4465_v30 = vpop.eup %4464  ;;  %v4142_v13 = vmul.f32 -1.442695, %v2152_v7  ;;  %v2189_v15 = vadd.f32 %v4463_v55, %v2188_v45 }
 0xfdc   :  { %v2168_v0 = vadd.f32 1.0, %v4465_v30 }
 0xfdd   :  { %4466 = vpow2.f32 %v4142_v13  ;;  %v2193_v16 = vsel %vm2192_vm13, %v4463_v55, %v2189_v15 }
 0xfde   :  { %4468 = vrcp.f32 %v2168_v0  ;;  %v2198_v21 = vsel %vm2195_vm15, %v2197_v8, %v2193_v16  ;;  %v2211_v20 = vand.u32 2147483648, %v2168_v0  ;;  %v2209_v9 = vand.u32 2147483647, %v2168_v0 }
 0xfdf   :  { %v2231_v17 = vmul.f32 %v2198_v21, %v2146_v40  ;;  %vm2205_vm2 = vweird.f32 %v2168_v0 }
 0xfe0   :  { %v2212_v25 = vor.u32 1.1754944e-38, %v2211_v20  ;;  %vm2210_vm5 = vcmp.eq.f32.partialorder %v2209_v9, 8.507059e+37  ;;  %v4176_v20 = vld [vmem:[%s6172_s5 + $0x158] sm:$0xff]  ;;  %v4166_v9 = vld [vmem:[%s6172_s5 + $0x110] sm:$0xff] }
 0xfe1   :  { %4152 = vmatmul.msk.f32.gmra.mxu0 %vm293_vm3, %v2231_v17  ;;  %2497 = vmatpush.msra.mxu1 %v4176_v20 }
 0xfe3   :  { %v4467_v18 = vpop.eup %4466 }
 0xfe4   :  { %v4469_v11 = vpop.eup %4468  ;;  %v2169_v26 = vadd.f32 1.0, %v4467_v18 }
 0xfe5   :  { %v2201_v59 = vmul.f32 %v4469_v11, %v2168_v0  ;;  %vm2206_vm1 = vweird.f32 %v4469_v11 }
 0xfe6   :  { %4470 = vrcp.f32 %v2169_v26  ;;  %vm2207_vm4 = vmor %vm2205_vm2, %vm2206_vm1  ;;  %v2226_v34 = vand.u32 2147483648, %v2169_v26  ;;  %v2224_v27 = vand.u32 2147483647, %v2169_v26  ;;  %vm2220_vm7 = vweird.f32 %v2169_v26 }
 0xfe7   :  { %v2202_v58 = vsub.f32 1.0, %v2201_v59  ;;  %v4158_v59 = vld [vmem:[%s6172_s5 + $0xd8] sm:$0xff] }
 0xfe8   :  { %v2227_v38 = vor.u32 1.1754944e-38, %v2226_v34  ;;  %vm2225_vm9 = vcmp.eq.f32.partialorder %v2224_v27, 8.507059e+37  ;;  %2423 = vmatpush.msra.mxu2 %v4158_v59 }
 0xfe9   :  { %v2203_v28 = vmul.f32 %v4469_v11, %v2202_v58  ;;  %v4167_v58 = vld [vmem:[%s6172_s5 + $0x118] sm:$0xff] }
 0xfea   :  { %2460 = vmatpush.msra.mxu3 %v4167_v58 }
 0xfeb   :  { %v2204_v12 = vadd.f32 %v4469_v11, %v2203_v28  ;;  %v4157_v28 = vld [vmem:[%s6172_s5 + $0xd0] sm:$0xff] }
 0xfec   :  { %v4471_v23 = vpop.eup %4470  ;;  %2424 = vmatpush.msra.mxu2 %v4157_v28  ;;  %2461 = vmatpush.msra.mxu3 %v4166_v9 }
 0xfed   :  { %v2208_v42 = vsel %vm2207_vm4, %v4469_v11, %v2204_v12  ;;  %v2216_v24 = vmul.f32 %v4471_v23, %v2169_v26  ;;  %vm2221_vm6 = vweird.f32 %v4471_v23  ;;  %v4175_v12 = vld [vmem:[%s6172_s5 + $0x150] sm:$0xff] }
 0xfee   :  { %v2213_v31 = vsel %vm2210_vm5, %v2212_v25, %v2208_v42  ;;  %vm2222_vm8 = vmor %vm2220_vm7, %vm2221_vm6  ;;  %2498 = vmatpush.msra.mxu1 %v4175_v12  ;;  %v4165_v25 = vld [vmem:[%s6172_s5 + $0x108] sm:$0xff] }
 0xfef   :  { %v2232_v33 = vmul.f32 %v2213_v31, %v2149_v46  ;;  %v2217_v22 = vsub.f32 1.0, %v2216_v24  ;;  %v4174_v42 = vld [vmem:[%s6172_s5 + $0x148] sm:$0xff]  ;;  %2462 = vmatpush.msra.mxu3 %v4165_v25  ;;  %v4155_v24 = vld [vmem:[%s6172_s5 + $0xc0] sm:$0xff] }
 0xff0   :  { %2499 = vmatpush.msra.mxu1 %v4174_v42  ;;  %v4164_v31 = vld [vmem:[%s6172_s5 + $0x100] sm:$0xff] }
 0xff1   :  { %v2218_v35 = vmul.f32 %v4471_v23, %v2217_v22  ;;  %4153 = vmatmul.msk.f32.gmra.mxu0 %vm293_vm3, %v2232_v33  ;;  %v4173_v33 = vld [vmem:[%s6172_s5 + $0x140] sm:$0xff]  ;;  %2463 = vmatpush.msra.mxu3 %v4164_v31 }
 0xff2   :  { %2500 = vmatpush.msra.mxu1 %v4173_v33 }
 0xff3   :  { %v2219_v37 = vadd.f32 %v4471_v23, %v2218_v35 }
 0xff5   :  { %v2223_v19 = vsel %vm2222_vm8, %v4471_v23, %v2219_v37  ;;  %v4156_v23 = vld [vmem:[%s6172_s5 + $0xc8] sm:$0xff] }
 0xff6   :  { %v2228_v40 = vsel %vm2225_vm9, %v2227_v38, %v2223_v19  ;;  %2425 = vmatpush.msra.mxu2 %v4156_v23 }
 0xff7   :  { %v2233_v36 = vmul.f32 %v2228_v40, %v2152_v7 }
 0xff8   :  { %2426 = vmatpush.msra.mxu2 %v4155_v24  ;;  %v4177_v24 = vld [vmem:[%s6173_s6 + $0xa] sm:$0x3] }
 0xff9   :  { %4154 = vmatmul.msk.f32.gmra.mxu0 %vm293_vm3, %v2233_v36  ;;  %v2484_v33 = vperm.slane %v4177_v24, 0 }
0x1056   :  { %v2273_v44 = vpop.f32.mrf.mxu0 }
0x1057   :  { %v2274_v48 = vadd.f32 %v2273_v44, %v2243_v41 }
0x1059   :  { %v2285_v51 = vmul.f32 0.5, %v2274_v48 }
0x105b   :  { %v5552_v52 = vadd.f32 %v2285_v51, %v5446_v29 }
0x105d   :  { %v2293_v47 = vsel %vm40_vm0, %v5552_v52, 0.0 }
0x105e   :  { %2294 = vadd.xlane.f32.xlu1 %v2293_v47  ;;  %v2276_v56 = vpop.f32.mrf.mxu0 }
0x105f   :  { %v2277_v53 = vadd.f32 %v2276_v56, %v2243_v41  ;;  %v2381_v56 = vperm.slane %v5506_v32, 3 }
0x1061   :  { %v2286_v5 = vmul.f32 0.5, %v2277_v53 }
0x1063   :  { %v5557_v46 = vadd.f32 %v2286_v5, %v5451_v50 }
0x1065   :  { %v2296_v43 = vsel %vm40_vm0, %v5557_v46, 0.0 }
0x1066   :  { %2297 = vadd.xlane.f32.xlu2 %v2296_v43  ;;  %v2386_v43 = vperm.slane %v5506_v32, 4 }
0x106e   :  { %v2279_v57 = vpop.f32.mrf.mxu0 }
0x106f   :  { %v2280_v62 = vadd.f32 %v2279_v57, %v2243_v41 }
0x1071   :  { %v2287_v49 = vmul.f32 0.5, %v2280_v62 }
0x1073   :  { %v5562_v29 = vadd.f32 %v2287_v49, %v5456_v2 }
0x1075   :  { %v2299_v55 = vsel %vm40_vm0, %v5562_v29, 0.0 }
0x1076   :  { %v2282_v60 = vpop.f32.mrf.mxu0  ;;  %2300 = vadd.xlane.f32.xlu0 %v2299_v55 }
0x1077   :  { %v2283_v1 = vadd.f32 %v2282_v60, %v2243_v41 }
0x1079   :  { %v2288_v54 = vmul.f32 0.5, %v2283_v1 }
0x107b   :  { %v5567_v50 = vadd.f32 %v2288_v54, %v5461_v10 }
0x107d   :  { %v2302_v63 = vsel %vm40_vm0, %v5567_v50, 0.0 }
0x107e   :  { %2303 = vadd.xlane.f32.xlu1 %v2302_v63 }
0x10d1   :  { %v2295_v39 = vpop.xlane.xlu1 %2294 }
0x10d2   :  { %v2305_v6 = vmul.f32 %v2295_v39, %v4702_v14 }
0x10d4   :  { %v5573_v2 = vsub.f32 %v5552_v52, %v2305_v6 }
0x10d6   :  { %v2313_v3 = vmul.f32 %v5573_v2, %v5573_v2 }
0x10d8   :  { %v2317_v61 = vsel %vm40_vm0, %v2313_v3, 0.0 }
0x10d9   :  { %v2298_v7 = vpop.xlane.xlu2 %2297  ;;  %2318 = vadd.xlane.f32.xlu2 %v2317_v61 }
0x10da   :  { %v2306_v10 = vmul.f32 %v2298_v7, %v4702_v14 }
0x10dc   :  { %v5580_v45 = vsub.f32 %v5557_v46, %v2306_v10 }
0x10de   :  { %v2314_v4 = vmul.f32 %v5580_v45, %v5580_v45 }
0x10e0   :  { %v2320_v30 = vsel %vm40_vm0, %v2314_v4, 0.0 }
0x10e1   :  { %2321 = vadd.xlane.f32.xlu0 %v2320_v30 }
0x10e9   :  { %v2301_v13 = vpop.xlane.xlu0 %2300 }
0x10ea   :  { %v2307_v15 = vmul.f32 %v2301_v13, %v4702_v14 }
0x10ec   :  { %v5587_v0 = vsub.f32 %v5562_v29, %v2307_v15 }
0x10ee   :  { %v2315_v8 = vmul.f32 %v5587_v0, %v5587_v0 }
0x10f0   :  { %v2323_v16 = vsel %vm40_vm0, %v2315_v8, 0.0 }
0x10f1   :  { %2324 = vadd.xlane.f32.xlu1 %v2323_v16  ;;  %v2304_v21 = vpop.xlane.xlu1 %2303 }
0x10f2   :  { %v2308_v17 = vmul.f32 %v2304_v21, %v4702_v14 }
0x10f4   :  { %v5594_v18 = vsub.f32 %v5567_v50, %v2308_v17 }
0x10f6   :  { %v2316_v11 = vmul.f32 %v5594_v18, %v5594_v18 }
0x10f8   :  { %v2326_v26 = vsel %vm40_vm0, %v2316_v11, 0.0 }
0x10f9   :  { %2327 = vadd.xlane.f32.xlu2 %v2326_v26 }
0x114c   :  { %v2319_v22 = vpop.xlane.xlu2 %2318 }
0x114d   :  { %v2329_v34 = vmul.f32 %v2319_v22, %v4702_v14  ;;  %v4168_v22 = vld [vmem:[%s6173_s6 + $0x8] sm:$0x3] }
0x114f   :  { %v2333_v35 = vadd.f32 1e-05, %v2329_v34 }
0x1151   :  { %4472 = vrsqrt.f32 %v2333_v35  ;;  %vm2343_vm11 = vweird.f32 %v2333_v35 }
0x1154   :  { %v2322_v27 = vpop.xlane.xlu0 %2321 }
0x1155   :  { %v2330_v37 = vmul.f32 %v2322_v27, %v4702_v14  ;;  %v2447_v27 = vperm.slane %v4168_v22, 0 }
0x1157   :  { %v4473_v38 = vpop.eup %4472  ;;  %v2334_v19 = vadd.f32 1e-05, %v2330_v37 }
0x1158   :  { %v2338_v40 = vmul.f32 %v4473_v38, %v2333_v35  ;;  %vm2344_vm10 = vweird.f32 %v4473_v38 }
0x1159   :  { %4474 = vrsqrt.f32 %v2334_v19  ;;  %vm2345_vm12 = vmor %vm2343_vm11, %vm2344_vm10  ;;  %vm2353_vm15 = vweird.f32 %v2334_v19 }
0x115a   :  { %v2339_v36 = vmul.f32 %v4473_v38, %v2338_v40 }
0x115c   :  { %v2340_v41 = vmul.f32 0.5, %v2339_v36 }
0x115e   :  { %v2341_v44 = vsub.f32 1.5, %v2340_v41 }
0x115f   :  { %v4475_v48 = vpop.eup %4474 }
0x1160   :  { %v2342_v51 = vmul.f32 %v4473_v38, %v2341_v44  ;;  %v2348_v47 = vmul.f32 %v4475_v48, %v2334_v19  ;;  %vm2354_vm13 = vweird.f32 %v4475_v48  ;;  %v4199_v44 = vld [vmem:[%s6172_s5 + $0xf8] sm:$0xff] }
0x1161   :  { %vm2355_vm1 = vmor %vm2353_vm15, %vm2354_vm13 }
0x1162   :  { %v2346_v53 = vsel %vm2345_vm12, %v4473_v38, %v2342_v51  ;;  %v2349_v5 = vmul.f32 %v4475_v48, %v2348_v47  ;;  %v4159_v38 = vld [vmem:[%s6173_s6 + $0x6] sm:$0x3]  ;;  %v4198_v51 = vld [vmem:[%s6172_s5 + $0xf0] sm:$0xff] }
0x1163   :  { %v2377_v57 = vmul.f32 %v2346_v53, %v5573_v2  ;;  %v2398_v36 = vperm.slane %v4159_v38, 0  ;;  %v4196_v53 = vld [vmem:[%s6172_s5 + $0xe0] sm:$0xff] }
0x1164   :  { %v2325_v62 = vpop.xlane.xlu1 %2324  ;;  %v2350_v49 = vmul.f32 0.5, %v2349_v5 }
0x1165   :  { %v2331_v55 = vmul.f32 %v2325_v62, %v4702_v14  ;;  %v2382_v60 = vmul.f32 %v2381_v56, %v2377_v57 }
0x1166   :  { %v2351_v1 = vsub.f32 1.5, %v2350_v49 }
0x1167   :  { %v2335_v54 = vadd.f32 1e-05, %v2331_v55  ;;  %v5641_v63 = vadd.f32 %v2386_v43, %v2382_v60 }
0x1168   :  { %v2352_v39 = vmul.f32 %v4475_v48, %v2351_v1 }
0x1169   :  { %4476 = vrsqrt.f32 %v2335_v54  ;;  %4160 = vmatmul.msk.f32.vlgmr.msra.gmra.mxu2 %vm40_vm0, %v5641_v63  ;;  %4169 = vmatmul.msk.f32.vlgmr.msra.gmra.mxu3 %vm40_vm0, %v5641_v63  ;;  %vm2363_vm4 = vweird.f32 %v2335_v54 }
0x116a   :  { %v2356_v32 = vsel %vm2355_vm1, %v4475_v48, %v2352_v39  ;;  %4178 = vmatmul.msk.f32.vlgmr.msra.gmra.mxu1 %vm40_vm0, %v5641_v63 }
0x116b   :  { %v2378_v6 = vmul.f32 %v2356_v32, %v5580_v45  ;;  %v4208_v32 = vld [vmem:[%s6172_s5 + $0x138] sm:$0xff] }
0x116c   :  { %v2328_v2 = vpop.xlane.xlu2 %2327 }
0x116d   :  { %v2332_v3 = vmul.f32 %v2328_v2, %v4702_v14  ;;  %v2383_v61 = vmul.f32 %v2381_v56, %v2378_v6  ;;  %v4207_v2 = vld [vmem:[%s6172_s5 + $0x130] sm:$0xff] }
0x116f   :  { %v4477_v7 = vpop.eup %4476  ;;  %v2336_v10 = vadd.f32 1e-05, %v2332_v3  ;;  %v5651_v4 = vadd.f32 %v2386_v43, %v2383_v61  ;;  %v4206_v3 = vld [vmem:[%s6172_s5 + $0x128] sm:$0xff]  ;;  %v4205_v61 = vld [vmem:[%s6172_s5 + $0x120] sm:$0xff] }
0x1170   :  { %v2358_v30 = vmul.f32 %v4477_v7, %v2335_v54  ;;  %vm2364_vm2 = vweird.f32 %v4477_v7 }
0x1171   :  { %4478 = vrsqrt.f32 %v2336_v10  ;;  %4161 = vmatmul.msk.f32.gmra.mxu2 %vm40_vm0, %v5651_v4  ;;  %4170 = vmatmul.msk.f32.gmra.mxu3 %vm40_vm0, %v5651_v4  ;;  %vm2365_vm5 = vmor %vm2363_vm4, %vm2364_vm2  ;;  %vm2373_vm7 = vweird.f32 %v2336_v10 }
0x1172   :  { %v2359_v13 = vmul.f32 %v4477_v7, %v2358_v30  ;;  %4179 = vmatmul.msk.f32.gmra.mxu1 %vm40_vm0, %v5651_v4 }
0x1174   :  { %v2360_v45 = vmul.f32 0.5, %v2359_v13 }
0x1176   :  { %v2361_v15 = vsub.f32 1.5, %v2360_v45 }
0x1177   :  { %v4479_v8 = vpop.eup %4478 }
0x1178   :  { %v2362_v16 = vmul.f32 %v4477_v7, %v2361_v15  ;;  %v2368_v21 = vmul.f32 %v4479_v8, %v2336_v10  ;;  %vm2374_vm6 = vweird.f32 %v4479_v8 }
0x1179   :  { %vm2375_vm8 = vmor %vm2373_vm7, %vm2374_vm6 }
0x117a   :  { %v2366_v17 = vsel %vm2365_vm5, %v4477_v7, %v2362_v16  ;;  %v2369_v11 = vmul.f32 %v4479_v8, %v2368_v21 }
0x117b   :  { %v2379_v26 = vmul.f32 %v2366_v17, %v5587_v0 }
0x117c   :  { %v2370_v59 = vmul.f32 0.5, %v2369_v11 }
0x117d   :  { %v2384_v58 = vmul.f32 %v2381_v56, %v2379_v26 }
0x117e   :  { %v2371_v20 = vsub.f32 1.5, %v2370_v59  ;;  %v4209_v59 = vld [vmem:[%s6173_s6 + $0x8] sm:$0x3] }
0x117f   :  { %v5660_v28 = vadd.f32 %v2386_v43, %v2384_v58  ;;  %v2735_v58 = vperm.slane %v4209_v59, 1  ;;  %v4195_v59 = vld [vmem:[%s6174_s7 + $0x28] sm:$0xff] }
0x1180   :  { %v2372_v9 = vmul.f32 %v4479_v8, %v2371_v20 }
0x1181   :  { %4162 = vmatmul.msk.f32.gmra.mxu2 %vm40_vm0, %v5660_v28  ;;  %4171 = vmatmul.msk.f32.gmra.mxu3 %vm40_vm0, %v5660_v28 }
0x1182   :  { %v2376_v12 = vsel %vm2375_vm8, %v4479_v8, %v2372_v9  ;;  %4180 = vmatmul.msk.f32.gmra.mxu1 %vm40_vm0, %v5660_v28 }
0x1183   :  { %v2380_v0 = vmul.f32 %v2376_v12, %v5594_v18 }
0x1185   :  { %v2385_v23 = vmul.f32 %v2381_v56, %v2380_v0  ;;  %v4197_v56 = vld [vmem:[%s6172_s5 + $0xe8] sm:$0xff] }
0x1187   :  { %v5669_v25 = vadd.f32 %v2386_v43, %v2385_v23 }
0x1189   :  { %4163 = vmatmul.msk.f32.gmra.mxu2 %vm40_vm0, %v5669_v25  ;;  %4172 = vmatmul.msk.f32.gmra.mxu3 %vm40_vm0, %v5669_v25 }
0x118a   :  { %4181 = vmatmul.msk.f32.gmra.mxu1 %vm40_vm0, %v5669_v25 }
0x11e7   :  { %v2502_v42 = vpop.f32.mrf.mxu1 }
0x11e8   :  { %v2503_v35 = vadd.f32 %v2502_v42, %v2484_v33 }
0x11ec   :  { %v2465_v31 = vpop.f32.mrf.mxu3  ;;  %v2428_v40 = vpop.f32.mrf.mxu2 }
0x11ed   :  { %v2466_v41 = vadd.f32 %v2465_v31, %v2447_v27  ;;  %v2429_v48 = vadd.f32 %v2428_v40, %v2398_v36 }
0x11ef   :  { %v2505_v18 = vpop.f32.mrf.mxu1 }
0x11f0   :  { %v2506_v34 = vadd.f32 %v2505_v18, %v2484_v33 }
0x11f2   :  { %2652 = vmatpush.msrb.mxu3 %v2506_v34 }
0x11f4   :  { %2653 = vmatpush.msrb.mxu3 %v2503_v35  ;;  %v2468_v37 = vpop.f32.mrf.mxu3  ;;  %v2431_v5 = vpop.f32.mrf.mxu2 }
0x11f5   :  { %v2469_v19 = vadd.f32 %v2468_v37, %v2447_v27  ;;  %v2432_v57 = vadd.f32 %v2431_v5, %v2398_v36 }
0x11f7   :  { %4182 = vmatpush.xpose.msk.msra.mxu0 %vm562_vm14, %v2469_v19 }
0x11fb   :  { %4183 = vmatpush.xpose.msk.msra.mxu0 %vm562_vm14, %v2466_v41 }
0x11fe   :  { %4184 = vmatmul.msk.f32.vlgmr.msra.gmra.mxu0 %vm562_vm14, %v2429_v48 }
0x11ff   :  { %2712 = vmatpush.msrb.mxu0 %v4199_v44  ;;  %v2508_v47 = vpop.f32.mrf.mxu1 }
0x1200   :  { %v2509_v55 = vadd.f32 %v2508_v47, %v2484_v33 }
0x1201   :  { %2713 = vmatpush.msrb.mxu0 %v4198_v51 }
0x1203   :  { %2714 = vmatpush.msrb.mxu0 %v4197_v56 }
0x1204   :  { %v2471_v43 = vpop.f32.mrf.mxu3  ;;  %v2434_v54 = vpop.f32.mrf.mxu2 }
0x1205   :  { %2715 = vmatpush.msrb.mxu0 %v4196_v53  ;;  %v2472_v39 = vadd.f32 %v2471_v43, %v2447_v27  ;;  %v2435_v6 = vadd.f32 %v2434_v54, %v2398_v36 }
0x1206   :  { %4185 = vmatmul.msk.f32.gmra.mxu0 %vm562_vm14, %v2432_v57 }
0x1207   :  { %v2511_v62 = vpop.f32.mrf.mxu1 }
0x1208   :  { %v2512_v49 = vadd.f32 %v2511_v62, %v2484_v33 }
0x120a   :  { %2681 = vmatpush.msrb.mxu1 %v2512_v49 }
0x120c   :  { %2682 = vmatpush.msrb.mxu1 %v2509_v55  ;;  %v2474_v60 = vpop.f32.mrf.mxu3  ;;  %v2437_v7 = vpop.f32.mrf.mxu2 }
0x120d   :  { %v2475_v1 = vadd.f32 %v2474_v60, %v2447_v27  ;;  %v2438_v10 = vadd.f32 %v2437_v7, %v2398_v36 }
0x120e   :  { %4201 = vmatmul.msk.f32.vlgmr.msrb.gmra.mxu0 %vm40_vm0, %v5641_v63 }
0x120f   :  { %4186 = vmatpush.xpose.msk.msrb.mxu2 %vm562_vm14, %v2475_v1 }
0x1213   :  { %4187 = vmatpush.xpose.msk.msrb.mxu2 %vm562_vm14, %v2472_v39 }
0x1216   :  { %4188 = vmatmul.msk.f32.vlgmr.msrb.gmra.mxu2 %vm562_vm14, %v2435_v6  ;;  %4202 = vmatmul.msk.f32.gmra.mxu0 %vm40_vm0, %v5651_v4 }
0x1217   :  { %2748 = vmatpush.msra.mxu2 %v4208_v32  ;;  %v4200_v32 = vld [vmem:[%s6173_s6 + $0x6] sm:$0x3] }
0x1219   :  { %2749 = vmatpush.msra.mxu2 %v4207_v2  ;;  %v2699_v2 = vperm.slane %v4200_v32, 1 }
0x121b   :  { %2750 = vmatpush.msra.mxu2 %v4206_v3 }
0x121d   :  { %2751 = vmatpush.msra.mxu2 %v4205_v61 }
0x121e   :  { %4189 = vmatmul.msk.f32.gmra.mxu2 %vm562_vm14, %v2438_v10  ;;  %4203 = vmatmul.msk.f32.gmra.mxu0 %vm40_vm0, %v5660_v28 }
0x1226   :  { %4210 = vmatmul.msk.f32.vlgmr.msra.gmra.mxu2 %vm40_vm0, %v5641_v63  ;;  %4204 = vmatmul.msk.f32.gmra.mxu0 %vm40_vm0, %v5669_v25 }
0x122e   :  { %4211 = vmatmul.msk.f32.gmra.mxu2 %vm40_vm0, %v5651_v4 }
0x1236   :  { %4212 = vmatmul.msk.f32.gmra.mxu2 %vm40_vm0, %v5660_v28 }
0x123e   :  { %4213 = vmatmul.msk.f32.gmra.mxu2 %vm40_vm0, %v5669_v25 }
0x127b   :  { %v2543_v21 = vpop.f32.mrf.mxu0 }
0x127c   :  { %v2584_v17 = vmul.f32 0.25, %v2543_v21  ;;  %v4217_v21 = vld [vmem:[%s6172_s5 + $0x178] sm:$0xff] }
0x127d   :  { %2784 = vmatpush.msra.mxu3 %v4217_v21 }
0x127e   :  { %v2588_v26 = vsel %vm562_vm14, %v2584_v17, -inf }
0x1283   :  { %v2546_v34 = vpop.f32.mrf.mxu0 }
0x1284   :  { %v2585_v35 = vmul.f32 0.25, %v2546_v34 }
0x1286   :  { %v2591_v40 = vsel %vm562_vm14, %v2585_v35, -inf }
0x128b   :  { %v2717_v1 = vpop.f32.mrf.mxu0 }
0x128c   :  { %v2718_v7 = vadd.f32 %v2717_v1, %v2699_v2 }
0x1299   :  { %v2578_v30 = vpop.f32.mrf.mxu2 }
0x129a   :  { %v2586_v13 = vmul.f32 0.25, %v2578_v30  ;;  %v2720_v30 = vpop.f32.mrf.mxu0 }
0x129c   :  { %v2594_v45 = vsel %vm562_vm14, %v2586_v13, -inf }
0x129d   :  { %2595 = vmax.xlane.f32.xlu0 %v2594_v45 }
0x12a1   :  { %v2581_v15 = vpop.f32.mrf.mxu2 }
0x12a2   :  { %v2587_v8 = vmul.f32 0.25, %v2581_v15  ;;  %v2723_v45 = vpop.f32.mrf.mxu0 }
0x12a3   :  { %v2724_v15 = vadd.f32 %v2723_v45, %v2699_v2 }
0x12a4   :  { %v2597_v16 = vsel %vm562_vm14, %v2587_v8, -inf }
0x12a5   :  { %2598 = vmax.xlane.f32.xlu1 %v2597_v16 }
0x12a9   :  { %v2753_v11 = vpop.f32.mrf.mxu2 }
0x12aa   :  { %v2754_v12 = vadd.f32 %v2753_v11, %v2735_v58  ;;  %v4215_v11 = vld [vmem:[%s6172_s5 + $0x168] sm:$0xff] }
0x12ad   :  { %2589 = vmax.xlane.f32.xlu1 %v2588_v26  ;;  %v4214_v26 = vld [vmem:[%s6172_s5 + $0x160] sm:$0xff] }
0x12b1   :  { %v2756_v20 = vpop.f32.mrf.mxu2 }
0x12b2   :  { %v2757_v9 = vadd.f32 %v2756_v20, %v2735_v58 }
0x12b4   :  { %4223 = vmatpush.xpose.msk.msra.mxu1 %vm562_vm14, %v2757_v9 }
0x12b8   :  { %4224 = vmatpush.xpose.msk.msra.mxu1 %vm562_vm14, %v2754_v12 }
0x12b9   :  { %v2759_v48 = vpop.f32.mrf.mxu2 }
0x12ba   :  { %v2760_v55 = vadd.f32 %v2759_v48, %v2735_v58 }
0x12c1   :  { %v2762_v47 = vpop.f32.mrf.mxu2 }
0x12c2   :  { %v2763_v57 = vadd.f32 %v2762_v47, %v2735_v58  ;;  %v4194_v58 = vld [vmem:[%s6174_s7 + $0x20] sm:$0xff] }
0x1310   :  { %v2596_v0 = vpop.xlane.xlu0 %2595 }
0x1311   :  { %v2602_v23 = vsub.f32 %v2586_v13, %v2596_v0  ;;  %v2721_v13 = vadd.f32 %v2720_v30, %v2699_v2 }
0x1313   :  { %v2608_v42 = vmul.f32 1.442695, %v2602_v23 }
0x1315   :  { %4480 = vpow2.f32 %v2608_v42 }
0x1318   :  { %v2599_v24 = vpop.xlane.xlu1 %2598 }
0x1319   :  { %v2603_v31 = vsub.f32 %v2587_v8, %v2599_v24  ;;  %v2726_v8 = vpop.f32.mrf.mxu0 }
0x131a   :  { %v2727_v16 = vadd.f32 %v2726_v8, %v2699_v2 }
0x131b   :  { %v4481_v33 = vpop.eup %4480  ;;  %v2610_v18 = vmul.f32 1.442695, %v2603_v31 }
0x131c   :  { %v2618_v22 = vsel %vm562_vm14, %v4481_v33, 0.0 }
0x131d   :  { %4482 = vpow2.f32 %v2610_v18  ;;  %2619 = vadd.xlane.f32.xlu2 %v2618_v22 }
0x1320   :  { %v2590_v27 = vpop.xlane.xlu1 %2589 }
0x1321   :  { %v2600_v37 = vsub.f32 %v2584_v17, %v2590_v27  ;;  %v4216_v17 = vld [vmem:[%s6172_s5 + $0x170] sm:$0xff] }
0x1322   :  { %2785 = vmatpush.msra.mxu3 %v4216_v17 }
0x1323   :  { %v4483_v38 = vpop.eup %4482  ;;  %v2604_v19 = vmul.f32 1.442695, %v2600_v37 }
0x1324   :  { %v2621_v36 = vsel %vm562_vm14, %v4483_v38, 0.0  ;;  %2786 = vmatpush.msra.mxu3 %v4215_v11 }
0x1325   :  { %4484 = vpow2.f32 %v2604_v19  ;;  %2592 = vmax.xlane.f32.xlu2 %v2591_v40  ;;  %2622 = vadd.xlane.f32.xlu0 %v2621_v36 }
0x1326   :  { %2787 = vmatpush.msra.mxu3 %v4214_v26 }
0x132b   :  { %v4485_v41 = vpop.eup %4484 }
0x132c   :  { %v2612_v44 = vsel %vm562_vm14, %v4485_v41, 0.0 }
0x132d   :  { %2613 = vadd.xlane.f32.xlu0 %v2612_v44 }
0x1390   :  { %v2620_v51 = vpop.xlane.xlu2 %2619 }
0x1391   :  { %4486 = vrcp.f32 %v2620_v51 }
0x1397   :  { %v4487_v56 = vpop.eup %4486 }
0x1398   :  { %v2630_v53 = vmul.f32 %v4487_v56, %v4481_v33  ;;  %v2593_v5 = vpop.xlane.xlu2 %2592  ;;  %v2623_v43 = vpop.xlane.xlu0 %2622 }
0x1399   :  { %v2601_v62 = vsub.f32 %v2585_v35, %v2593_v5  ;;  %4488 = vrcp.f32 %v2623_v43  ;;  %v4218_v43 = vld [vmem:[%s6173_s6 + $0xa] sm:$0x3] }
0x139a   :  { %4192 = vmatmul.msk.f32.vlgmr.msrb.gmra.mxu1 %vm562_vm14, %v2630_v53 }
0x139b   :  { %v2606_v49 = vmul.f32 1.442695, %v2601_v62  ;;  %4227 = vmatpush.xpose.msk.msrb.mxu1 %vm562_vm14, %v2763_v57 }
0x139d   :  { %4490 = vpow2.f32 %v2606_v49  ;;  %v2771_v49 = vperm.slane %v4218_v43, 1 }
0x139f   :  { %v4489_v60 = vpop.eup %4488  ;;  %4228 = vmatpush.xpose.msk.msrb.mxu1 %vm562_vm14, %v2760_v55 }
0x13a0   :  { %v2614_v54 = vpop.xlane.xlu0 %2613  ;;  %v2631_v39 = vmul.f32 %v4489_v60, %v4483_v38 }
0x13a1   :  { %4492 = vrcp.f32 %v2614_v54 }
0x13a2   :  { %4193 = vmatmul.msk.f32.gmra.mxu1 %vm562_vm14, %v2631_v39 }
0x13a3   :  { %v4491_v6 = vpop.eup %4490 }
0x13a4   :  { %v2615_v3 = vsel %vm562_vm14, %v4491_v6, 0.0 }
0x13a5   :  { %2616 = vadd.xlane.f32.xlu1 %v2615_v3 }
0x13a7   :  { %v4493_v61 = vpop.eup %4492 }
0x13a8   :  { %v2628_v10 = vmul.f32 %v4493_v61, %v4485_v41 }
0x13aa   :  { %4190 = vmatmul.msk.f32.vlgmr.msrb.gmra.mxu3 %vm562_vm14, %v2628_v10  ;;  %4225 = vmatmul.msk.f32.vlgmr.msra.gmra.mxu1 %vm562_vm14, %v2718_v7 }
0x13ab   :  { %3047 = vmatpush.msra.mxu1 %v4195_v59 }
0x13ad   :  { %3048 = vmatpush.msra.mxu1 %v4194_v58 }
0x13b2   :  { %4226 = vmatmul.msk.f32.gmra.mxu1 %vm562_vm14, %v2721_v13 }
0x13ba   :  { %4229 = vmatmul.msk.f32.vlgmr.msrb.gmra.mxu1 %vm562_vm14, %v2724_v15  ;;  %v4236_v15 = vld [vmem:[%s6174_s7 + $0x38] sm:$0xff] }
0x13bb   :  { %3006 = vmatpush.msrb.mxu3 %v4236_v15  ;;  %v4248_v15 = vld [vmem:[%s6175_s8 + $0x78] sm:$0xff] }
0x13c2   :  { %4230 = vmatmul.msk.f32.gmra.mxu1 %vm562_vm14, %v2727_v16 }
0x1417   :  { %v2684_v20 = vpop.f32.mrf.mxu1 }
0x1418   :  { %v2617_v9 = vpop.xlane.xlu1 %2616 }
0x1419   :  { %4494 = vrcp.f32 %v2617_v9 }
0x141f   :  { %v4495_v12 = vpop.eup %4494  ;;  %v2687_v0 = vpop.f32.mrf.mxu1 }
0x1420   :  { %v2629_v23 = vmul.f32 %v4495_v12, %v4491_v6 }
0x1422   :  { %4191 = vmatmul.msk.f32.gmra.mxu3 %vm562_vm14, %v2629_v23 }
0x1427   :  { %v2830_v42 = vpop.f32.mrf.mxu1 }
0x1428   :  { %v2871_v24 = vmul.f32 0.25, %v2830_v42 }
0x142a   :  { %4219 = vmatmul.msk.f32.vlgmr.msra.gmra.mxu3 %vm40_vm0, %v5641_v63  ;;  %v2875_v31 = vsel %vm562_vm14, %v2871_v24, -inf }
0x142b   :  { %2876 = vmax.xlane.f32.xlu2 %v2875_v31 }
0x142d   :  { %v2655_v33 = vpop.f32.mrf.mxu3 }
0x142e   :  { %4241 = vmatmul.msk.f32.vlgmr.msra.gmra.mxu1 %vm562_vm14, %v2655_v33 }
0x142f   :  { %v2833_v18 = vpop.f32.mrf.mxu1 }
0x1430   :  { %v2872_v22 = vmul.f32 0.25, %v2833_v18 }
0x1432   :  { %4220 = vmatmul.msk.f32.gmra.mxu3 %vm40_vm0, %v5651_v4  ;;  %v2878_v34 = vsel %vm562_vm14, %v2872_v22, -inf }
0x1433   :  { %2879 = vmax.xlane.f32.xlu0 %v2878_v34  ;;  %v5818_v34 = vld [vmem:[%s6168_s1 + $0x18] sm:$0xff] }
0x1437   :  { %v2865_v35 = vpop.f32.mrf.mxu1 }
0x1438   :  { %v2873_v27 = vmul.f32 0.25, %v2865_v35  ;;  %v3066_v35 = vperm.slane %v5818_v34, 5 }
0x143a   :  { %4221 = vmatmul.msk.f32.gmra.mxu3 %vm40_vm0, %v5660_v28  ;;  %v2881_v63 = vsel %vm562_vm14, %v2873_v27, -inf }
0x143b   :  { %2882 = vmax.xlane.f32.xlu1 %v2881_v63 }
0x143f   :  { %v2868_v37 = vpop.f32.mrf.mxu1 }
0x1440   :  { %v2874_v38 = vmul.f32 0.25, %v2868_v37 }
0x1442   :  { %4222 = vmatmul.msk.f32.gmra.mxu3 %vm40_vm0, %v5669_v25  ;;  %v2884_v19 = vsel %vm562_vm14, %v2874_v38, -inf }
0x1443   :  { %2885 = vmax.xlane.f32.xlu2 %v2884_v19 }
0x149e   :  { %v2877_v4 = vpop.xlane.xlu2 %2876 }
0x149f   :  { %v2887_v40 = vsub.f32 %v2871_v24, %v2877_v4 }
0x14a1   :  { %v2891_v36 = vmul.f32 1.442695, %v2887_v40 }
0x14a3   :  { %4496 = vpow2.f32 %v2891_v36 }
0x14a5   :  { %v2658_v41 = vpop.f32.mrf.mxu3 }
0x14a6   :  { %v2880_v44 = vpop.xlane.xlu0 %2879  ;;  %4242 = vmatmul.msk.f32.gmra.mxu1 %vm562_vm14, %v2658_v41 }
0x14a7   :  { %v2888_v28 = vsub.f32 %v2872_v22, %v2880_v44 }
0x14a9   :  { %v4497_v48 = vpop.eup %4496  ;;  %v2893_v51 = vmul.f32 1.442695, %v2888_v28 }
0x14aa   :  { %v2899_v47 = vsel %vm562_vm14, %v4497_v48, 0.0 }
0x14ab   :  { %4498 = vpow2.f32 %v2893_v51  ;;  %2900 = vadd.xlane.f32.xlu0 %v2899_v47  ;;  %v3050_v33 = vpop.f32.mrf.mxu1 }
0x14ad   :  { %v2789_v56 = vpop.f32.mrf.mxu3 }
0x14ae   :  { %4243 = vmatmul.msk.f32.gmra.mxu1 %vm562_vm14, %v2684_v20  ;;  %v2883_v25 = vpop.xlane.xlu1 %2882  ;;  %v2790_v39 = vadd.f32 %v2789_v56, %v2771_v49 }
0x14af   :  { %v2889_v53 = vsub.f32 %v2873_v27, %v2883_v25 }
0x14b1   :  { %v4499_v5 = vpop.eup %4498  ;;  %v2895_v57 = vmul.f32 1.442695, %v2889_v53 }
0x14b2   :  { %v2902_v62 = vsel %vm562_vm14, %v4499_v5, 0.0 }
0x14b3   :  { %4500 = vpow2.f32 %v2895_v57  ;;  %2903 = vadd.xlane.f32.xlu1 %v2902_v62 }
0x14b5   :  { %v2792_v55 = vpop.f32.mrf.mxu3 }
0x14b6   :  { %v2793_v60 = vadd.f32 %v2792_v55, %v2771_v49  ;;  %v2886_v1 = vpop.xlane.xlu2 %2885  ;;  %4244 = vmatmul.msk.f32.gmra.mxu1 %vm562_vm14, %v2687_v0  ;;  %v4235_v0 = vld [vmem:[%s6174_s7 + $0x30] sm:$0xff] }
0x14b7   :  { %v2890_v54 = vsub.f32 %v2874_v38, %v2886_v1  ;;  %3007 = vmatpush.msrb.mxu3 %v4235_v0 }
0x14b8   :  { %2939 = vmatpush.msra.mxu0 %v2793_v60 }
0x14b9   :  { %v4501_v32 = vpop.eup %4500  ;;  %v2897_v6 = vmul.f32 1.442695, %v2890_v54 }
0x14ba   :  { %2940 = vmatpush.msra.mxu0 %v2790_v39  ;;  %v2905_v2 = vsel %vm562_vm14, %v4501_v32, 0.0 }
0x14bb   :  { %4502 = vpow2.f32 %v2897_v6  ;;  %2906 = vadd.xlane.f32.xlu2 %v2905_v2 }
0x14bc   :  { %3199 = vmatpush.msrb.mxu0 %v4248_v15 }
0x14bd   :  { %v2795_v3 = vpop.f32.mrf.mxu3 }
0x14be   :  { %v2796_v13 = vadd.f32 %v2795_v3, %v2771_v49 }
0x14c1   :  { %v4503_v61 = vpop.eup %4502 }
0x14c2   :  { %v2908_v7 = vsel %vm562_vm14, %v4503_v61, 0.0 }
0x14c3   :  { %2909 = vadd.xlane.f32.xlu0 %v2908_v7 }
0x14c5   :  { %v2798_v10 = vpop.f32.mrf.mxu3 }
0x14c6   :  { %v2799_v30 = vadd.f32 %v2798_v10, %v2771_v49 }
0x14c8   :  { %2968 = vmatpush.msrb.mxu2 %v2799_v30 }
0x14ca   :  { %2969 = vmatpush.msrb.mxu2 %v2796_v13 }
0x151e   :  { %v2901_v45 = vpop.xlane.xlu0 %2900 }
0x151f   :  { %4504 = vrcp.f32 %v2901_v45 }
0x1523   :  { %v3053_v38 = vpop.f32.mrf.mxu1 }
0x1525   :  { %v4505_v8 = vpop.eup %4504 }
0x1526   :  { %v2915_v16 = vmul.f32 %v4505_v8, %v4497_v48  ;;  %v2904_v21 = vpop.xlane.xlu1 %2903  ;;  %v4256_v8 = vld [vmem:[%s6175_s8 + $0x98] sm:$0xff] }
0x1527   :  { %4506 = vrcp.f32 %v2904_v21  ;;  %3234 = vmatpush.msra.mxu2 %v4256_v8  ;;  %v4255_v21 = vld [vmem:[%s6175_s8 + $0x90] sm:$0xff] }
0x1528   :  { %4231 = vmatmul.msk.f32.vlgmr.msra.gmra.mxu0 %vm562_vm14, %v2915_v16  ;;  %v4247_v16 = vld [vmem:[%s6175_s8 + $0x70] sm:$0xff] }
0x1529   :  { %3200 = vmatpush.msrb.mxu0 %v4247_v16  ;;  %3235 = vmatpush.msra.mxu2 %v4255_v21 }
0x152b   :  { %v3056_v44 = vpop.f32.mrf.mxu1 }
0x152d   :  { %v4507_v17 = vpop.eup %4506 }
0x152e   :  { %v2907_v11 = vpop.xlane.xlu2 %2906  ;;  %v2916_v26 = vmul.f32 %v4507_v17, %v4499_v5  ;;  %v4246_v17 = vld [vmem:[%s6175_s8 + $0x68] sm:$0xff] }
0x152f   :  { %4508 = vrcp.f32 %v2907_v11  ;;  %v4254_v11 = vld [vmem:[%s6175_s8 + $0x88] sm:$0xff]  ;;  %3201 = vmatpush.msrb.mxu0 %v4246_v17 }
0x1530   :  { %4232 = vmatmul.msk.f32.gmra.mxu0 %vm562_vm14, %v2916_v26  ;;  %3236 = vmatpush.msra.mxu2 %v4254_v11  ;;  %v4245_v26 = vld [vmem:[%s6175_s8 + $0x60] sm:$0xff] }
0x1531   :  { %3202 = vmatpush.msrb.mxu0 %v4245_v26 }
0x1533   :  { %v3059_v56 = vpop.f32.mrf.mxu1 }
0x1535   :  { %v4509_v59 = vpop.eup %4508 }
0x1536   :  { %v2917_v58 = vmul.f32 %v4509_v59, %v4501_v32  ;;  %v2910_v20 = vpop.xlane.xlu0 %2909  ;;  %v4253_v59 = vld [vmem:[%s6175_s8 + $0x80] sm:$0xff] }
0x1537   :  { %4510 = vrcp.f32 %v2910_v20  ;;  %3237 = vmatpush.msra.mxu2 %v4253_v59 }
0x1538   :  { %4233 = vmatmul.msk.f32.vlgmr.msrb.gmra.mxu2 %vm562_vm14, %v2917_v58 }
0x153d   :  { %v4511_v9 = vpop.eup %4510 }
0x153e   :  { %v2918_v12 = vmul.f32 %v4511_v9, %v4503_v61 }
0x1540   :  { %4234 = vmatmul.msk.f32.gmra.mxu2 %vm562_vm14, %v2918_v12 }
0x15a5   :  { %v2942_v23 = vpop.f32.mrf.mxu0 }
0x15a6   :  { %4237 = vmatmul.msk.f32.vlgmr.msrb.gmra.mxu3 %vm562_vm14, %v2942_v23 }
0x15ad   :  { %v2945_v42 = vpop.f32.mrf.mxu0 }
0x15ae   :  { %4238 = vmatmul.msk.f32.gmra.mxu3 %vm562_vm14, %v2945_v42 }
0x15bb   :  { %v2971_v24 = vpop.f32.mrf.mxu2 }
0x15bc   :  { %4239 = vmatmul.msk.f32.gmra.mxu3 %vm562_vm14, %v2971_v24 }
0x15c3   :  { %v2974_v31 = vpop.f32.mrf.mxu2 }
0x15c4   :  { %4240 = vmatmul.msk.f32.gmra.mxu3 %vm562_vm14, %v2974_v31 }
0x1629   :  { %v3009_v18 = vpop.f32.mrf.mxu3 }
0x162a   :  { %v3051_v22 = vadd.f32 %v3050_v33, %v3009_v18 }
0x162c   :  { %v3062_v27 = vadd.f32 %v3051_v22, %v5552_v52 }
0x162e   :  { %v5822_v63 = vadd.f32 %v3066_v35, %v3062_v27 }
0x1630   :  { %v3071_v37 = vsel %vm40_vm0, %v5822_v63, 0.0 }
0x1631   :  { %3072 = vadd.xlane.f32.xlu1 %v3071_v37  ;;  %v3012_v19 = vpop.f32.mrf.mxu3  ;;  %v3159_v37 = vperm.slane %v5818_v34, 6 }
0x1632   :  { %v3054_v4 = vadd.f32 %v3053_v38, %v3012_v19 }
0x1634   :  { %v3063_v40 = vadd.f32 %v3054_v4, %v5557_v46 }
0x1636   :  { %v5827_v36 = vadd.f32 %v3066_v35, %v3063_v40  ;;  %v3164_v40 = vperm.slane %v5818_v34, 7 }
0x1638   :  { %v3074_v41 = vsel %vm40_vm0, %v5827_v36, 0.0 }
0x1639   :  { %3075 = vadd.xlane.f32.xlu2 %v3074_v41 }
0x163f   :  { %v3015_v28 = vpop.f32.mrf.mxu3 }
0x1640   :  { %v3057_v52 = vadd.f32 %v3056_v44, %v3015_v28 }
0x1642   :  { %v3064_v48 = vadd.f32 %v3057_v52, %v5562_v29 }
0x1644   :  { %v5832_v51 = vadd.f32 %v3066_v35, %v3064_v48 }
0x1646   :  { %v3077_v47 = vsel %vm40_vm0, %v5832_v51, 0.0 }
0x1647   :  { %3078 = vadd.xlane.f32.xlu0 %v3077_v47  ;;  %v3018_v25 = vpop.f32.mrf.mxu3 }
0x1648   :  { %v3060_v46 = vadd.f32 %v3059_v56, %v3018_v25 }
0x164a   :  { %v3065_v53 = vadd.f32 %v3060_v46, %v5567_v50 }
0x164c   :  { %v5837_v5 = vadd.f32 %v3066_v35, %v3065_v53 }
0x164e   :  { %v3080_v43 = vsel %vm40_vm0, %v5837_v5, 0.0 }
0x164f   :  { %3081 = vadd.xlane.f32.xlu1 %v3080_v43 }
0x16a4   :  { %v3073_v57 = vpop.xlane.xlu1 %3072 }
0x16a5   :  { %v3083_v29 = vmul.f32 %v3073_v57, %v4702_v14 }
0x16a7   :  { %v3087_v62 = vsub.f32 %v5822_v63, %v3083_v29 }
0x16a9   :  { %v3091_v49 = vmul.f32 %v3087_v62, %v3087_v62 }
0x16ab   :  { %v3095_v55 = vsel %vm40_vm0, %v3091_v49, 0.0 }
0x16ac   :  { %v3076_v60 = vpop.xlane.xlu2 %3075  ;;  %3096 = vadd.xlane.f32.xlu2 %v3095_v55 }
0x16ad   :  { %v3084_v1 = vmul.f32 %v3076_v60, %v4702_v14 }
0x16af   :  { %v5846_v50 = vsub.f32 %v5827_v36, %v3084_v1 }
0x16b1   :  { %v3092_v54 = vmul.f32 %v5846_v50, %v5846_v50 }
0x16b3   :  { %v3098_v39 = vsel %vm40_vm0, %v3092_v54, 0.0 }
0x16b4   :  { %3099 = vadd.xlane.f32.xlu0 %v3098_v39 }
0x16ba   :  { %v3079_v32 = vpop.xlane.xlu0 %3078 }
0x16bb   :  { %v3085_v6 = vmul.f32 %v3079_v32, %v4702_v14 }
0x16bd   :  { %v5853_v2 = vsub.f32 %v5832_v51, %v3085_v6 }
0x16bf   :  { %v3093_v3 = vmul.f32 %v5853_v2, %v5853_v2 }
0x16c1   :  { %v3101_v61 = vsel %vm40_vm0, %v3093_v3, 0.0 }
0x16c2   :  { %3102 = vadd.xlane.f32.xlu1 %v3101_v61  ;;  %v3082_v7 = vpop.xlane.xlu1 %3081 }
0x16c3   :  { %v3086_v10 = vmul.f32 %v3082_v7, %v4702_v14 }
0x16c5   :  { %v5860_v30 = vsub.f32 %v5837_v5, %v3086_v10 }
0x16c7   :  { %v3094_v13 = vmul.f32 %v5860_v30, %v5860_v30 }
0x16c9   :  { %v3104_v45 = vsel %vm40_vm0, %v3094_v13, 0.0 }
0x16ca   :  { %3105 = vadd.xlane.f32.xlu2 %v3104_v45 }
0x171f   :  { %v3097_v58 = vpop.xlane.xlu2 %3096 }
0x1720   :  { %v3107_v20 = vmul.f32 %v3097_v58, %v4702_v14 }
0x1722   :  { %v3111_v9 = vadd.f32 1e-05, %v3107_v20 }
0x1724   :  { %4512 = vrsqrt.f32 %v3111_v9  ;;  %vm3121_vm9 = vweird.f32 %v3111_v9 }
0x1727   :  { %v3100_v12 = vpop.xlane.xlu0 %3099 }
0x1728   :  { %v3108_v0 = vmul.f32 %v3100_v12, %v4702_v14 }
0x172a   :  { %v4513_v23 = vpop.eup %4512  ;;  %v3112_v42 = vadd.f32 1e-05, %v3108_v0 }
0x172b   :  { %v3116_v24 = vmul.f32 %v4513_v23, %v3111_v9  ;;  %vm3122_vm14 = vweird.f32 %v4513_v23 }
0x172c   :  { %4514 = vrsqrt.f32 %v3112_v42  ;;  %vm3123_vm10 = vmor %vm3121_vm9, %vm3122_vm14  ;;  %vm3131_vm12 = vweird.f32 %v3112_v42 }
0x172d   :  { %v3117_v31 = vmul.f32 %v4513_v23, %v3116_v24 }
0x172f   :  { %v3118_v33 = vmul.f32 0.5, %v3117_v31 }
0x1731   :  { %v3119_v18 = vsub.f32 1.5, %v3118_v33 }
0x1732   :  { %v4515_v22 = vpop.eup %4514 }
0x1733   :  { %v3120_v35 = vmul.f32 %v4513_v23, %v3119_v18  ;;  %v3126_v27 = vmul.f32 %v4515_v22, %v3112_v42  ;;  %vm3132_vm11 = vweird.f32 %v4515_v22 }
0x1734   :  { %vm3133_vm13 = vmor %vm3131_vm12, %vm3132_vm11 }
0x1735   :  { %v3124_v38 = vsel %vm3123_vm10, %v4513_v23, %v3120_v35  ;;  %v3127_v19 = vmul.f32 %v4515_v22, %v3126_v27  ;;  %v3103_v4 = vpop.xlane.xlu1 %3102 }
0x1736   :  { %v3155_v41 = vmul.f32 %v3124_v38, %v3087_v62  ;;  %v3109_v44 = vmul.f32 %v3103_v4, %v4702_v14 }
0x1737   :  { %v3128_v28 = vmul.f32 0.5, %v3127_v19 }
0x1738   :  { %v3160_v52 = vmul.f32 %v3159_v37, %v3155_v41  ;;  %v3113_v48 = vadd.f32 1e-05, %v3109_v44 }
0x1739   :  { %v3129_v47 = vsub.f32 1.5, %v3128_v28 }
0x173a   :  { %v3165_v56 = vadd.f32 %v3164_v40, %v3160_v52  ;;  %4516 = vrsqrt.f32 %v3113_v48  ;;  %vm3141_vm1 = vweird.f32 %v3113_v48 }
0x173b   :  { %v3130_v25 = vmul.f32 %v4515_v22, %v3129_v47 }
0x173c   :  { %4249 = vmatmul.msk.f32.vlgmr.msrb.gmra.mxu0 %vm40_vm0, %v3165_v56  ;;  %4257 = vmatmul.msk.f32.vlgmr.msra.gmra.mxu2 %vm40_vm0, %v3165_v56 }
0x173d   :  { %v3134_v46 = vsel %vm3133_vm13, %v4515_v22, %v3130_v25  ;;  %v3106_v53 = vpop.xlane.xlu2 %3105 }
0x173e   :  { %v3156_v34 = vmul.f32 %v3134_v46, %v5846_v50  ;;  %v3110_v43 = vmul.f32 %v3106_v53, %v4702_v14 }
0x1740   :  { %v4517_v57 = vpop.eup %4516  ;;  %v3114_v29 = vadd.f32 1e-05, %v3110_v43  ;;  %v3161_v62 = vmul.f32 %v3159_v37, %v3156_v34  ;;  %v4272_v34 = vld [vmem:[%s6175_s8 + $0xb8] sm:$0xff]  ;;  %v4271_v43 = vld [vmem:[%s6175_s8 + $0xb0] sm:$0xff] }
0x1741   :  { %v3136_v49 = vmul.f32 %v4517_v57, %v3113_v48  ;;  %vm3142_vm15 = vweird.f32 %v4517_v57  ;;  %3551 = vmatpush.msra.mxu3 %v4272_v34 }
0x1742   :  { %4518 = vrsqrt.f32 %v3114_v29  ;;  %v3166_v55 = vadd.f32 %v3164_v40, %v3161_v62  ;;  %vm3143_vm2 = vmor %vm3141_vm1, %vm3142_vm15  ;;  %vm3151_vm5 = vweird.f32 %v3114_v29 }
0x1743   :  { %v3137_v60 = vmul.f32 %v4517_v57, %v3136_v49  ;;  %3552 = vmatpush.msra.mxu3 %v4271_v43 }
0x1744   :  { %4250 = vmatmul.msk.f32.gmra.mxu0 %vm40_vm0, %v3166_v55  ;;  %4258 = vmatmul.msk.f32.gmra.mxu2 %vm40_vm0, %v3166_v55 }
0x1745   :  { %v3138_v1 = vmul.f32 0.5, %v3137_v60 }
0x1747   :  { %v3139_v54 = vsub.f32 1.5, %v3138_v1  ;;  %v4270_v1 = vld [vmem:[%s6175_s8 + $0xa8] sm:$0xff] }
0x1748   :  { %v4519_v39 = vpop.eup %4518  ;;  %3553 = vmatpush.msra.mxu3 %v4270_v1 }
0x1749   :  { %v3140_v32 = vmul.f32 %v4517_v57, %v3139_v54  ;;  %v3146_v50 = vmul.f32 %v4519_v39, %v3114_v29  ;;  %vm3152_vm4 = vweird.f32 %v4519_v39 }
0x174a   :  { %vm3153_vm6 = vmor %vm3151_vm5, %vm3152_vm4 }
0x174b   :  { %v3144_v6 = vsel %vm3143_vm2, %v4517_v57, %v3140_v32  ;;  %v3147_v3 = vmul.f32 %v4519_v39, %v3146_v50  ;;  %v4269_v50 = vld [vmem:[%s6175_s8 + $0xa0] sm:$0xff] }
0x174c   :  { %v3157_v61 = vmul.f32 %v3144_v6, %v5853_v2  ;;  %v5909_v2 = vld [vmem:[%s6168_s1 + $0x20] sm:$0xff]  ;;  %3554 = vmatpush.msra.mxu3 %v4269_v50 }
0x174d   :  { %v3148_v7 = vmul.f32 0.5, %v3147_v3  ;;  %v3221_v11 = vperm.slane %v5909_v2, 1  ;;  %v5913_v27 = vperm.slane %v5909_v2, 0 }
0x174e   :  { %v3162_v10 = vmul.f32 %v3159_v37, %v3157_v61 }
0x174f   :  { %v3149_v13 = vsub.f32 1.5, %v3148_v7 }
0x1750   :  { %v3167_v45 = vadd.f32 %v3164_v40, %v3162_v10 }
0x1751   :  { %v3150_v15 = vmul.f32 %v4519_v39, %v3149_v13 }
0x1752   :  { %4251 = vmatmul.msk.f32.gmra.mxu0 %vm40_vm0, %v3167_v45  ;;  %4259 = vmatmul.msk.f32.gmra.mxu2 %vm40_vm0, %v3167_v45 }
0x1753   :  { %v3154_v8 = vsel %vm3153_vm6, %v4519_v39, %v3150_v15  ;;  %v4130_v39 = vld [vmem:[%s6176_s9 + $0x8] sm:$0x7f] }
0x1754   :  { %v3158_v16 = vmul.f32 %v3154_v8, %v5860_v30  ;;  %v5933_v7 = vperm.slane %v4130_v39, 0  ;;  %v5935_v10 = vperm.slane %v4130_v39, 1  ;;  %v5937_v15 = vperm.slane %v4130_v39, 2 }
0x1756   :  { %v3163_v21 = vmul.f32 %v3159_v37, %v3158_v16 }
0x1758   :  { %v3168_v17 = vadd.f32 %v3164_v40, %v3163_v21 }
0x175a   :  { %4252 = vmatmul.msk.f32.gmra.mxu0 %vm40_vm0, %v3168_v17  ;;  %4260 = vmatmul.msk.f32.gmra.mxu2 %vm40_vm0, %v3168_v17 }
0x17b9   :  { %v3204_v18 = vpop.f32.mrf.mxu0 }
0x17ba   :  { %v3205_v28 = vadd.f32 %v3204_v18, %v5913_v27 }
0x17bf   :  { %v3239_v26 = vpop.f32.mrf.mxu2 }
0x17c0   :  { %v3240_v59 = vadd.f32 %v3239_v26, %v3221_v11 }
0x17c1   :  { %v3207_v62 = vpop.f32.mrf.mxu0 }
0x17c2   :  { %v4261_v58 = vmul.f32 -1.442695, %v3240_v59  ;;  %v3208_v6 = vadd.f32 %v3207_v62, %v5913_v27 }
0x17c4   :  { %4520 = vpow2.f32 %v4261_v58 }
0x17c7   :  { %v3242_v20 = vpop.f32.mrf.mxu2 }
0x17c8   :  { %v3243_v9 = vadd.f32 %v3242_v20, %v3221_v11 }
0x17ca   :  { %v4521_v30 = vpop.eup %4520  ;;  %v4262_v12 = vmul.f32 -1.442695, %v3243_v9 }
0x17cb   :  { %v3263_v0 = vadd.f32 1.0, %v4521_v30 }
0x17cc   :  { %4522 = vpow2.f32 %v4262_v12  ;;  %v5945_v12 = vperm.slane %v4130_v39, 3 }
0x17cd   :  { %4524 = vrcp.f32 %v3263_v0  ;;  %v3278_v37 = vand.u32 2147483648, %v3263_v0  ;;  %v3276_v19 = vand.u32 2147483647, %v3263_v0  ;;  %vm3272_vm8 = vweird.f32 %v3263_v0 }
0x17cf   :  { %v3279_v44 = vor.u32 1.1754944e-38, %v3278_v37  ;;  %vm3277_vm9 = vcmp.eq.f32.partialorder %v3276_v19, 8.507059e+37  ;;  %v5951_v37 = vperm.slane %v4130_v39, 5 }
0x17d2   :  { %v4523_v23 = vpop.eup %4522 }
0x17d3   :  { %v4525_v42 = vpop.eup %4524  ;;  %v3264_v24 = vadd.f32 1.0, %v4523_v23  ;;  %v3210_v23 = vpop.f32.mrf.mxu0 }
0x17d4   :  { %v3268_v31 = vmul.f32 %v4525_v42, %v3263_v0  ;;  %vm3273_vm7 = vweird.f32 %v4525_v42 }
0x17d5   :  { %4526 = vrcp.f32 %v3264_v24  ;;  %v3245_v33 = vpop.f32.mrf.mxu2  ;;  %vm3274_vm14 = vmor %vm3272_vm8, %vm3273_vm7  ;;  %v3293_v57 = vand.u32 2147483648, %v3264_v24  ;;  %v3291_v55 = vand.u32 2147483647, %v3264_v24  ;;  %vm3287_vm11 = vweird.f32 %v3264_v24 }
0x17d6   :  { %v3269_v22 = vsub.f32 1.0, %v3268_v31  ;;  %v3246_v35 = vadd.f32 %v3245_v33, %v3221_v11  ;;  %v5948_v31 = vperm.slane %v4130_v39, 4 }
0x17d7   :  { %v3294_v3 = vor.u32 1.1754944e-38, %v3293_v57  ;;  %vm3292_vm13 = vcmp.eq.f32.partialorder %v3291_v55, 8.507059e+37 }
0x17d8   :  { %v3270_v38 = vmul.f32 %v4525_v42, %v3269_v22  ;;  %v4263_v4 = vmul.f32 -1.442695, %v3246_v35 }
0x17da   :  { %v3271_v40 = vadd.f32 %v4525_v42, %v3270_v38  ;;  %4528 = vpow2.f32 %v4263_v4  ;;  %v3211_v38 = vadd.f32 %v3210_v23, %v5913_v27 }
0x17db   :  { %v4527_v41 = vpop.eup %4526 }
0x17dc   :  { %v3275_v52 = vsel %vm3274_vm14, %v4525_v42, %v3271_v40  ;;  %v3283_v48 = vmul.f32 %v4527_v41, %v3264_v24  ;;  %vm3288_vm10 = vweird.f32 %v4527_v41  ;;  %v5954_v40 = vperm.slane %v4130_v39, 6 }
0x17dd   :  { %v3280_v47 = vsel %vm3277_vm9, %v3279_v44, %v3275_v52  ;;  %v3248_v56 = vpop.f32.mrf.mxu2  ;;  %vm3289_vm12 = vmor %vm3287_vm11, %vm3288_vm10 }
0x17de   :  { %v3327_v25 = vmul.f32 %v3280_v47, %v3205_v28  ;;  %v3284_v46 = vsub.f32 1.0, %v3283_v48  ;;  %v3249_v53 = vadd.f32 %v3248_v56, %v3221_v11 }
0x17e0   :  { %v4529_v29 = vpop.eup %4528  ;;  %3331 = vst.msk [vmem:[#allocation2 + $0x3] sm:$0xff] %vm40_vm0, %v3327_v25  ;;  %v3285_v49 = vmul.f32 %v4527_v41, %v3284_v46  ;;  %v4264_v60 = vmul.f32 -1.442695, %v3249_v53 }
0x17e1   :  { %v3265_v54 = vadd.f32 1.0, %v4529_v29 }
0x17e2   :  { %v3286_v32 = vadd.f32 %v4527_v41, %v3285_v49  ;;  %4530 = vpow2.f32 %v4264_v60  ;;  %v5963_v60 = vperm.slane %v5909_v2, 2 }
0x17e3   :  { %4532 = vrcp.f32 %v3265_v54  ;;  %v3306_v33 = vand.u32 2147483647, %v3265_v54  ;;  %v3308_v18 = vand.u32 2147483648, %v3265_v54  ;;  %vm3302_vm1 = vweird.f32 %v3265_v54 }
0x17e4   :  { %v3290_v61 = vsel %vm3289_vm12, %v4527_v41, %v3286_v32 }
0x17e5   :  { %v3295_v13 = vsel %vm3292_vm13, %v3294_v3, %v3290_v61  ;;  %vm3307_vm4 = vcmp.eq.f32.partialorder %v3306_v33, 8.507059e+37  ;;  %v3309_v25 = vor.u32 1.1754944e-38, %v3308_v18 }
0x17e6   :  { %v3328_v45 = vmul.f32 %v3295_v13, %v3208_v6  ;;  %v5969_v13 = vperm.slane %v5909_v2, 3 }
0x17e7   :  { %v3335_v8 = vld [vmem:[#allocation2] sm:$0xff] }
0x17e8   :  { %v3348_v16 = vld [vmem:[#allocation2 + $0x1] sm:$0xff]  ;;  %v4531_v17 = vpop.eup %4530  ;;  %3332 = vst.msk [vmem:[#allocation2 + $0xb] sm:$0xff] %vm40_vm0, %v3328_v45  ;;  %v3340_v11 = vmul.f32 %v5933_v7, %v3335_v8 }
0x17e9   :  { %v3361_v21 = vld [vmem:[#allocation2 + $0x2] sm:$0xff]  ;;  %v3353_v26 = vmul.f32 %v5935_v10, %v3348_v16  ;;  %v4533_v59 = vpop.eup %4532  ;;  %v5942_v58 = vadd.f32 1.0, %v4531_v17 }
0x17ea   :  { %v3298_v20 = vmul.f32 %v4533_v59, %v3265_v54  ;;  %v3366_v30 = vmul.f32 %v5937_v15, %v3361_v21  ;;  %v3374_v0 = vld [vmem:[#allocation2 + $0x3] sm:$0xff]  ;;  %vm3303_vm15 = vweird.f32 %v4533_v59 }
0x17eb   :  { %v3357_v9 = vadd.f32 %v3353_v26, %v3340_v11  ;;  %4534 = vrcp.f32 %v5942_v58  ;;  %v3379_v35 = vmul.f32 %v5945_v12, %v3374_v0  ;;  %vm3304_vm2 = vmor %vm3302_vm1, %vm3303_vm15  ;;  %v3323_v61 = vand.u32 2147483648, %v5942_v58  ;;  %v3213_v26 = vpop.f32.mrf.mxu0 }
0x17ec   :  { %v3299_v42 = vsub.f32 1.0, %v3298_v20  ;;  %v3321_v21 = vand.u32 2147483647, %v5942_v58  ;;  %vm3317_vm6 = vweird.f32 %v5942_v58  ;;  %v5978_v0 = vperm.slane %v5909_v2, 4 }
0x17ed   :  { %v3370_v24 = vadd.f32 %v3366_v30, %v3357_v9  ;;  %v3214_v18 = vadd.f32 %v3213_v26, %v5913_v27 }
0x17ee   :  { %v3300_v22 = vmul.f32 %v4533_v59, %v3299_v42  ;;  %v3324_v42 = vor.u32 1.1754944e-38, %v3323_v61  ;;  %vm3322_vm8 = vcmp.eq.f32.partialorder %v3321_v21, 8.507059e+37 }
0x17ef   :  { %v3387_v19 = vld [vmem:[#allocation2 + $0x4] sm:$0xff]  ;;  %v3383_v44 = vadd.f32 %v3379_v35, %v3370_v24  ;;  %v3388_v3 = vld [vmem:[#allocation2 + $0xc] sm:$0xff] }
0x17f0   :  { %v3400_v4 = vld [vmem:[#allocation2 + $0x5] sm:$0xff]  ;;  %v3301_v41 = vadd.f32 %v4533_v59, %v3300_v22  ;;  %v3392_v28 = vmul.f32 %v5948_v31, %v3387_v19  ;;  %v3401_v11 = vld [vmem:[#allocation2 + $0xd] sm:$0xff]  ;;  %v3393_v20 = vmul.f32 %v5948_v31, %v3388_v3 }
0x17f1   :  { %v3336_v52 = vld [vmem:[#allocation2 + $0x8] sm:$0xff]  ;;  %v4535_v56 = vpop.eup %4534  ;;  %v3405_v62 = vmul.f32 %v5951_v37, %v3400_v4  ;;  %v3406_v33 = vmul.f32 %v5951_v37, %v3401_v11 }
0x17f2   :  { %v3349_v48 = vld [vmem:[#allocation2 + $0x9] sm:$0xff]  ;;  %v3341_v53 = vmul.f32 %v5933_v7, %v3336_v52  ;;  %v3305_v43 = vsel %vm3304_vm2, %v4533_v59, %v3301_v41  ;;  %v3313_v57 = vmul.f32 %v4535_v56, %v5942_v58  ;;  %v3396_v29 = vadd.f32 %v3392_v28, %v3383_v44 }
0x17f3   :  { %v3362_v47 = vld [vmem:[#allocation2 + $0xa] sm:$0xff]  ;;  %v3354_v34 = vmul.f32 %v5935_v10, %v3349_v48  ;;  %v3310_v55 = vsel %vm3307_vm4, %v3309_v25, %v3305_v43  ;;  %vm3318_vm5 = vweird.f32 %v4535_v56 }
0x17f4   :  { %v3413_v46 = vld [vmem:[#allocation2 + $0x6] sm:$0xff]  ;;  %v3367_v54 = vmul.f32 %v5937_v15, %v3362_v47  ;;  %v3329_v39 = vmul.f32 %v3310_v55, %v3211_v38  ;;  %v3314_v32 = vsub.f32 1.0, %v3313_v57  ;;  %v3409_v50 = vadd.f32 %v3405_v62, %v3396_v29  ;;  %v3414_v23 = vld [vmem:[#allocation2 + $0xe] sm:$0xff]  ;;  %vm3319_vm7 = vmor %vm3317_vm6, %vm3318_vm5 }
0x17f5   :  { %v3375_v49 = vld [vmem:[#allocation2 + $0xb] sm:$0xff]  ;;  %v3358_v1 = vadd.f32 %v3354_v34, %v3341_v53  ;;  %v3418_v6 = vmul.f32 %v5954_v40, %v3413_v46  ;;  %v3419_v58 = vmul.f32 %v5954_v40, %v3414_v23 }
0x17f6   :  { %v3380_v8 = vmul.f32 %v5945_v12, %v3375_v49  ;;  %3333 = vst.msk [vmem:[#allocation2 + $0x1b] sm:$0xff] %vm40_vm0, %v3329_v39  ;;  %v3315_v16 = vmul.f32 %v4535_v56, %v3314_v32 }
0x17f7   :  { %v3371_v45 = vadd.f32 %v3367_v54, %v3358_v1  ;;  %v3422_v17 = vadd.f32 %v3418_v6, %v3409_v50 }
0x17f8   :  { %v3316_v9 = vadd.f32 %v4535_v56, %v3315_v16 }
0x17f9   :  { %v3384_v59 = vadd.f32 %v3380_v8, %v3371_v45  ;;  %v3427_v30 = vadd.f32 %v5963_v60, %v3422_v17 }
0x17fa   :  { %v3320_v22 = vsel %vm3319_vm7, %v4535_v56, %v3316_v9 }
0x17fb   :  { %v3397_v24 = vadd.f32 %v3393_v20, %v3384_v59  ;;  %v3432_v35 = vmul.f32 %v5969_v13, %v3427_v30  ;;  %v3325_v38 = vsel %vm3322_vm8, %v3324_v42, %v3320_v22 }
0x17fc   :  { %v3330_v4 = vmul.f32 %v3325_v38, %v3214_v18 }
0x17fd   :  { %v3410_v19 = vadd.f32 %v3406_v33, %v3397_v24  ;;  %v5985_v41 = vadd.f32 %v5978_v0, %v3432_v35  ;;  %v3337_v28 = vld [vmem:[#allocation2 + $0x18] sm:$0xff] }
0x17fe   :  { %v3350_v52 = vld [vmem:[#allocation2 + $0x19] sm:$0xff]  ;;  %3334 = vst.msk [vmem:[#allocation2 + $0x23] sm:$0xff] %vm40_vm0, %v3330_v4  ;;  %v3342_v47 = vmul.f32 %v5933_v7, %v3337_v28 }
0x17ff   :  { %v3423_v44 = vadd.f32 %v3419_v58, %v3410_v19  ;;  %v3363_v48 = vld [vmem:[#allocation2 + $0x1a] sm:$0xff]  ;;  %v4265_v27 = vmul.f32 -1.442695, %v5985_v41  ;;  %v3355_v56 = vmul.f32 %v5935_v10, %v3350_v52 }
0x1800   :  { %v3368_v53 = vmul.f32 %v5937_v15, %v3363_v48  ;;  %v3376_v43 = vld [vmem:[#allocation2 + $0x1b] sm:$0xff] }
0x1801   :  { %v3428_v25 = vadd.f32 %v5963_v60, %v3423_v44  ;;  %4536 = vpow2.f32 %v4265_v27  ;;  %v3359_v46 = vadd.f32 %v3355_v56, %v3342_v47  ;;  %v3381_v62 = vmul.f32 %v5945_v12, %v3376_v43 }
0x1803   :  { %v3433_v34 = vmul.f32 %v5969_v13, %v3428_v25  ;;  %v3372_v57 = vadd.f32 %v3368_v53, %v3359_v46 }
0x1805   :  { %v5995_v29 = vadd.f32 %v5978_v0, %v3433_v34  ;;  %v3389_v55 = vld [vmem:[#allocation2 + $0x1c] sm:$0xff]  ;;  %v3385_v39 = vadd.f32 %v3381_v62, %v3372_v57  ;;  %v3390_v24 = vld [vmem:[#allocation2 + $0x24] sm:$0xff] }
0x1806   :  { %v3402_v1 = vld [vmem:[#allocation2 + $0x1d] sm:$0xff]  ;;  %v3394_v32 = vmul.f32 %v5948_v31, %v3389_v55  ;;  %v3403_v22 = vld [vmem:[#allocation2 + $0x25] sm:$0xff]  ;;  %v3395_v38 = vmul.f32 %v5948_v31, %v3390_v24 }
0x1807   :  { %v4266_v49 = vmul.f32 -1.442695, %v5995_v29  ;;  %v4537_v54 = vpop.eup %4536  ;;  %v3338_v50 = vld [vmem:[#allocation2 + $0x20] sm:$0xff]  ;;  %v3407_v17 = vmul.f32 %v5951_v37, %v3402_v1  ;;  %v3408_v44 = vmul.f32 %v5951_v37, %v3403_v22 }
0x1808   :  { %v3351_v6 = vld [vmem:[#allocation2 + $0x21] sm:$0xff]  ;;  %v3453_v3 = vadd.f32 1.0, %v4537_v54  ;;  %v3343_v45 = vmul.f32 %v5933_v7, %v3338_v50  ;;  %v3398_v21 = vadd.f32 %v3394_v32, %v3385_v39 }
0x1809   :  { %4538 = vpow2.f32 %v4266_v49  ;;  %v3415_v61 = vld [vmem:[#allocation2 + $0x1e] sm:$0xff]  ;;  %v3356_v8 = vmul.f32 %v5935_v10, %v3351_v6  ;;  %v3416_v58 = vld [vmem:[#allocation2 + $0x26] sm:$0xff] }
0x180a   :  { %v3364_v16 = vld [vmem:[#allocation2 + $0x22] sm:$0xff]  ;;  %4540 = vrcp.f32 %v3453_v3  ;;  %v3411_v26 = vadd.f32 %v3407_v17, %v3398_v21  ;;  %v3420_v59 = vmul.f32 %v5954_v40, %v3415_v61  ;;  %v3421_v27 = vmul.f32 %v5954_v40, %v3416_v58 }
0x180b   :  { %v3377_v11 = vld [vmem:[#allocation2 + $0x23] sm:$0xff]  ;;  %v3360_v20 = vadd.f32 %v3356_v8, %v3343_v45  ;;  %v3369_v9 = vmul.f32 %v5937_v15, %v3364_v16  ;;  %v3466_v56 = vand.u32 2147483647, %v3453_v3  ;;  %vm3462_vm9 = vweird.f32 %v3453_v3 }
0x180c   :  { %v3424_v30 = vadd.f32 %v3420_v59, %v3411_v26  ;;  %v3382_v42 = vmul.f32 %v5945_v12, %v3377_v11  ;;  %v3468_v12 = vand.u32 2147483648, %v3453_v3 }
0x180d   :  { %v3373_v23 = vadd.f32 %v3369_v9, %v3360_v20  ;;  %vm3467_vm11 = vcmp.eq.f32.partialorder %v3466_v56, 8.507059e+37 }
0x180e   :  { %v3429_v10 = vadd.f32 %v5963_v60, %v3424_v30  ;;  %v3469_v34 = vor.u32 1.1754944e-38, %v3468_v12 }
0x180f   :  { %v4539_v7 = vpop.eup %4538  ;;  %v3386_v18 = vadd.f32 %v3382_v42, %v3373_v23 }
0x1810   :  { %v3454_v33 = vadd.f32 1.0, %v4539_v7  ;;  %v4541_v35 = vpop.eup %4540  ;;  %v3434_v4 = vmul.f32 %v5969_v13, %v3429_v10 }
0x1811   :  { %v3458_v19 = vmul.f32 %v4541_v35, %v3453_v3  ;;  %v3399_v15 = vadd.f32 %v3395_v38, %v3386_v18  ;;  %vm3463_vm14 = vweird.f32 %v4541_v35 }
0x1812   :  { %4542 = vrcp.f32 %v3454_v33  ;;  %v3439_v52 = vadd.f32 %v5978_v0, %v3434_v4  ;;  %vm3464_vm10 = vmor %vm3462_vm9, %vm3463_vm14  ;;  %v3483_v1 = vand.u32 2147483648, %v3454_v33  ;;  %v3481_v39 = vand.u32 2147483647, %v3454_v33 }
0x1813   :  { %v3459_v28 = vsub.f32 1.0, %v3458_v19  ;;  %v3412_v48 = vadd.f32 %v3408_v44, %v3399_v15  ;;  %vm3477_vm13 = vweird.f32 %v3454_v33  ;;  %v3526_v4 = vperm.slane %v5909_v2, 5 }
0x1814   :  { %v4267_v25 = vmul.f32 -1.442695, %v3439_v52  ;;  %v3484_v3 = vor.u32 1.1754944e-38, %v3483_v1  ;;  %vm3482_vm1 = vcmp.eq.f32.partialorder %v3481_v39, 8.507059e+37 }
0x1815   :  { %v3460_v47 = vmul.f32 %v4541_v35, %v3459_v28  ;;  %v3425_v31 = vadd.f32 %v3421_v27, %v3412_v48 }
0x1816   :  { %4544 = vpow2.f32 %v4267_v25 }
0x1817   :  { %v3461_v53 = vadd.f32 %v4541_v35, %v3460_v47  ;;  %v3430_v37 = vadd.f32 %v5963_v60, %v3425_v31 }
0x1818   :  { %v4543_v46 = vpop.eup %4542 }
0x1819   :  { %v3473_v43 = vmul.f32 %v4543_v46, %v3454_v33  ;;  %v3465_v57 = vsel %vm3464_vm10, %v4541_v35, %v3461_v53  ;;  %v3435_v40 = vmul.f32 %v5969_v13, %v3430_v37  ;;  %vm3478_vm12 = vweird.f32 %v4543_v46 }
0x181a   :  { %v3470_v62 = vsel %vm3467_vm11, %v3469_v34, %v3465_v57  ;;  %vm3479_vm15 = vmor %vm3477_vm13, %vm3478_vm12 }
0x181b   :  { %v3474_v49 = vsub.f32 1.0, %v3473_v43  ;;  %v3517_v55 = vmul.f32 %v3470_v62, %v5985_v41  ;;  %v3440_v32 = vadd.f32 %v5978_v0, %v3435_v40 }
0x181c   :  { %v4545_v50 = vpop.eup %4544 }
0x181d   :  { %v3475_v54 = vmul.f32 %v4543_v46, %v3474_v49  ;;  %4273 = vmatmul.msk.f32.vlgmr.msra.gmra.mxu3 %vm40_vm0, %v3517_v55  ;;  %v4268_v60 = vmul.f32 -1.442695, %v3440_v32  ;;  %v3455_v61 = vadd.f32 1.0, %v4545_v50 }
0x181f   :  { %v3476_v6 = vadd.f32 %v4543_v46, %v3475_v54  ;;  %4546 = vpow2.f32 %v4268_v60  ;;  %v3498_v11 = vand.u32 2147483648, %v3455_v61  ;;  %v3496_v59 = vand.u32 2147483647, %v3455_v61 }
0x1820   :  { %4548 = vrcp.f32 %v3455_v61  ;;  %vm3492_vm4 = vweird.f32 %v3455_v61 }
0x1821   :  { %v3480_v45 = vsel %vm3479_vm15, %v4543_v46, %v3476_v6  ;;  %v3499_v30 = vor.u32 1.1754944e-38, %v3498_v11  ;;  %vm3497_vm6 = vcmp.eq.f32.partialorder %v3496_v59, 8.507059e+37 }
0x1822   :  { %v3485_v13 = vsel %vm3482_vm1, %v3484_v3, %v3480_v45 }
0x1823   :  { %v3518_v41 = vmul.f32 %v3485_v13, %v5995_v29 }
0x1825   :  { %4274 = vmatmul.msk.f32.gmra.mxu3 %vm40_vm0, %v3518_v41  ;;  %v4547_v8 = vpop.eup %4546  ;;  %v4280_v41 = vld [vmem:[%s6170_s3 + $0x78] sm:$0xff] }
0x1826   :  { %v4549_v0 = vpop.eup %4548  ;;  %v3456_v16 = vadd.f32 1.0, %v4547_v8  ;;  %3700 = vmatpush.msrb.mxu1 %v4280_v41  ;;  %v4279_v8 = vld [vmem:[%s6170_s3 + $0x70] sm:$0xff] }
0x1827   :  { %v3488_v21 = vmul.f32 %v4549_v0, %v3455_v61  ;;  %vm3493_vm2 = vweird.f32 %v4549_v0 }
0x1828   :  { %4550 = vrcp.f32 %v3456_v16  ;;  %vm3494_vm5 = vmor %vm3492_vm4, %vm3493_vm2  ;;  %v3513_v33 = vand.u32 2147483648, %v3456_v16  ;;  %v3511_v18 = vand.u32 2147483647, %v3456_v16  ;;  %vm3507_vm8 = vweird.f32 %v3456_v16  ;;  %3701 = vmatpush.msrb.mxu1 %v4279_v8  ;;  %v4295_v8 = vld [vmem:[%s6171_s4 + $0xf0] sm:$0xff] }
0x1829   :  { %v3489_v17 = vsub.f32 1.0, %v3488_v21  ;;  %v4277_v21 = vld [vmem:[%s6170_s3 + $0x60] sm:$0xff] }
0x182a   :  { %v3514_v35 = vor.u32 1.1754944e-38, %v3513_v33  ;;  %vm3512_vm9 = vcmp.eq.f32.partialorder %v3511_v18, 8.507059e+37 }
0x182b   :  { %v3490_v26 = vmul.f32 %v4549_v0, %v3489_v17 }
0x182d   :  { %v3491_v20 = vadd.f32 %v4549_v0, %v3490_v26 }
0x182e   :  { %v4551_v9 = vpop.eup %4550 }
0x182f   :  { %v3495_v23 = vsel %vm3494_vm5, %v4549_v0, %v3491_v20  ;;  %v3503_v29 = vmul.f32 %v4551_v9, %v3456_v16  ;;  %vm3508_vm7 = vweird.f32 %v4551_v9  ;;  %v4278_v0 = vld [vmem:[%s6170_s3 + $0x68] sm:$0xff] }
0x1830   :  { %v3500_v42 = vsel %vm3497_vm6, %v3499_v30, %v3495_v23  ;;  %vm3509_vm14 = vmor %vm3507_vm8, %vm3508_vm7  ;;  %3702 = vmatpush.msrb.mxu1 %v4278_v0  ;;  %v4294_v0 = vld [vmem:[%s6171_s4 + $0xe8] sm:$0xff] }
0x1831   :  { %v3519_v24 = vmul.f32 %v3500_v42, %v3439_v52  ;;  %v3504_v7 = vsub.f32 1.0, %v3503_v29 }
0x1832   :  { %3703 = vmatpush.msrb.mxu1 %v4277_v21 }
0x1833   :  { %4275 = vmatmul.msk.f32.gmra.mxu3 %vm40_vm0, %v3519_v24  ;;  %v3505_v10 = vmul.f32 %v4551_v9, %v3504_v7 }
0x1835   :  { %v3506_v22 = vadd.f32 %v4551_v9, %v3505_v10  ;;  %v3660_v10 = vperm.slane %v5909_v2, 6 }
0x1837   :  { %v3510_v38 = vsel %vm3509_vm14, %v4551_v9, %v3506_v22 }
0x1838   :  { %v3515_v19 = vsel %vm3512_vm9, %v3514_v35, %v3510_v38  ;;  %v3665_v35 = vperm.slane %v5909_v2, 7 }
0x1839   :  { %v3520_v58 = vmul.f32 %v3515_v19, %v3440_v32 }
0x183b   :  { %4276 = vmatmul.msk.f32.gmra.mxu3 %vm40_vm0, %v3520_v58 }
0x18a0   :  { %v3556_v15 = vpop.f32.mrf.mxu3 }
0x18a1   :  { %v3557_v44 = vadd.f32 %v3556_v15, %v3526_v4 }
0x18a3   :  { %v6023_v28 = vadd.f32 %v3557_v44, %v5822_v63 }
0x18a5   :  { %v3572_v12 = vsel %vm40_vm0, %v6023_v28, 0.0 }
0x18a6   :  { %3573 = vadd.xlane.f32.xlu0 %v3572_v12 }
0x18a8   :  { %v3559_v52 = vpop.f32.mrf.mxu3 }
0x18a9   :  { %v3560_v48 = vadd.f32 %v3559_v52, %v3526_v4 }
0x18ab   :  { %v6028_v27 = vadd.f32 %v3560_v48, %v5827_v36 }
0x18ad   :  { %v3575_v47 = vsel %vm40_vm0, %v6028_v27, 0.0 }
0x18ae   :  { %3576 = vadd.xlane.f32.xlu1 %v3575_v47 }
0x18b6   :  { %v3562_v56 = vpop.f32.mrf.mxu3 }
0x18b7   :  { %v3563_v25 = vadd.f32 %v3562_v56, %v3526_v4 }
0x18b9   :  { %v6033_v31 = vadd.f32 %v3563_v25, %v5832_v51 }
0x18bb   :  { %v3578_v63 = vsel %vm40_vm0, %v6033_v31, 0.0 }
0x18bc   :  { %3579 = vadd.xlane.f32.xlu2 %v3578_v63 }
0x18be   :  { %v3565_v46 = vpop.f32.mrf.mxu3 }
0x18bf   :  { %v3566_v53 = vadd.f32 %v3565_v46, %v3526_v4 }
0x18c1   :  { %v6038_v34 = vadd.f32 %v3566_v53, %v5837_v5 }
0x18c3   :  { %v3581_v36 = vsel %vm40_vm0, %v6038_v34, 0.0 }
0x18c4   :  { %3582 = vadd.xlane.f32.xlu0 %v3581_v36 }
0x1919   :  { %v3574_v43 = vpop.xlane.xlu0 %3573 }
0x191a   :  { %v3584_v37 = vmul.f32 %v3574_v43, %v4702_v14 }
0x191c   :  { %v3588_v57 = vsub.f32 %v6023_v28, %v3584_v37 }
0x191e   :  { %v3592_v51 = vmul.f32 %v3588_v57, %v3588_v57 }
0x1920   :  { %v3596_v62 = vsel %vm40_vm0, %v3592_v51, 0.0 }
0x1921   :  { %3597 = vadd.xlane.f32.xlu1 %v3596_v62  ;;  %v3577_v49 = vpop.xlane.xlu1 %3576 }
0x1922   :  { %v3585_v40 = vmul.f32 %v3577_v49, %v4702_v14 }
0x1924   :  { %v6047_v55 = vsub.f32 %v6028_v27, %v3585_v40 }
0x1926   :  { %v3593_v5 = vmul.f32 %v6047_v55, %v6047_v55 }
0x1928   :  { %v3599_v1 = vsel %vm40_vm0, %v3593_v5, 0.0 }
0x1929   :  { %3600 = vadd.xlane.f32.xlu2 %v3599_v1 }
0x192f   :  { %v3580_v54 = vpop.xlane.xlu2 %3579 }
0x1930   :  { %v3586_v39 = vmul.f32 %v3580_v54, %v4702_v14 }
0x1932   :  { %v6054_v32 = vsub.f32 %v6033_v31, %v3586_v39 }
0x1934   :  { %v3594_v50 = vmul.f32 %v6054_v32, %v6054_v32 }
0x1936   :  { %v3602_v6 = vsel %vm40_vm0, %v3594_v50, 0.0 }
0x1937   :  { %v3583_v60 = vpop.xlane.xlu0 %3582  ;;  %3603 = vadd.xlane.f32.xlu0 %v3602_v6 }
0x1938   :  { %v3587_v3 = vmul.f32 %v3583_v60, %v4702_v14 }
0x193a   :  { %v6061_v61 = vsub.f32 %v6038_v34, %v3587_v3 }
0x193c   :  { %v3595_v45 = vmul.f32 %v6061_v61, %v6061_v61 }
0x193e   :  { %v3605_v13 = vsel %vm40_vm0, %v3595_v45, 0.0 }
0x193f   :  { %3606 = vadd.xlane.f32.xlu1 %v3605_v13 }
0x1994   :  { %v3598_v16 = vpop.xlane.xlu1 %3597 }
0x1995   :  { %v3608_v17 = vmul.f32 %v3598_v16, %v4702_v14  ;;  %v4587_v16 = vld [vmem:[%s6169_s2 + $0x2] sm:$0x3] }
0x1996   :  { %v3675_v21 = vperm.slane %v4587_v16, 1 }
0x1997   :  { %v3612_v11 = vadd.f32 1e-05, %v3608_v17  ;;  %v4292_v17 = vld [vmem:[%s6171_s4 + $0xd8] sm:$0xff] }
0x1999   :  { %4552 = vrsqrt.f32 %v3612_v11  ;;  %vm3622_vm11 = vweird.f32 %v3612_v11 }
0x199c   :  { %v3601_v26 = vpop.xlane.xlu2 %3600 }
0x199d   :  { %v3609_v59 = vmul.f32 %v3601_v26, %v4702_v14  ;;  %v4291_v26 = vld [vmem:[%s6171_s4 + $0xd0] sm:$0xff] }
0x199f   :  { %v4553_v20 = vpop.eup %4552  ;;  %v3613_v9 = vadd.f32 1e-05, %v3609_v59 }
0x19a0   :  { %v3617_v30 = vmul.f32 %v4553_v20, %v3612_v11  ;;  %vm3623_vm10 = vweird.f32 %v4553_v20 }
0x19a1   :  { %4554 = vrsqrt.f32 %v3613_v9  ;;  %vm3624_vm12 = vmor %vm3622_vm11, %vm3623_vm10  ;;  %vm3632_vm15 = vweird.f32 %v3613_v9 }
0x19a2   :  { %v3618_v23 = vmul.f32 %v4553_v20, %v3617_v30  ;;  %v4289_v30 = vld [vmem:[%s6171_s4 + $0xc0] sm:$0xff] }
0x19a4   :  { %v3619_v29 = vmul.f32 0.5, %v3618_v23 }
0x19a6   :  { %v3620_v42 = vsub.f32 1.5, %v3619_v29 }
0x19a7   :  { %v4555_v24 = vpop.eup %4554 }
0x19a8   :  { %v3621_v7 = vmul.f32 %v4553_v20, %v3620_v42  ;;  %v3627_v33 = vmul.f32 %v4555_v24, %v3613_v9  ;;  %vm3633_vm13 = vweird.f32 %v4555_v24 }
0x19a9   :  { %vm3634_vm1 = vmor %vm3632_vm15, %vm3633_vm13 }
0x19aa   :  { %v3625_v18 = vsel %vm3624_vm12, %v4553_v20, %v3621_v7  ;;  %v3628_v22 = vmul.f32 %v4555_v24, %v3627_v33  ;;  %v3604_v19 = vpop.xlane.xlu0 %3603  ;;  %v4290_v20 = vld [vmem:[%s6171_s4 + $0xc8] sm:$0xff] }
0x19ab   :  { %v3656_v38 = vmul.f32 %v3625_v18, %v3588_v57  ;;  %v3610_v4 = vmul.f32 %v3604_v19, %v4702_v14 }
0x19ac   :  { %v3629_v58 = vmul.f32 0.5, %v3628_v22 }
0x19ad   :  { %v3661_v15 = vmul.f32 %v3660_v10, %v3656_v38  ;;  %v3614_v12 = vadd.f32 1e-05, %v3610_v4 }
0x19ae   :  { %v3630_v44 = vsub.f32 1.5, %v3629_v58 }
0x19af   :  { %v3666_v52 = vadd.f32 %v3665_v35, %v3661_v15  ;;  %4556 = vrsqrt.f32 %v3614_v12  ;;  %vm3642_vm4 = vweird.f32 %v3614_v12 }
0x19b0   :  { %v3631_v48 = vmul.f32 %v4555_v24, %v3630_v44 }
0x19b1   :  { %4281 = vmatmul.msk.f32.vlgmr.msrb.gmra.mxu1 %vm40_vm0, %v3666_v52 }
0x19b2   :  { %v3635_v47 = vsel %vm3634_vm1, %v4555_v24, %v3631_v48  ;;  %v3607_v2 = vpop.xlane.xlu1 %3606 }
0x19b3   :  { %v3657_v56 = vmul.f32 %v3635_v47, %v6047_v55  ;;  %v3611_v25 = vmul.f32 %v3607_v2, %v4702_v14 }
0x19b5   :  { %v3662_v63 = vmul.f32 %v3660_v10, %v3657_v56  ;;  %v4557_v46 = vpop.eup %4556  ;;  %v3615_v53 = vadd.f32 1e-05, %v3611_v25 }
0x19b6   :  { %v3637_v36 = vmul.f32 %v4557_v46, %v3614_v12  ;;  %vm3643_vm2 = vweird.f32 %v4557_v46 }
0x19b7   :  { %v3667_v43 = vadd.f32 %v3665_v35, %v3662_v63  ;;  %4558 = vrsqrt.f32 %v3615_v53  ;;  %vm3644_vm5 = vmor %vm3642_vm4, %vm3643_vm2  ;;  %vm3652_vm7 = vweird.f32 %v3615_v53 }
0x19b8   :  { %v3638_v37 = vmul.f32 %v4557_v46, %v3637_v36 }
0x19b9   :  { %4282 = vmatmul.msk.f32.gmra.mxu1 %vm40_vm0, %v3667_v43 }
0x19ba   :  { %v3639_v57 = vmul.f32 0.5, %v3638_v37 }
0x19bc   :  { %v3640_v51 = vsub.f32 1.5, %v3639_v57 }
0x19bd   :  { %v4559_v62 = vpop.eup %4558 }
0x19be   :  { %v3641_v49 = vmul.f32 %v4557_v46, %v3640_v51  ;;  %v3647_v40 = vmul.f32 %v4559_v62, %v3615_v53  ;;  %vm3653_vm6 = vweird.f32 %v4559_v62 }
0x19bf   :  { %vm3654_vm8 = vmor %vm3652_vm7, %vm3653_vm6 }
0x19c0   :  { %v3645_v55 = vsel %vm3644_vm5, %v4557_v46, %v3641_v49  ;;  %v3648_v5 = vmul.f32 %v4559_v62, %v3647_v40 }
0x19c1   :  { %v3658_v1 = vmul.f32 %v3645_v55, %v6054_v32  ;;  %v4296_v32 = vld [vmem:[%s6171_s4 + $0xf8] sm:$0xff] }
0x19c2   :  { %v3649_v54 = vmul.f32 0.5, %v3648_v5  ;;  %3827 = vmatpush.msra.mxu0 %v4296_v32 }
0x19c3   :  { %v3663_v39 = vmul.f32 %v3660_v10, %v3658_v1 }
0x19c4   :  { %v3650_v50 = vsub.f32 1.5, %v3649_v54  ;;  %3828 = vmatpush.msra.mxu0 %v4295_v8 }
0x19c5   :  { %v3668_v6 = vadd.f32 %v3665_v35, %v3663_v39 }
0x19c6   :  { %v3651_v60 = vmul.f32 %v4559_v62, %v3650_v50  ;;  %3829 = vmatpush.msra.mxu0 %v4294_v0 }
0x19c7   :  { %4283 = vmatmul.msk.f32.gmra.mxu1 %vm40_vm0, %v3668_v6 }
0x19c8   :  { %v3655_v3 = vsel %vm3654_vm8, %v4559_v62, %v3651_v60 }
0x19c9   :  { %v3659_v45 = vmul.f32 %v3655_v3, %v6061_v61  ;;  %v4293_v61 = vld [vmem:[%s6171_s4 + $0xe0] sm:$0xff] }
0x19ca   :  { %3830 = vmatpush.msra.mxu0 %v4293_v61 }
0x19cb   :  { %v3664_v13 = vmul.f32 %v3660_v10, %v3659_v45 }
0x19cc   :  { %3831 = vmatpush.msra.mxu0 %v4292_v17 }
0x19cd   :  { %v3669_v41 = vadd.f32 %v3665_v35, %v3664_v13 }
0x19ce   :  { %3832 = vmatpush.msra.mxu0 %v4291_v26 }
0x19cf   :  { %4284 = vmatmul.msk.f32.gmra.mxu1 %vm40_vm0, %v3669_v41 }
0x19d0   :  { %3833 = vmatpush.msra.mxu0 %v4290_v20 }
0x19d2   :  { %3834 = vmatpush.msra.mxu0 %v4289_v30 }
0x1a2e   :  { %v3705_v11 = vpop.f32.mrf.mxu1 }
0x1a2f   :  { %v3706_v59 = vadd.f32 %v3705_v11, %v3675_v21 }
0x1a31   :  { %v4285_v9 = vmul.f32 -1.442695, %v3706_v59 }
0x1a33   :  { %4560 = vpow2.f32 %v4285_v9 }
0x1a36   :  { %v3708_v23 = vpop.f32.mrf.mxu1 }
0x1a37   :  { %v3709_v29 = vadd.f32 %v3708_v23, %v3675_v21 }
0x1a39   :  { %v4561_v42 = vpop.eup %4560  ;;  %v4286_v24 = vmul.f32 -1.442695, %v3709_v29 }
0x1a3a   :  { %v3729_v7 = vadd.f32 1.0, %v4561_v42  ;;  %v6125_v42 = vld [vmem:[%s6168_s1 + $0x28] sm:$0x7]  ;;  %s4616_s1 = smov [#allocation3]  }
0x1a3b   :  { %4562 = vpow2.f32 %v4286_v24  ;;  %v3806_v24 = vperm.slane %v6125_v42, 0  ;;  %s3966_s0 = sshll.u32 %s4616_s1, 4  ;;  %s3967_s0 = int_to_ptr.vmem [resolvable:$true] %s3966_s0 }
0x1a3c   :  { %4564 = vrcp.f32 %v3729_v7  ;;  %v3744_v19 = vand.u32 2147483648, %v3729_v7  ;;  %v3742_v15 = vand.u32 2147483647, %v3729_v7  ;;  %vm3738_vm9 = vweird.f32 %v3729_v7 }
0x1a3e   :  { %v3745_v48 = vor.u32 1.1754944e-38, %v3744_v19  ;;  %vm3743_vm11 = vcmp.eq.f32.partialorder %v3742_v15, 8.507059e+37 }
0x1a41   :  { %v4563_v33 = vpop.eup %4562 }
0x1a42   :  { %v4565_v10 = vpop.eup %4564  ;;  %v3730_v18 = vadd.f32 1.0, %v4563_v33 }
0x1a43   :  { %v3734_v22 = vmul.f32 %v4565_v10, %v3729_v7  ;;  %vm3739_vm14 = vweird.f32 %v4565_v10 }
0x1a44   :  { %4566 = vrcp.f32 %v3730_v18  ;;  %v3711_v38 = vpop.f32.mrf.mxu1  ;;  %vm3740_vm10 = vmor %vm3738_vm9, %vm3739_vm14  ;;  %v3759_v53 = vand.u32 2147483648, %v3730_v18  ;;  %v3757_v37 = vand.u32 2147483647, %v3730_v18  ;;  %vm3753_vm13 = vweird.f32 %v3730_v18 }
0x1a45   :  { %v3735_v35 = vsub.f32 1.0, %v3734_v22  ;;  %v3712_v58 = vadd.f32 %v3711_v38, %v3675_v21 }
0x1a46   :  { %v3760_v40 = vor.u32 1.1754944e-38, %v3759_v53  ;;  %vm3758_vm1 = vcmp.eq.f32.partialorder %v3757_v37, 8.507059e+37 }
0x1a47   :  { %v3736_v4 = vmul.f32 %v4565_v10, %v3735_v35  ;;  %v4287_v44 = vmul.f32 -1.442695, %v3712_v58 }
0x1a49   :  { %v3737_v12 = vadd.f32 %v4565_v10, %v3736_v4  ;;  %4568 = vpow2.f32 %v4287_v44 }
0x1a4a   :  { %v4567_v52 = vpop.eup %4566 }
0x1a4b   :  { %v3741_v47 = vsel %vm3740_vm10, %v4565_v10, %v3737_v12  ;;  %v3749_v56 = vmul.f32 %v4567_v52, %v3730_v18  ;;  %vm3754_vm12 = vweird.f32 %v4567_v52 }
0x1a4c   :  { %v3746_v2 = vsel %vm3743_vm11, %v3745_v48, %v3741_v47  ;;  %v3714_v46 = vpop.f32.mrf.mxu1  ;;  %vm3755_vm15 = vmor %vm3753_vm13, %vm3754_vm12 }
0x1a4d   :  { %v3793_v25 = vmul.f32 %v3746_v2, %v3706_v59  ;;  %v3750_v63 = vsub.f32 1.0, %v3749_v56  ;;  %v3715_v36 = vadd.f32 %v3714_v46, %v3675_v21 }
0x1a4f   :  { %v3751_v43 = vmul.f32 %v4567_v52, %v3750_v63  ;;  %4297 = vmatmul.msk.f32.vlgmr.msra.gmra.mxu0 %vm293_vm3, %v3793_v25  ;;  %v4569_v57 = vpop.eup %4568  ;;  %v4288_v51 = vmul.f32 -1.442695, %v3715_v36 }
0x1a50   :  { %v3731_v49 = vadd.f32 1.0, %v4569_v57 }
0x1a51   :  { %v3752_v62 = vadd.f32 %v4567_v52, %v3751_v43  ;;  %4570 = vpow2.f32 %v4288_v51 }
0x1a52   :  { %4572 = vrcp.f32 %v3731_v49  ;;  %v3774_v3 = vand.u32 2147483648, %v3731_v49  ;;  %v3772_v13 = vand.u32 2147483647, %v3731_v49  ;;  %vm3768_vm4 = vweird.f32 %v3731_v49 }
0x1a53   :  { %v3756_v55 = vsel %vm3755_vm15, %v4567_v52, %v3752_v62 }
0x1a54   :  { %v3761_v5 = vsel %vm3758_vm1, %v3760_v40, %v3756_v55  ;;  %v3775_v8 = vor.u32 1.1754944e-38, %v3774_v3  ;;  %vm3773_vm6 = vcmp.eq.f32.partialorder %v3772_v13, 8.507059e+37 }
0x1a55   :  { %v3794_v1 = vmul.f32 %v3761_v5, %v3709_v29 }
0x1a57   :  { %4298 = vmatmul.msk.f32.gmra.mxu0 %vm293_vm3, %v3794_v1  ;;  %v4571_v54 = vpop.eup %4570 }
0x1a58   :  { %v4573_v39 = vpop.eup %4572  ;;  %v3732_v50 = vadd.f32 1.0, %v4571_v54 }
0x1a59   :  { %v3764_v6 = vmul.f32 %v4573_v39, %v3731_v49  ;;  %vm3769_vm2 = vweird.f32 %v4573_v39 }
0x1a5a   :  { %4574 = vrcp.f32 %v3732_v50  ;;  %vm3770_vm5 = vmor %vm3768_vm4, %vm3769_vm2  ;;  %v3789_v11 = vand.u32 2147483648, %v3732_v50  ;;  %v3787_v59 = vand.u32 2147483647, %v3732_v50  ;;  %vm3783_vm8 = vweird.f32 %v3732_v50 }
0x1a5b   :  { %v3765_v60 = vsub.f32 1.0, %v3764_v6 }
0x1a5c   :  { %v3790_v9 = vor.u32 1.1754944e-38, %v3789_v11  ;;  %vm3788_vm9 = vcmp.eq.f32.partialorder %v3787_v59, 8.507059e+37 }
0x1a5d   :  { %v3766_v45 = vmul.f32 %v4573_v39, %v3765_v60 }
0x1a5f   :  { %v3767_v41 = vadd.f32 %v4573_v39, %v3766_v45 }
0x1a60   :  { %v4575_v32 = vpop.eup %4574 }
0x1a61   :  { %v3771_v0 = vsel %vm3770_vm5, %v4573_v39, %v3767_v41  ;;  %v3779_v61 = vmul.f32 %v4575_v32, %v3732_v50  ;;  %vm3784_vm7 = vweird.f32 %v4575_v32 }
0x1a62   :  { %v3776_v16 = vsel %vm3773_vm6, %v3775_v8, %v3771_v0  ;;  %vm3785_vm14 = vmor %vm3783_vm8, %vm3784_vm7 }
0x1a63   :  { %v3795_v21 = vmul.f32 %v3776_v16, %v3712_v58  ;;  %v3780_v17 = vsub.f32 1.0, %v3779_v61 }
0x1a65   :  { %v3781_v26 = vmul.f32 %v4575_v32, %v3780_v17  ;;  %4299 = vmatmul.msk.f32.gmra.mxu0 %vm293_vm3, %v3795_v21 }
0x1a67   :  { %v3782_v20 = vadd.f32 %v4575_v32, %v3781_v26  ;;  %v3944_v26 = vperm.slane %v6125_v42, 1 }
0x1a69   :  { %v3786_v30 = vsel %vm3785_vm14, %v4575_v32, %v3782_v20 }
0x1a6a   :  { %v3791_v23 = vsel %vm3788_vm9, %v3790_v9, %v3786_v30  ;;  %v3949_v9 = vperm.slane %v6125_v42, 2 }
0x1a6b   :  { %v3796_v29 = vmul.f32 %v3791_v23, %v3715_v36 }
0x1a6d   :  { %4300 = vmatmul.msk.f32.gmra.mxu0 %vm293_vm3, %v3796_v29 }
0x1acc   :  { %v3836_v7 = vpop.f32.mrf.mxu0 }
0x1acd   :  { %v3837_v33 = vadd.f32 %v3836_v7, %v3806_v24 }
0x1acf   :  { %v3848_v10 = vmul.f32 0.5, %v3837_v33 }
0x1ad1   :  { %v3852_v18 = vadd.f32 %v3848_v10, %v6023_v28 }
0x1ad3   :  { %v3856_v22 = vsel %vm40_vm0, %v3852_v18, 0.0 }
0x1ad4   :  { %v3839_v35 = vpop.f32.mrf.mxu0  ;;  %3857 = vadd.xlane.f32.xlu2 %v3856_v22 }
0x1ad5   :  { %v3840_v38 = vadd.f32 %v3839_v35, %v3806_v24 }
0x1ad7   :  { %v3849_v19 = vmul.f32 0.5, %v3840_v38 }
0x1ad9   :  { %v3853_v58 = vadd.f32 %v3849_v19, %v6028_v27 }
0x1adb   :  { %v3859_v4 = vsel %vm40_vm0, %v3853_v58, 0.0 }
0x1adc   :  { %3860 = vadd.xlane.f32.xlu0 %v3859_v4 }
0x1ae2   :  { %v3842_v15 = vpop.f32.mrf.mxu0 }
0x1ae3   :  { %v3843_v44 = vadd.f32 %v3842_v15, %v3806_v24 }
0x1ae5   :  { %v3850_v12 = vmul.f32 0.5, %v3843_v44 }
0x1ae7   :  { %v3854_v52 = vadd.f32 %v3850_v12, %v6033_v31 }
0x1ae9   :  { %v3862_v48 = vsel %vm40_vm0, %v3854_v52, 0.0 }
0x1aea   :  { %3863 = vadd.xlane.f32.xlu1 %v3862_v48  ;;  %v3845_v28 = vpop.f32.mrf.mxu0 }
0x1aeb   :  { %v3846_v47 = vadd.f32 %v3845_v28, %v3806_v24 }
0x1aed   :  { %v3851_v56 = vmul.f32 0.5, %v3846_v47 }
0x1aef   :  { %v3855_v2 = vadd.f32 %v3851_v56, %v6038_v34 }
0x1af1   :  { %v3865_v25 = vsel %vm40_vm0, %v3855_v2, 0.0 }
0x1af2   :  { %3866 = vadd.xlane.f32.xlu2 %v3865_v25 }
0x1b47   :  { %v3858_v27 = vpop.xlane.xlu2 %3857 }
0x1b48   :  { %v3868_v63 = vmul.f32 %v3858_v27, %v4702_v14 }
0x1b4a   :  { %v3872_v46 = vsub.f32 %v3852_v18, %v3868_v63 }
0x1b4c   :  { %v3876_v53 = vmul.f32 %v3872_v46, %v3872_v46 }
0x1b4e   :  { %v3880_v36 = vsel %vm40_vm0, %v3876_v53, 0.0 }
0x1b4f   :  { %v3861_v43 = vpop.xlane.xlu0 %3860  ;;  %3881 = vadd.xlane.f32.xlu0 %v3880_v36 }
0x1b50   :  { %v3869_v31 = vmul.f32 %v3861_v43, %v4702_v14 }
0x1b52   :  { %v3873_v37 = vsub.f32 %v3853_v58, %v3869_v31 }
0x1b54   :  { %v3877_v57 = vmul.f32 %v3873_v37, %v3873_v37 }
0x1b56   :  { %v3883_v51 = vsel %vm40_vm0, %v3877_v57, 0.0 }
0x1b57   :  { %3884 = vadd.xlane.f32.xlu1 %v3883_v51 }
0x1b5d   :  { %v3864_v34 = vpop.xlane.xlu1 %3863 }
0x1b5e   :  { %v3870_v62 = vmul.f32 %v3864_v34, %v4702_v14 }
0x1b60   :  { %v6141_v49 = vsub.f32 %v3854_v52, %v3870_v62 }
0x1b62   :  { %v3878_v40 = vmul.f32 %v6141_v49, %v6141_v49 }
0x1b64   :  { %v3886_v55 = vsel %vm40_vm0, %v3878_v40, 0.0 }
0x1b65   :  { %v3867_v5 = vpop.xlane.xlu2 %3866  ;;  %3887 = vadd.xlane.f32.xlu2 %v3886_v55 }
0x1b66   :  { %v3871_v1 = vmul.f32 %v3867_v5, %v4702_v14 }
0x1b68   :  { %v6147_v54 = vsub.f32 %v3855_v2, %v3871_v1 }
0x1b6a   :  { %v3879_v39 = vmul.f32 %v6147_v54, %v6147_v54 }
0x1b6c   :  { %v3889_v50 = vsel %vm40_vm0, %v3879_v39, 0.0 }
0x1b6d   :  { %3890 = vadd.xlane.f32.xlu0 %v3889_v50 }
0x1bc2   :  { %v3882_v6 = vpop.xlane.xlu0 %3881 }
0x1bc3   :  { %v3892_v60 = vmul.f32 %v3882_v6, %v4702_v14 }
0x1bc5   :  { %v3896_v3 = vadd.f32 1e-05, %v3892_v60 }
0x1bc7   :  { %4576 = vrsqrt.f32 %v3896_v3  ;;  %vm3906_vm10 = vweird.f32 %v3896_v3 }
0x1bca   :  { %v3885_v45 = vpop.xlane.xlu1 %3884 }
0x1bcb   :  { %v3893_v13 = vmul.f32 %v3885_v45, %v4702_v14 }
0x1bcd   :  { %v4577_v41 = vpop.eup %4576  ;;  %v3897_v32 = vadd.f32 1e-05, %v3893_v13 }
0x1bce   :  { %v3901_v8 = vmul.f32 %v4577_v41, %v3896_v3  ;;  %vm3907_vm3 = vweird.f32 %v4577_v41 }
0x1bcf   :  { %4578 = vrsqrt.f32 %v3897_v32  ;;  %vm3908_vm11 = vmor %vm3906_vm10, %vm3907_vm3  ;;  %vm3916_vm13 = vweird.f32 %v3897_v32 }
0x1bd0   :  { %v3902_v0 = vmul.f32 %v4577_v41, %v3901_v8 }
0x1bd2   :  { %v3903_v61 = vmul.f32 0.5, %v3902_v0 }
0x1bd4   :  { %v3904_v16 = vsub.f32 1.5, %v3903_v61 }
0x1bd5   :  { %v4579_v21 = vpop.eup %4578 }
0x1bd6   :  { %v3905_v17 = vmul.f32 %v4577_v41, %v3904_v16  ;;  %v3911_v11 = vmul.f32 %v4579_v21, %v3897_v32  ;;  %vm3917_vm12 = vweird.f32 %v4579_v21 }
0x1bd7   :  { %vm3918_vm15 = vmor %vm3916_vm13, %vm3917_vm12 }
0x1bd8   :  { %v3909_v59 = vsel %vm3908_vm11, %v4577_v41, %v3905_v17  ;;  %v3912_v20 = vmul.f32 %v4579_v21, %v3911_v11  ;;  %v3888_v23 = vpop.xlane.xlu2 %3887 }
0x1bd9   :  { %v3940_v30 = vmul.f32 %v3909_v59, %v3872_v46  ;;  %v3894_v24 = vmul.f32 %v3888_v23, %v4702_v14 }
0x1bda   :  { %v3913_v29 = vmul.f32 0.5, %v3912_v20 }
0x1bdb   :  { %v3945_v7 = vmul.f32 %v3944_v26, %v3940_v30  ;;  %v3898_v10 = vadd.f32 1e-05, %v3894_v24 }
0x1bdc   :  { %v3914_v33 = vsub.f32 1.5, %v3913_v29 }
0x1bdd   :  { %v3950_v18 = vadd.f32 %v3949_v9, %v3945_v7  ;;  %4580 = vrsqrt.f32 %v3898_v10  ;;  %vm3926_vm2 = vweird.f32 %v3898_v10 }
0x1bde   :  { %v3915_v22 = vmul.f32 %v4579_v21, %v3914_v33 }
0x1bdf   :  { %v3954_v35 = vmax.f32 %v3950_v18, 0.0 }
0x1be0   :  { %v3919_v38 = vsel %vm3918_vm15, %v4579_v21, %v3915_v22  ;;  %v3891_v42 = vpop.xlane.xlu0 %3890 }
0x1be1   :  { %3958 = vst.msk [vmem:[#allocation3] sm:$0xff] %vm40_vm0, %v3954_v35  ;;  %v3941_v19 = vmul.f32 %v3919_v38, %v3873_v37  ;;  %v3895_v58 = vmul.f32 %v3891_v42, %v4702_v14 }
0x1be3   :  { %v3946_v4 = vmul.f32 %v3944_v26, %v3941_v19  ;;  %v4581_v15 = vpop.eup %4580  ;;  %v3899_v44 = vadd.f32 1e-05, %v3895_v58 }
0x1be4   :  { %v3921_v52 = vmul.f32 %v4581_v15, %v3898_v10  ;;  %vm3927_vm1 = vweird.f32 %v4581_v15 }
0x1be5   :  { %v3951_v12 = vadd.f32 %v3949_v9, %v3946_v4  ;;  %4582 = vrsqrt.f32 %v3899_v44  ;;  %vm3928_vm4 = vmor %vm3926_vm2, %vm3927_vm1  ;;  %vm3936_vm6 = vweird.f32 %v3899_v44 }
0x1be6   :  { %v3922_v28 = vmul.f32 %v4581_v15, %v3921_v52 }
0x1be7   :  { %v3955_v48 = vmax.f32 %v3951_v12, 0.0 }
0x1be8   :  { %v3923_v47 = vmul.f32 0.5, %v3922_v28 }
0x1be9   :  { %3959 = vst.msk [vmem:[#allocation3 + $0x8] sm:$0xff] %vm40_vm0, %v3955_v48 }
0x1bea   :  { %v3924_v56 = vsub.f32 1.5, %v3923_v47 }
0x1beb   :  { %v4583_v2 = vpop.eup %4582 }
0x1bec   :  { %v3925_v25 = vmul.f32 %v4581_v15, %v3924_v56  ;;  %v3931_v27 = vmul.f32 %v4583_v2, %v3899_v44  ;;  %vm3937_vm5 = vweird.f32 %v4583_v2 }
0x1bed   :  { %vm3938_vm7 = vmor %vm3936_vm6, %vm3937_vm5 }
0x1bee   :  { %v3929_v63 = vsel %vm3928_vm4, %v4581_v15, %v3925_v25  ;;  %v3932_v14 = vmul.f32 %v4583_v2, %v3931_v27 }
0x1bef   :  { %v3942_v46 = vmul.f32 %v3929_v63, %v6141_v49 }
0x1bf0   :  { %v3933_v53 = vmul.f32 0.5, %v3932_v14 }
0x1bf1   :  { %v3947_v36 = vmul.f32 %v3944_v26, %v3942_v46 }
0x1bf2   :  { %v3934_v43 = vsub.f32 1.5, %v3933_v53 }
0x1bf3   :  { %v3952_v31 = vadd.f32 %v3949_v9, %v3947_v36 }
0x1bf4   :  { %v3935_v37 = vmul.f32 %v4583_v2, %v3934_v43 }
0x1bf5   :  { %v3956_v57 = vmax.f32 %v3952_v31, 0.0 }
0x1bf6   :  { %v3939_v51 = vsel %vm3938_vm7, %v4583_v2, %v3935_v37 }
0x1bf7   :  { %3960 = vst.msk [vmem:[#allocation3 + $0x10] sm:$0xff] %vm40_vm0, %v3956_v57  ;;  %v3943_v34 = vmul.f32 %v3939_v51, %v6147_v54 }
0x1bf9   :  { %v3948_v62 = vmul.f32 %v3944_v26, %v3943_v34 }
0x1bfb   :  { %v3953_v49 = vadd.f32 %v3949_v9, %v3948_v62 }
0x1bfd   :  { %v3957_v40 = vmax.f32 %v3953_v49, 0.0 }
0x1bff   :  { %3961 = vst.msk [vmem:[#allocation3 + $0x18] sm:$0xff] %vm40_vm0, %v3957_v40 }
0x1c00   :  { %3974 = dma.vmem_to_hbm [thread:$0]  %s3967_s0, 512, %s3969_s21, [#allocation4], %s4617_s22, %s4617_s22, %s4618_s23  }
0x1c01   :  { %4612 = dma.done.wait [#allocation4], 512  }
0x1c02   :  { %4613 = vsyncadd [#allocation4], 4294966784 }
0x1c03   :  { %3979 = vsyncpa [#allocation4], 1 }

</bundles_post_ra>
